<compile_context>
chip_gen: v7x
topology: tpu7x:2x2x1
jax: 0.10.0
libtpu: 0.0.40
codegen_flags: <defaults>
</compile_context>

<pallas_src>
import functools

import jax
import jax.numpy as jnp
from jax.experimental import pallas as pl
from jax.experimental.pallas import tpu as pltpu

EPS = 1e-5


# ---------------------------------------------------------------------------
# Fused Pallas kernel (whole batch, single step)
# ---------------------------------------------------------------------------
def _cfem_kernel(x_ref, w_ref, b_ref, o_ref, pad_ref, *,
                 metas, lin_meta, short_meta, N, H, W):
    """Fully fused CFEM forward.

    x_ref  : (N*H*W, Cin)  f32  -- batch-flattened NHWC input
    w_ref  : (RW, Cmax)    f32  -- all conv weights packed row-wise
                                   (BN scale / residual scale folded in);
                                   rows = concat over convs of kh*kw*cin tap blocks
    b_ref  : (12, Cmax)    f32  -- folded BN bias per layer
    o_ref  : (N*H*W, Cout) f32  -- output
    pad_ref: (N, Hp, Wp, Cmax) f32 VMEM scratch -- per-image zero-padded slab
    """
    M = N * H * W

    def conv_bn_act(x_flat, meta):
        kh, kw, ph, pw, relu, cin, cout, woff, bidx = meta
        if kh == 1 and kw == 1:
            acc = jnp.dot(x_flat, w_ref[woff:woff + cin, 0:cout],
                          preferred_element_type=jnp.float32)
        else:
            hp, wp = H + 2 * ph, W + 2 * pw
            # Zero only the halo bands this conv reads; interior is overwritten.
            if ph > 0:
                zv = jnp.zeros((N, ph, wp, cin), jnp.float32)
                pad_ref[:, 0:ph, 0:wp, 0:cin] = zv
                pad_ref[:, ph + H:hp, 0:wp, 0:cin] = zv
            if pw > 0:
                zh = jnp.zeros((N, hp, pw, cin), jnp.float32)
                pad_ref[:, 0:hp, 0:pw, 0:cin] = zh
                pad_ref[:, 0:hp, pw + W:wp, 0:cin] = zh
            pad_ref[:, ph:ph + H, pw:pw + W, 0:cin] = x_flat.reshape(N, H, W, cin)

            # Per-tap MXU contractions into an f32 register accumulator; every
            # tap load starts at lane offset 0 (no lane rotates / masked patch
            # stores -- the store/XLU path was the previous bottleneck).
            acc = jnp.zeros((M, cout), jnp.float32)
            for i in range(kh):
                for j in range(kw):
                    t = i * kw + j
                    tap = pad_ref[:, i:i + H, j:j + W, 0:cin].reshape(M, cin)
                    acc = acc + jnp.dot(
                        tap,
                        w_ref[woff + t * cin:woff + (t + 1) * cin, 0:cout],
                        preferred_element_type=jnp.float32)

        out = acc + b_ref[bidx:bidx + 1, 0:cout]     # folded-BN bias
        if relu:
            out = jnp.maximum(out, 0.0)
        return out

    x0 = x_ref[...]                                   # (M, Cin) f32

    x1 = x0
    for meta in metas[0:5]:                           # cfem_a
        x1 = conv_bn_act(x1, meta)
    x2 = x0
    for meta in metas[5:10]:                          # cfem_b
        x2 = conv_bn_act(x2, meta)

    # Fused ConvLinear(cat(x1, x2)) + shortcut + residual + ReLU.  The channel
    # concat disappears by splitting the ConvLinear weight; the residual scale
    # is already folded into those weights / that bias.
    woff_a, woff_b, second, cout_l, bidx_l = lin_meta
    lin = jnp.dot(x1, w_ref[woff_a:woff_a + second, 0:cout_l],
                  preferred_element_type=jnp.float32)
    lin = lin + jnp.dot(x2, w_ref[woff_b:woff_b + second, 0:cout_l],
                        preferred_element_type=jnp.float32)
    lin = lin + b_ref[bidx_l:bidx_l + 1, 0:cout_l]

    woff_s, cin_s, cout_s, bidx_s = short_meta
    short = jnp.dot(x0, w_ref[woff_s:woff_s + cin_s, 0:cout_s],
                    preferred_element_type=jnp.float32)
    short = short + b_ref[bidx_s:bidx_s + 1, 0:cout_s]

    o_ref[...] = jnp.maximum(lin + short, 0.0)        # residual ReLU


# ---------------------------------------------------------------------------
# Wrapper (single pallas_call, 3 packed operands)
# ---------------------------------------------------------------------------
def cfem_forward(params, x_nhwc, scale=0.1):
    """x_nhwc: (N, H, W, Cin) f32 -> (N, H, W, Cout) f32."""
    N, H, W, Cin = x_nhwc.shape
    branch = params["cfem_a"] + params["cfem_b"]
    lin, sc = params["conv_linear"], params["shortcut"]
    second = params["cfem_a"][-1]["meta"][6]
    Cout = sc["w"].shape[-1]
    Cmax = max(max(c["w"].shape[-1] for c in branch), Cout)

    def pad_cols(a):
        return jnp.pad(a, ((0, 0), (0, Cmax - a.shape[1])))

    # ---- pack every conv into one weight slab + one bias slab -------------
    w_rows, b_rows, metas = [], [], []
    row_off = 0
    for c in branch:
        kh, kw, ph, pw, relu, cin, cout = c["meta"]
        metas.append((kh, kw, ph, pw, relu, cin, cout, row_off, len(b_rows)))
        w_rows.append(pad_cols(c["w"]))
        b_rows.append(pad_cols(c["b"][None, :]))
        row_off += kh * kw * cin

    # ConvLinear: fold the residual scale, split along Cin (drops the concat).
    wl = lin["w"] * scale                              # (2*second, Cout)
    bl = lin["b"] * scale
    woff_a = row_off; w_rows.append(pad_cols(wl[:second])); row_off += second
    woff_b = row_off; w_rows.append(pad_cols(wl[second:])); row_off += second
    lin_meta = (woff_a, woff_b, second, Cout, len(b_rows))
    b_rows.append(pad_cols(bl[None, :]))

    woff_s = row_off; w_rows.append(pad_cols(sc["w"])); row_off += Cin
    short_meta = (woff_s, Cin, Cout, len(b_rows))
    b_rows.append(pad_cols(sc["b"][None, :]))

    w_slab = jnp.concatenate(w_rows, axis=0)           # (RW, Cmax) f32
    b_slab = jnp.concatenate(b_rows, axis=0)           # (12, Cmax) f32

    # Padded-slab scratch sizing (max halo over the spatial convs).
    hp = H + 2 * max(m[2] for m in metas)
    wp = W + 2 * max(m[3] for m in metas)

    M = N * H * W
    x_flat = x_nhwc.reshape(M, Cin)

    # Advisory cost estimate for XLA's scheduler.
    flops = 2 * M * sum(m[0] * m[1] * m[5] * m[6] for m in metas)
    flops += 2 * M * (2 * second * Cout + Cin * Cout)
    bytes_accessed = 4 * (x_flat.size + w_slab.size + b_slab.size + M * Cout)

    kernel = functools.partial(_cfem_kernel, metas=tuple(metas),
                               lin_meta=lin_meta, short_meta=short_meta,
                               N=N, H=H, W=W)
    out = pl.pallas_call(
        kernel,
        out_shape=jax.ShapeDtypeStruct((M, Cout), jnp.float32),
        grid=(1,),
        in_specs=[
            pl.BlockSpec((M, Cin), lambda n: (0, 0)),
            pl.BlockSpec(w_slab.shape, lambda n: (0, 0)),
            pl.BlockSpec(b_slab.shape, lambda n: (0, 0)),
        ],
        out_specs=pl.BlockSpec((M, Cout), lambda n: (0, 0)),
        scratch_shapes=[pltpu.VMEM((N, hp, wp, Cmax), jnp.float32)],
        compiler_params=pltpu.CompilerParams(
            dimension_semantics=("arbitrary",)),
        cost_estimate=pl.CostEstimate(flops=int(flops), transcendentals=0,
                                      bytes_accessed=int(bytes_accessed)),
    )(x_flat, w_slab, b_slab)
    return out.reshape(N, H, W, Cout)


# ---------------------------------------------------------------------------
# Parameter construction (deterministic, synthetic)
# ---------------------------------------------------------------------------
def make_basic_conv(key, cin, cout, kh, kw, groups=1, relu=True):
    k1, k2, k3, k4, k5 = jax.random.split(key, 5)
    # PyTorch conv weight layout: (cout, cin // groups, kh, kw), bias=False.
    w_t = 0.05 * jax.random.normal(k1, (cout, cin // groups, kh, kw), jnp.float32)

    cin_pg, cout_pg = cin // groups, cout // groups
    # Grouped conv expressed exactly as a dense conv with block-diagonal weight.
    dense = jnp.zeros((kh, kw, cin, cout), jnp.float32)
    for g in range(groups):
        blk = jnp.transpose(w_t[g * cout_pg:(g + 1) * cout_pg], (2, 3, 1, 0))
        dense = dense.at[:, :,
                         g * cin_pg:(g + 1) * cin_pg,
                         g * cout_pg:(g + 1) * cout_pg].set(blk)

    # BatchNorm (inference / running stats) folded: scale into the weight,
    # bias kept separately for the kernel epilogue.
    gamma = 1.0 + 0.1 * jax.random.normal(k2, (cout,), jnp.float32)
    beta = 0.1 * jax.random.normal(k3, (cout,), jnp.float32)
    rmean = 0.05 * jax.random.normal(k4, (cout,), jnp.float32)
    rvar = 1.0 + 0.1 * jax.random.uniform(k5, (cout,), jnp.float32)
    bn_scale = gamma / jnp.sqrt(rvar + EPS)
    bn_bias = beta - rmean * bn_scale

    ph, pw = (kh - 1) // 2, (kw - 1) // 2   # matches the module's paddings
    w_folded = (dense * bn_scale).reshape(kh * kw * cin, cout)   # tap-major rows
    return dict(w=w_folded, b=bn_bias, meta=(kh, kw, ph, pw, relu, cin, cout))


def init_cfem(key, in_planes, out_planes, groups=8, thinning=2, k=7):
    second = in_planes // thinning
    keys = jax.random.split(key, 12)
    cfem_a = [
        make_basic_conv(keys[0], in_planes, in_planes, 1, k, groups=groups, relu=False),
        make_basic_conv(keys[1], in_planes, second, 1, 1, relu=True),
        make_basic_conv(keys[2], second, second, 3, 3, groups=4, relu=True),
        make_basic_conv(keys[3], second, second, k, 1, groups=groups, relu=False),
        make_basic_conv(keys[4], second, second, 1, 1, relu=True),
    ]
    cfem_b = [
        make_basic_conv(keys[5], in_planes, in_planes, k, 1, groups=groups, relu=False),
        make_basic_conv(keys[6], in_planes, second, 1, 1, relu=True),
        make_basic_conv(keys[7], second, second, 3, 3, groups=4, relu=True),
        make_basic_conv(keys[8], second, second, 1, k, groups=groups, relu=False),
        make_basic_conv(keys[9], second, second, 1, 1, relu=True),
    ]
    conv_linear = make_basic_conv(keys[10], 2 * second, out_planes, 1, 1, relu=False)
    shortcut = make_basic_conv(keys[11], in_planes, out_planes, 1, 1, relu=False)
    return dict(cfem_a=cfem_a, cfem_b=cfem_b,
                conv_linear=conv_linear, shortcut=shortcut)


# ---------------------------------------------------------------------------
# Main
# ---------------------------------------------------------------------------
if __name__ == "__main__":
    key = jax.random.PRNGKey(0)
    kx, kp = jax.random.split(key)

    # Small shapes consistent with the module: N=2, C=16 (groups=8 / thinning=2
    # / 3x3 groups=4 all divide), H=W=8.
    N, C, H, W = 2, 16, 8, 8
    x_nchw = jax.random.normal(kx, (N, C, H, W), jnp.float32)   # PyTorch layout
    x_nhwc = jnp.transpose(x_nchw, (0, 2, 3, 1))                # kernel layout

    params = init_cfem(kp, in_planes=C, out_planes=C, groups=8, thinning=2, k=7)

    out = cfem_forward(params, x_nhwc, scale=0.1)
    out = jax.block_until_ready(out)
    assert out.shape == (N, H, W, C)
    assert bool(jnp.all(jnp.isfinite(out)))
    assert bool(jnp.all(out >= 0.0))   # final ReLU

    print("KERNEL_OK")
</pallas_src>

<mosaic_0001>
module attributes {stable_mosaic.version = 11 : i64} {
  func.func @_cfem_kernel(%arg0: i32, %arg1: memref<128x16xf32, #tpu.memory_space<vmem>>, %arg2: memref<560x16xf32, #tpu.memory_space<vmem>>, %arg3: memref<12x16xf32, #tpu.memory_space<vmem>>, %arg4: memref<128x16xf32, #tpu.memory_space<vmem>>, %arg5: memref<2x14x14x16xf32, #tpu.memory_space<vmem>>) attributes {dimension_semantics = [#tpu.dimension_semantics<arbitrary>], iteration_bounds = array<i64: 1>, scalar_prefetch = 0 : i64, scratch_operands = 1 : i64, tpu.core_type = #tpu.core_type<tc>, window_params = [{pipeline_mode = #tpu.pipeline_mode<synchronous>, transform_indices = @transform_0, window_bounds = array<i64: 128, 16>}, {pipeline_mode = #tpu.pipeline_mode<synchronous>, transform_indices = @transform_1, window_bounds = array<i64: 560, 16>}, {pipeline_mode = #tpu.pipeline_mode<synchronous>, transform_indices = @transform_2, window_bounds = array<i64: 12, 16>}, {pipeline_mode = #tpu.pipeline_mode<synchronous>, transform_indices = @transform_3, window_bounds = array<i64: 128, 16>}]} {
    %c0 = arith.constant 0 : index
    %c0_0 = arith.constant 0 : index
    %0 = vector.load %arg1[%c0, %c0_0] : memref<128x16xf32, #tpu.memory_space<vmem>>, vector<128x16xf32>
    %cst = arith.constant 0.000000e+00 : f32
    %1 = vector.broadcast %cst : f32 to vector<2x8x3x16xf32>
    %c0_1 = arith.constant 0 : index
    %c0_2 = arith.constant 0 : index
    %c0_3 = arith.constant 0 : index
    %c0_4 = arith.constant 0 : index
    %2 = vector.load %arg5[%c0_1, %c0_2, %c0_3, %c0_4] : memref<2x14x14x16xf32, #tpu.memory_space<vmem>>, vector<2x8x3x16xf32>
    tpu.vector_store %arg5[%c0_1, %c0_2, %c0_3, %c0_4], %1 {strides = array<i32>} : memref<2x14x14x16xf32, #tpu.memory_space<vmem>>, vector<2x8x3x16xf32>,
    %c0_5 = arith.constant 0 : index
    %c0_6 = arith.constant 0 : index
    %c11 = arith.constant 11 : index
    %c0_7 = arith.constant 0 : index
    %3 = vector.load %arg5[%c0_5, %c0_6, %c11, %c0_7] : memref<2x14x14x16xf32, #tpu.memory_space<vmem>>, vector<2x8x3x16xf32>
    tpu.vector_store %arg5[%c0_5, %c0_6, %c11, %c0_7], %1 {strides = array<i32>} : memref<2x14x14x16xf32, #tpu.memory_space<vmem>>, vector<2x8x3x16xf32>,
    %4 = vector.shape_cast %0 : vector<128x16xf32> to vector<2x8x8x16xf32>
    %c0_8 = arith.constant 0 : index
    %c0_9 = arith.constant 0 : index
    %c3 = arith.constant 3 : index
    %c0_10 = arith.constant 0 : index
    %5 = vector.load %arg5[%c0_8, %c0_9, %c3, %c0_10] : memref<2x14x14x16xf32, #tpu.memory_space<vmem>>, vector<2x8x8x16xf32>
    tpu.vector_store %arg5[%c0_8, %c0_9, %c3, %c0_10], %4 {strides = array<i32>} : memref<2x14x14x16xf32, #tpu.memory_space<vmem>>, vector<2x8x8x16xf32>,
    %cst_11 = arith.constant 0.000000e+00 : f32
    %6 = vector.broadcast %cst_11 : f32 to vector<128x16xf32>
    %c0_12 = arith.constant 0 : index
    %c0_13 = arith.constant 0 : index
    %c0_14 = arith.constant 0 : index
    %c0_15 = arith.constant 0 : index
    %7 = vector.load %arg5[%c0_12, %c0_13, %c0_14, %c0_15] : memref<2x14x14x16xf32, #tpu.memory_space<vmem>>, vector<2x8x8x16xf32>
    %8 = vector.shape_cast %7 : vector<2x8x8x16xf32> to vector<128x16xf32>
    %c0_16 = arith.constant 0 : index
    %c0_17 = arith.constant 0 : index
    %9 = vector.load %arg2[%c0_16, %c0_17] : memref<560x16xf32, #tpu.memory_space<vmem>>, vector<16x16xf32>
    %cst_18 = arith.constant dense<0.000000e+00> : vector<128x16xf32>
    %10 = tpu.matmul %8, %9, %cst_18 {dimension_numbers = #tpu.dot_dimension_numbers<[1], [0], [0], [1], [0, 0, 1, 1], [], []>} : vector<128x16xf32>, vector<16x16xf32>, vector<128x16xf32> -> vector<128x16xf32>
    %11 = arith.addf %6, %10 : vector<128x16xf32>
    %c0_19 = arith.constant 0 : index
    %c0_20 = arith.constant 0 : index
    %c1 = arith.constant 1 : index
    %c0_21 = arith.constant 0 : index
    %12 = vector.load %arg5[%c0_19, %c0_20, %c1, %c0_21] : memref<2x14x14x16xf32, #tpu.memory_space<vmem>>, vector<2x8x8x16xf32>
    %13 = vector.shape_cast %12 : vector<2x8x8x16xf32> to vector<128x16xf32>
    %c16 = arith.constant 16 : index
    %c0_22 = arith.constant 0 : index
    %14 = vector.load %arg2[%c16, %c0_22] : memref<560x16xf32, #tpu.memory_space<vmem>>, vector<16x16xf32>
    %cst_23 = arith.constant dense<0.000000e+00> : vector<128x16xf32>
    %15 = tpu.matmul %13, %14, %cst_23 {dimension_numbers = #tpu.dot_dimension_numbers<[1], [0], [0], [1], [0, 0, 1, 1], [], []>} : vector<128x16xf32>, vector<16x16xf32>, vector<128x16xf32> -> vector<128x16xf32>
    %16 = arith.addf %11, %15 : vector<128x16xf32>
    %c0_24 = arith.constant 0 : index
    %c0_25 = arith.constant 0 : index
    %c2 = arith.constant 2 : index
    %c0_26 = arith.constant 0 : index
    %17 = vector.load %arg5[%c0_24, %c0_25, %c2, %c0_26] : memref<2x14x14x16xf32, #tpu.memory_space<vmem>>, vector<2x8x8x16xf32>
    %18 = vector.shape_cast %17 : vector<2x8x8x16xf32> to vector<128x16xf32>
    %c32 = arith.constant 32 : index
    %c0_27 = arith.constant 0 : index
    %19 = vector.load %arg2[%c32, %c0_27] : memref<560x16xf32, #tpu.memory_space<vmem>>, vector<16x16xf32>
    %cst_28 = arith.constant dense<0.000000e+00> : vector<128x16xf32>
    %20 = tpu.matmul %18, %19, %cst_28 {dimension_numbers = #tpu.dot_dimension_numbers<[1], [0], [0], [1], [0, 0, 1, 1], [], []>} : vector<128x16xf32>, vector<16x16xf32>, vector<128x16xf32> -> vector<128x16xf32>
    %21 = arith.addf %16, %20 : vector<128x16xf32>
    %c0_29 = arith.constant 0 : index
    %c0_30 = arith.constant 0 : index
    %c3_31 = arith.constant 3 : index
    %c0_32 = arith.constant 0 : index
    %22 = vector.load %arg5[%c0_29, %c0_30, %c3_31, %c0_32] : memref<2x14x14x16xf32, #tpu.memory_space<vmem>>, vector<2x8x8x16xf32>
    %23 = vector.shape_cast %22 : vector<2x8x8x16xf32> to vector<128x16xf32>
    %c48 = arith.constant 48 : index
    %c0_33 = arith.constant 0 : index
    %24 = vector.load %arg2[%c48, %c0_33] : memref<560x16xf32, #tpu.memory_space<vmem>>, vector<16x16xf32>
    %cst_34 = arith.constant dense<0.000000e+00> : vector<128x16xf32>
    %25 = tpu.matmul %23, %24, %cst_34 {dimension_numbers = #tpu.dot_dimension_numbers<[1], [0], [0], [1], [0, 0, 1, 1], [], []>} : vector<128x16xf32>, vector<16x16xf32>, vector<128x16xf32> -> vector<128x16xf32>
    %26 = arith.addf %21, %25 : vector<128x16xf32>
    %c0_35 = arith.constant 0 : index
    %c0_36 = arith.constant 0 : index
    %c4 = arith.constant 4 : index
    %c0_37 = arith.constant 0 : index
    %27 = vector.load %arg5[%c0_35, %c0_36, %c4, %c0_37] : memref<2x14x14x16xf32, #tpu.memory_space<vmem>>, vector<2x8x8x16xf32>
    %28 = vector.shape_cast %27 : vector<2x8x8x16xf32> to vector<128x16xf32>
    %c64 = arith.constant 64 : index
    %c0_38 = arith.constant 0 : index
    %29 = vector.load %arg2[%c64, %c0_38] : memref<560x16xf32, #tpu.memory_space<vmem>>, vector<16x16xf32>
    %cst_39 = arith.constant dense<0.000000e+00> : vector<128x16xf32>
    %30 = tpu.matmul %28, %29, %cst_39 {dimension_numbers = #tpu.dot_dimension_numbers<[1], [0], [0], [1], [0, 0, 1, 1], [], []>} : vector<128x16xf32>, vector<16x16xf32>, vector<128x16xf32> -> vector<128x16xf32>
    %31 = arith.addf %26, %30 : vector<128x16xf32>
    %c0_40 = arith.constant 0 : index
    %c0_41 = arith.constant 0 : index
    %c5 = arith.constant 5 : index
    %c0_42 = arith.constant 0 : index
    %32 = vector.load %arg5[%c0_40, %c0_41, %c5, %c0_42] : memref<2x14x14x16xf32, #tpu.memory_space<vmem>>, vector<2x8x8x16xf32>
    %33 = vector.shape_cast %32 : vector<2x8x8x16xf32> to vector<128x16xf32>
    %c80 = arith.constant 80 : index
    %c0_43 = arith.constant 0 : index
    %34 = vector.load %arg2[%c80, %c0_43] : memref<560x16xf32, #tpu.memory_space<vmem>>, vector<16x16xf32>
    %cst_44 = arith.constant dense<0.000000e+00> : vector<128x16xf32>
    %35 = tpu.matmul %33, %34, %cst_44 {dimension_numbers = #tpu.dot_dimension_numbers<[1], [0], [0], [1], [0, 0, 1, 1], [], []>} : vector<128x16xf32>, vector<16x16xf32>, vector<128x16xf32> -> vector<128x16xf32>
    %36 = arith.addf %31, %35 : vector<128x16xf32>
    %c0_45 = arith.constant 0 : index
    %c0_46 = arith.constant 0 : index
    %c6 = arith.constant 6 : index
    %c0_47 = arith.constant 0 : index
    %37 = vector.load %arg5[%c0_45, %c0_46, %c6, %c0_47] : memref<2x14x14x16xf32, #tpu.memory_space<vmem>>, vector<2x8x8x16xf32>
    %38 = vector.shape_cast %37 : vector<2x8x8x16xf32> to vector<128x16xf32>
    %c96 = arith.constant 96 : index
    %c0_48 = arith.constant 0 : index
    %39 = vector.load %arg2[%c96, %c0_48] : memref<560x16xf32, #tpu.memory_space<vmem>>, vector<16x16xf32>
    %cst_49 = arith.constant dense<0.000000e+00> : vector<128x16xf32>
    %40 = tpu.matmul %38, %39, %cst_49 {dimension_numbers = #tpu.dot_dimension_numbers<[1], [0], [0], [1], [0, 0, 1, 1], [], []>} : vector<128x16xf32>, vector<16x16xf32>, vector<128x16xf32> -> vector<128x16xf32>
    %41 = arith.addf %36, %40 : vector<128x16xf32>
    %c0_50 = arith.constant 0 : index
    %c0_51 = arith.constant 0 : index
    %42 = vector.load %arg3[%c0_50, %c0_51] : memref<12x16xf32, #tpu.memory_space<vmem>>, vector<1x16xf32>
    %43 = vector.broadcast %42 : vector<1x16xf32> to vector<128x16xf32>
    %44 = arith.addf %41, %43 : vector<128x16xf32>
    %c112 = arith.constant 112 : index
    %c0_52 = arith.constant 0 : index
    %45 = vector.load %arg2[%c112, %c0_52] : memref<560x16xf32, #tpu.memory_space<vmem>>, vector<16x8xf32>
    %cst_53 = arith.constant dense<0.000000e+00> : vector<128x8xf32>
    %46 = tpu.matmul %44, %45, %cst_53 {dimension_numbers = #tpu.dot_dimension_numbers<[1], [0], [0], [1], [0, 0, 1, 1], [], []>} : vector<128x16xf32>, vector<16x8xf32>, vector<128x8xf32> -> vector<128x8xf32>
    %c1_54 = arith.constant 1 : index
    %c0_55 = arith.constant 0 : index
    %47 = vector.load %arg3[%c1_54, %c0_55] : memref<12x16xf32, #tpu.memory_space<vmem>>, vector<1x8xf32>
    %48 = vector.broadcast %47 : vector<1x8xf32> to vector<128x8xf32>
    %49 = arith.addf %46, %48 : vector<128x8xf32>
    %cst_56 = arith.constant 0.000000e+00 : f32
    %50 = vector.broadcast %cst_56 : f32 to vector<128x8xf32>
    %51 = arith.maximumf %49, %50 : vector<128x8xf32>
    %cst_57 = arith.constant 0.000000e+00 : f32
    %52 = vector.broadcast %cst_57 : f32 to vector<2x1x10x8xf32>
    %c0_58 = arith.constant 0 : index
    %c0_59 = arith.constant 0 : index
    %c0_60 = arith.constant 0 : index
    %c0_61 = arith.constant 0 : index
    %53 = vector.load %arg5[%c0_58, %c0_59, %c0_60, %c0_61] : memref<2x14x14x16xf32, #tpu.memory_space<vmem>>, vector<2x1x10x8xf32>
    tpu.vector_store %arg5[%c0_58, %c0_59, %c0_60, %c0_61], %52 {strides = array<i32>} : memref<2x14x14x16xf32, #tpu.memory_space<vmem>>, vector<2x1x10x8xf32>,
    %c0_62 = arith.constant 0 : index
    %c9 = arith.constant 9 : index
    %c0_63 = arith.constant 0 : index
    %c0_64 = arith.constant 0 : index
    %54 = vector.load %arg5[%c0_62, %c9, %c0_63, %c0_64] : memref<2x14x14x16xf32, #tpu.memory_space<vmem>>, vector<2x1x10x8xf32>
    tpu.vector_store %arg5[%c0_62, %c9, %c0_63, %c0_64], %52 {strides = array<i32>} : memref<2x14x14x16xf32, #tpu.memory_space<vmem>>, vector<2x1x10x8xf32>,
    %cst_65 = arith.constant 0.000000e+00 : f32
    %55 = vector.broadcast %cst_65 : f32 to vector<2x10x1x8xf32>
    %c0_66 = arith.constant 0 : index
    %c0_67 = arith.constant 0 : index
    %c0_68 = arith.constant 0 : index
    %c0_69 = arith.constant 0 : index
    %56 = vector.load %arg5[%c0_66, %c0_67, %c0_68, %c0_69] : memref<2x14x14x16xf32, #tpu.memory_space<vmem>>, vector<2x10x1x8xf32>
    tpu.vector_store %arg5[%c0_66, %c0_67, %c0_68, %c0_69], %55 {strides = array<i32>} : memref<2x14x14x16xf32, #tpu.memory_space<vmem>>, vector<2x10x1x8xf32>,
    %c0_70 = arith.constant 0 : index
    %c0_71 = arith.constant 0 : index
    %c9_72 = arith.constant 9 : index
    %c0_73 = arith.constant 0 : index
    %57 = vector.load %arg5[%c0_70, %c0_71, %c9_72, %c0_73] : memref<2x14x14x16xf32, #tpu.memory_space<vmem>>, vector<2x10x1x8xf32>
    tpu.vector_store %arg5[%c0_70, %c0_71, %c9_72, %c0_73], %55 {strides = array<i32>} : memref<2x14x14x16xf32, #tpu.memory_space<vmem>>, vector<2x10x1x8xf32>,
    %58 = vector.shape_cast %51 : vector<128x8xf32> to vector<2x8x8x8xf32>
    %c0_74 = arith.constant 0 : index
    %c1_75 = arith.constant 1 : index
    %c1_76 = arith.constant 1 : index
    %c0_77 = arith.constant 0 : index
    %59 = vector.load %arg5[%c0_74, %c1_75, %c1_76, %c0_77] : memref<2x14x14x16xf32, #tpu.memory_space<vmem>>, vector<2x8x8x8xf32>
    tpu.vector_store %arg5[%c0_74, %c1_75, %c1_76, %c0_77], %58 {strides = array<i32>} : memref<2x14x14x16xf32, #tpu.memory_space<vmem>>, vector<2x8x8x8xf32>,
    %cst_78 = arith.constant 0.000000e+00 : f32
    %60 = vector.broadcast %cst_78 : f32 to vector<128x8xf32>
    %c0_79 = arith.constant 0 : index
    %c0_80 = arith.constant 0 : index
    %c0_81 = arith.constant 0 : index
    %c0_82 = arith.constant 0 : index
    %61 = vector.load %arg5[%c0_79, %c0_80, %c0_81, %c0_82] : memref<2x14x14x16xf32, #tpu.memory_space<vmem>>, vector<2x8x8x8xf32>
    %62 = vector.shape_cast %61 : vector<2x8x8x8xf32> to vector<128x8xf32>
    %c128 = arith.constant 128 : index
    %c0_83 = arith.constant 0 : index
    %63 = vector.load %arg2[%c128, %c0_83] : memref<560x16xf32, #tpu.memory_space<vmem>>, vector<8x8xf32>
    %cst_84 = arith.constant dense<0.000000e+00> : vector<128x8xf32>
    %64 = tpu.matmul %62, %63, %cst_84 {dimension_numbers = #tpu.dot_dimension_numbers<[1], [0], [0], [1], [0, 0, 1, 1], [], []>} : vector<128x8xf32>, vector<8x8xf32>, vector<128x8xf32> -> vector<128x8xf32>
    %65 = arith.addf %60, %64 : vector<128x8xf32>
    %c0_85 = arith.constant 0 : index
    %c0_86 = arith.constant 0 : index
    %c1_87 = arith.constant 1 : index
    %c0_88 = arith.constant 0 : index
    %66 = vector.load %arg5[%c0_85, %c0_86, %c1_87, %c0_88] : memref<2x14x14x16xf32, #tpu.memory_space<vmem>>, vector<2x8x8x8xf32>
    %67 = vector.shape_cast %66 : vector<2x8x8x8xf32> to vector<128x8xf32>
    %c136 = arith.constant 136 : index
    %c0_89 = arith.constant 0 : index
    %68 = vector.load %arg2[%c136, %c0_89] : memref<560x16xf32, #tpu.memory_space<vmem>>, vector<8x8xf32>
    %cst_90 = arith.constant dense<0.000000e+00> : vector<128x8xf32>
    %69 = tpu.matmul %67, %68, %cst_90 {dimension_numbers = #tpu.dot_dimension_numbers<[1], [0], [0], [1], [0, 0, 1, 1], [], []>} : vector<128x8xf32>, vector<8x8xf32>, vector<128x8xf32> -> vector<128x8xf32>
    %70 = arith.addf %65, %69 : vector<128x8xf32>
    %c0_91 = arith.constant 0 : index
    %c0_92 = arith.constant 0 : index
    %c2_93 = arith.constant 2 : index
    %c0_94 = arith.constant 0 : index
    %71 = vector.load %arg5[%c0_91, %c0_92, %c2_93, %c0_94] : memref<2x14x14x16xf32, #tpu.memory_space<vmem>>, vector<2x8x8x8xf32>
    %72 = vector.shape_cast %71 : vector<2x8x8x8xf32> to vector<128x8xf32>
    %c144 = arith.constant 144 : index
    %c0_95 = arith.constant 0 : index
    %73 = vector.load %arg2[%c144, %c0_95] : memref<560x16xf32, #tpu.memory_space<vmem>>, vector<8x8xf32>
    %cst_96 = arith.constant dense<0.000000e+00> : vector<128x8xf32>
    %74 = tpu.matmul %72, %73, %cst_96 {dimension_numbers = #tpu.dot_dimension_numbers<[1], [0], [0], [1], [0, 0, 1, 1], [], []>} : vector<128x8xf32>, vector<8x8xf32>, vector<128x8xf32> -> vector<128x8xf32>
    %75 = arith.addf %70, %74 : vector<128x8xf32>
    %c0_97 = arith.constant 0 : index
    %c1_98 = arith.constant 1 : index
    %c0_99 = arith.constant 0 : index
    %c0_100 = arith.constant 0 : index
    %76 = vector.load %arg5[%c0_97, %c1_98, %c0_99, %c0_100] : memref<2x14x14x16xf32, #tpu.memory_space<vmem>>, vector<2x8x8x8xf32>
    %77 = vector.shape_cast %76 : vector<2x8x8x8xf32> to vector<128x8xf32>
    %c152 = arith.constant 152 : index
    %c0_101 = arith.constant 0 : index
    %78 = vector.load %arg2[%c152, %c0_101] : memref<560x16xf32, #tpu.memory_space<vmem>>, vector<8x8xf32>
    %cst_102 = arith.constant dense<0.000000e+00> : vector<128x8xf32>
    %79 = tpu.matmul %77, %78, %cst_102 {dimension_numbers = #tpu.dot_dimension_numbers<[1], [0], [0], [1], [0, 0, 1, 1], [], []>} : vector<128x8xf32>, vector<8x8xf32>, vector<128x8xf32> -> vector<128x8xf32>
    %80 = arith.addf %75, %79 : vector<128x8xf32>
    %c0_103 = arith.constant 0 : index
    %c1_104 = arith.constant 1 : index
    %c1_105 = arith.constant 1 : index
    %c0_106 = arith.constant 0 : index
    %81 = vector.load %arg5[%c0_103, %c1_104, %c1_105, %c0_106] : memref<2x14x14x16xf32, #tpu.memory_space<vmem>>, vector<2x8x8x8xf32>
    %82 = vector.shape_cast %81 : vector<2x8x8x8xf32> to vector<128x8xf32>
    %c160 = arith.constant 160 : index
    %c0_107 = arith.constant 0 : index
    %83 = vector.load %arg2[%c160, %c0_107] : memref<560x16xf32, #tpu.memory_space<vmem>>, vector<8x8xf32>
    %cst_108 = arith.constant dense<0.000000e+00> : vector<128x8xf32>
    %84 = tpu.matmul %82, %83, %cst_108 {dimension_numbers = #tpu.dot_dimension_numbers<[1], [0], [0], [1], [0, 0, 1, 1], [], []>} : vector<128x8xf32>, vector<8x8xf32>, vector<128x8xf32> -> vector<128x8xf32>
    %85 = arith.addf %80, %84 : vector<128x8xf32>
    %c0_109 = arith.constant 0 : index
    %c1_110 = arith.constant 1 : index
    %c2_111 = arith.constant 2 : index
    %c0_112 = arith.constant 0 : index
    %86 = vector.load %arg5[%c0_109, %c1_110, %c2_111, %c0_112] : memref<2x14x14x16xf32, #tpu.memory_space<vmem>>, vector<2x8x8x8xf32>
    %87 = vector.shape_cast %86 : vector<2x8x8x8xf32> to vector<128x8xf32>
    %c168 = arith.constant 168 : index
    %c0_113 = arith.constant 0 : index
    %88 = vector.load %arg2[%c168, %c0_113] : memref<560x16xf32, #tpu.memory_space<vmem>>, vector<8x8xf32>
    %cst_114 = arith.constant dense<0.000000e+00> : vector<128x8xf32>
    %89 = tpu.matmul %87, %88, %cst_114 {dimension_numbers = #tpu.dot_dimension_numbers<[1], [0], [0], [1], [0, 0, 1, 1], [], []>} : vector<128x8xf32>, vector<8x8xf32>, vector<128x8xf32> -> vector<128x8xf32>
    %90 = arith.addf %85, %89 : vector<128x8xf32>
    %c0_115 = arith.constant 0 : index
    %c2_116 = arith.constant 2 : index
    %c0_117 = arith.constant 0 : index
    %c0_118 = arith.constant 0 : index
    %91 = vector.load %arg5[%c0_115, %c2_116, %c0_117, %c0_118] : memref<2x14x14x16xf32, #tpu.memory_space<vmem>>, vector<2x8x8x8xf32>
    %92 = vector.shape_cast %91 : vector<2x8x8x8xf32> to vector<128x8xf32>
    %c176 = arith.constant 176 : index
    %c0_119 = arith.constant 0 : index
    %93 = vector.load %arg2[%c176, %c0_119] : memref<560x16xf32, #tpu.memory_space<vmem>>, vector<8x8xf32>
    %cst_120 = arith.constant dense<0.000000e+00> : vector<128x8xf32>
    %94 = tpu.matmul %92, %93, %cst_120 {dimension_numbers = #tpu.dot_dimension_numbers<[1], [0], [0], [1], [0, 0, 1, 1], [], []>} : vector<128x8xf32>, vector<8x8xf32>, vector<128x8xf32> -> vector<128x8xf32>
    %95 = arith.addf %90, %94 : vector<128x8xf32>
    %c0_121 = arith.constant 0 : index
    %c2_122 = arith.constant 2 : index
    %c1_123 = arith.constant 1 : index
    %c0_124 = arith.constant 0 : index
    %96 = vector.load %arg5[%c0_121, %c2_122, %c1_123, %c0_124] : memref<2x14x14x16xf32, #tpu.memory_space<vmem>>, vector<2x8x8x8xf32>
    %97 = vector.shape_cast %96 : vector<2x8x8x8xf32> to vector<128x8xf32>
    %c184 = arith.constant 184 : index
    %c0_125 = arith.constant 0 : index
    %98 = vector.load %arg2[%c184, %c0_125] : memref<560x16xf32, #tpu.memory_space<vmem>>, vector<8x8xf32>
    %cst_126 = arith.constant dense<0.000000e+00> : vector<128x8xf32>
    %99 = tpu.matmul %97, %98, %cst_126 {dimension_numbers = #tpu.dot_dimension_numbers<[1], [0], [0], [1], [0, 0, 1, 1], [], []>} : vector<128x8xf32>, vector<8x8xf32>, vector<128x8xf32> -> vector<128x8xf32>
    %100 = arith.addf %95, %99 : vector<128x8xf32>
    %c0_127 = arith.constant 0 : index
    %c2_128 = arith.constant 2 : index
    %c2_129 = arith.constant 2 : index
    %c0_130 = arith.constant 0 : index
    %101 = vector.load %arg5[%c0_127, %c2_128, %c2_129, %c0_130] : memref<2x14x14x16xf32, #tpu.memory_space<vmem>>, vector<2x8x8x8xf32>
    %102 = vector.shape_cast %101 : vector<2x8x8x8xf32> to vector<128x8xf32>
    %c192 = arith.constant 192 : index
    %c0_131 = arith.constant 0 : index
    %103 = vector.load %arg2[%c192, %c0_131] : memref<560x16xf32, #tpu.memory_space<vmem>>, vector<8x8xf32>
    %cst_132 = arith.constant dense<0.000000e+00> : vector<128x8xf32>
    %104 = tpu.matmul %102, %103, %cst_132 {dimension_numbers = #tpu.dot_dimension_numbers<[1], [0], [0], [1], [0, 0, 1, 1], [], []>} : vector<128x8xf32>, vector<8x8xf32>, vector<128x8xf32> -> vector<128x8xf32>
    %105 = arith.addf %100, %104 : vector<128x8xf32>
    %c2_133 = arith.constant 2 : index
    %c0_134 = arith.constant 0 : index
    %106 = vector.load %arg3[%c2_133, %c0_134] : memref<12x16xf32, #tpu.memory_space<vmem>>, vector<1x8xf32>
    %107 = vector.broadcast %106 : vector<1x8xf32> to vector<128x8xf32>
    %108 = arith.addf %105, %107 : vector<128x8xf32>
    %cst_135 = arith.constant 0.000000e+00 : f32
    %109 = vector.broadcast %cst_135 : f32 to vector<128x8xf32>
    %110 = arith.maximumf %108, %109 : vector<128x8xf32>
    %cst_136 = arith.constant 0.000000e+00 : f32
    %111 = vector.broadcast %cst_136 : f32 to vector<2x3x8x8xf32>
    %c0_137 = arith.constant 0 : index
    %c0_138 = arith.constant 0 : index
    %c0_139 = arith.constant 0 : index
    %c0_140 = arith.constant 0 : index
    %112 = vector.load %arg5[%c0_137, %c0_138, %c0_139, %c0_140] : memref<2x14x14x16xf32, #tpu.memory_space<vmem>>, vector<2x3x8x8xf32>
    tpu.vector_store %arg5[%c0_137, %c0_138, %c0_139, %c0_140], %111 {strides = array<i32>} : memref<2x14x14x16xf32, #tpu.memory_space<vmem>>, vector<2x3x8x8xf32>,
    %c0_141 = arith.constant 0 : index
    %c11_142 = arith.constant 11 : index
    %c0_143 = arith.constant 0 : index
    %c0_144 = arith.constant 0 : index
    %113 = vector.load %arg5[%c0_141, %c11_142, %c0_143, %c0_144] : memref<2x14x14x16xf32, #tpu.memory_space<vmem>>, vector<2x3x8x8xf32>
    tpu.vector_store %arg5[%c0_141, %c11_142, %c0_143, %c0_144], %111 {strides = array<i32>} : memref<2x14x14x16xf32, #tpu.memory_space<vmem>>, vector<2x3x8x8xf32>,
    %114 = vector.shape_cast %110 : vector<128x8xf32> to vector<2x8x8x8xf32>
    %c0_145 = arith.constant 0 : index
    %c3_146 = arith.constant 3 : index
    %c0_147 = arith.constant 0 : index
    %c0_148 = arith.constant 0 : index
    %115 = vector.load %arg5[%c0_145, %c3_146, %c0_147, %c0_148] : memref<2x14x14x16xf32, #tpu.memory_space<vmem>>, vector<2x8x8x8xf32>
    tpu.vector_store %arg5[%c0_145, %c3_146, %c0_147, %c0_148], %114 {strides = array<i32>} : memref<2x14x14x16xf32, #tpu.memory_space<vmem>>, vector<2x8x8x8xf32>,
    %cst_149 = arith.constant 0.000000e+00 : f32
    %116 = vector.broadcast %cst_149 : f32 to vector<128x8xf32>
    %c0_150 = arith.constant 0 : index
    %c0_151 = arith.constant 0 : index
    %c0_152 = arith.constant 0 : index
    %c0_153 = arith.constant 0 : index
    %117 = vector.load %arg5[%c0_150, %c0_151, %c0_152, %c0_153] : memref<2x14x14x16xf32, #tpu.memory_space<vmem>>, vector<2x8x8x8xf32>
    %118 = vector.shape_cast %117 : vector<2x8x8x8xf32> to vector<128x8xf32>
    %c200 = arith.constant 200 : index
    %c0_154 = arith.constant 0 : index
    %119 = vector.load %arg2[%c200, %c0_154] : memref<560x16xf32, #tpu.memory_space<vmem>>, vector<8x8xf32>
    %cst_155 = arith.constant dense<0.000000e+00> : vector<128x8xf32>
    %120 = tpu.matmul %118, %119, %cst_155 {dimension_numbers = #tpu.dot_dimension_numbers<[1], [0], [0], [1], [0, 0, 1, 1], [], []>} : vector<128x8xf32>, vector<8x8xf32>, vector<128x8xf32> -> vector<128x8xf32>
    %121 = arith.addf %116, %120 : vector<128x8xf32>
    %c0_156 = arith.constant 0 : index
    %c1_157 = arith.constant 1 : index
    %c0_158 = arith.constant 0 : index
    %c0_159 = arith.constant 0 : index
    %122 = vector.load %arg5[%c0_156, %c1_157, %c0_158, %c0_159] : memref<2x14x14x16xf32, #tpu.memory_space<vmem>>, vector<2x8x8x8xf32>
    %123 = vector.shape_cast %122 : vector<2x8x8x8xf32> to vector<128x8xf32>
    %c208 = arith.constant 208 : index
    %c0_160 = arith.constant 0 : index
    %124 = vector.load %arg2[%c208, %c0_160] : memref<560x16xf32, #tpu.memory_space<vmem>>, vector<8x8xf32>
    %cst_161 = arith.constant dense<0.000000e+00> : vector<128x8xf32>
    %125 = tpu.matmul %123, %124, %cst_161 {dimension_numbers = #tpu.dot_dimension_numbers<[1], [0], [0], [1], [0, 0, 1, 1], [], []>} : vector<128x8xf32>, vector<8x8xf32>, vector<128x8xf32> -> vector<128x8xf32>
    %126 = arith.addf %121, %125 : vector<128x8xf32>
    %c0_162 = arith.constant 0 : index
    %c2_163 = arith.constant 2 : index
    %c0_164 = arith.constant 0 : index
    %c0_165 = arith.constant 0 : index
    %127 = vector.load %arg5[%c0_162, %c2_163, %c0_164, %c0_165] : memref<2x14x14x16xf32, #tpu.memory_space<vmem>>, vector<2x8x8x8xf32>
    %128 = vector.shape_cast %127 : vector<2x8x8x8xf32> to vector<128x8xf32>
    %c216 = arith.constant 216 : index
    %c0_166 = arith.constant 0 : index
    %129 = vector.load %arg2[%c216, %c0_166] : memref<560x16xf32, #tpu.memory_space<vmem>>, vector<8x8xf32>
    %cst_167 = arith.constant dense<0.000000e+00> : vector<128x8xf32>
    %130 = tpu.matmul %128, %129, %cst_167 {dimension_numbers = #tpu.dot_dimension_numbers<[1], [0], [0], [1], [0, 0, 1, 1], [], []>} : vector<128x8xf32>, vector<8x8xf32>, vector<128x8xf32> -> vector<128x8xf32>
    %131 = arith.addf %126, %130 : vector<128x8xf32>
    %c0_168 = arith.constant 0 : index
    %c3_169 = arith.constant 3 : index
    %c0_170 = arith.constant 0 : index
    %c0_171 = arith.constant 0 : index
    %132 = vector.load %arg5[%c0_168, %c3_169, %c0_170, %c0_171] : memref<2x14x14x16xf32, #tpu.memory_space<vmem>>, vector<2x8x8x8xf32>
    %133 = vector.shape_cast %132 : vector<2x8x8x8xf32> to vector<128x8xf32>
    %c224 = arith.constant 224 : index
    %c0_172 = arith.constant 0 : index
    %134 = vector.load %arg2[%c224, %c0_172] : memref<560x16xf32, #tpu.memory_space<vmem>>, vector<8x8xf32>
    %cst_173 = arith.constant dense<0.000000e+00> : vector<128x8xf32>
    %135 = tpu.matmul %133, %134, %cst_173 {dimension_numbers = #tpu.dot_dimension_numbers<[1], [0], [0], [1], [0, 0, 1, 1], [], []>} : vector<128x8xf32>, vector<8x8xf32>, vector<128x8xf32> -> vector<128x8xf32>
    %136 = arith.addf %131, %135 : vector<128x8xf32>
    %c0_174 = arith.constant 0 : index
    %c4_175 = arith.constant 4 : index
    %c0_176 = arith.constant 0 : index
    %c0_177 = arith.constant 0 : index
    %137 = vector.load %arg5[%c0_174, %c4_175, %c0_176, %c0_177] : memref<2x14x14x16xf32, #tpu.memory_space<vmem>>, vector<2x8x8x8xf32>
    %138 = vector.shape_cast %137 : vector<2x8x8x8xf32> to vector<128x8xf32>
    %c232 = arith.constant 232 : index
    %c0_178 = arith.constant 0 : index
    %139 = vector.load %arg2[%c232, %c0_178] : memref<560x16xf32, #tpu.memory_space<vmem>>, vector<8x8xf32>
    %cst_179 = arith.constant dense<0.000000e+00> : vector<128x8xf32>
    %140 = tpu.matmul %138, %139, %cst_179 {dimension_numbers = #tpu.dot_dimension_numbers<[1], [0], [0], [1], [0, 0, 1, 1], [], []>} : vector<128x8xf32>, vector<8x8xf32>, vector<128x8xf32> -> vector<128x8xf32>
    %141 = arith.addf %136, %140 : vector<128x8xf32>
    %c0_180 = arith.constant 0 : index
    %c5_181 = arith.constant 5 : index
    %c0_182 = arith.constant 0 : index
    %c0_183 = arith.constant 0 : index
    %142 = vector.load %arg5[%c0_180, %c5_181, %c0_182, %c0_183] : memref<2x14x14x16xf32, #tpu.memory_space<vmem>>, vector<2x8x8x8xf32>
    %143 = vector.shape_cast %142 : vector<2x8x8x8xf32> to vector<128x8xf32>
    %c240 = arith.constant 240 : index
    %c0_184 = arith.constant 0 : index
    %144 = vector.load %arg2[%c240, %c0_184] : memref<560x16xf32, #tpu.memory_space<vmem>>, vector<8x8xf32>
    %cst_185 = arith.constant dense<0.000000e+00> : vector<128x8xf32>
    %145 = tpu.matmul %143, %144, %cst_185 {dimension_numbers = #tpu.dot_dimension_numbers<[1], [0], [0], [1], [0, 0, 1, 1], [], []>} : vector<128x8xf32>, vector<8x8xf32>, vector<128x8xf32> -> vector<128x8xf32>
    %146 = arith.addf %141, %145 : vector<128x8xf32>
    %c0_186 = arith.constant 0 : index
    %c6_187 = arith.constant 6 : index
    %c0_188 = arith.constant 0 : index
    %c0_189 = arith.constant 0 : index
    %147 = vector.load %arg5[%c0_186, %c6_187, %c0_188, %c0_189] : memref<2x14x14x16xf32, #tpu.memory_space<vmem>>, vector<2x8x8x8xf32>
    %148 = vector.shape_cast %147 : vector<2x8x8x8xf32> to vector<128x8xf32>
    %c248 = arith.constant 248 : index
    %c0_190 = arith.constant 0 : index
    %149 = vector.load %arg2[%c248, %c0_190] : memref<560x16xf32, #tpu.memory_space<vmem>>, vector<8x8xf32>
    %cst_191 = arith.constant dense<0.000000e+00> : vector<128x8xf32>
    %150 = tpu.matmul %148, %149, %cst_191 {dimension_numbers = #tpu.dot_dimension_numbers<[1], [0], [0], [1], [0, 0, 1, 1], [], []>} : vector<128x8xf32>, vector<8x8xf32>, vector<128x8xf32> -> vector<128x8xf32>
    %151 = arith.addf %146, %150 : vector<128x8xf32>
    %c3_192 = arith.constant 3 : index
    %c0_193 = arith.constant 0 : index
    %152 = vector.load %arg3[%c3_192, %c0_193] : memref<12x16xf32, #tpu.memory_space<vmem>>, vector<1x8xf32>
    %153 = vector.broadcast %152 : vector<1x8xf32> to vector<128x8xf32>
    %154 = arith.addf %151, %153 : vector<128x8xf32>
    %c256 = arith.constant 256 : index
    %c0_194 = arith.constant 0 : index
    %155 = vector.load %arg2[%c256, %c0_194] : memref<560x16xf32, #tpu.memory_space<vmem>>, vector<8x8xf32>
    %cst_195 = arith.constant dense<0.000000e+00> : vector<128x8xf32>
    %156 = tpu.matmul %154, %155, %cst_195 {dimension_numbers = #tpu.dot_dimension_numbers<[1], [0], [0], [1], [0, 0, 1, 1], [], []>} : vector<128x8xf32>, vector<8x8xf32>, vector<128x8xf32> -> vector<128x8xf32>
    %c4_196 = arith.constant 4 : index
    %c0_197 = arith.constant 0 : index
    %157 = vector.load %arg3[%c4_196, %c0_197] : memref<12x16xf32, #tpu.memory_space<vmem>>, vector<1x8xf32>
    %158 = vector.broadcast %157 : vector<1x8xf32> to vector<128x8xf32>
    %159 = arith.addf %156, %158 : vector<128x8xf32>
    %cst_198 = arith.constant 0.000000e+00 : f32
    %160 = vector.broadcast %cst_198 : f32 to vector<128x8xf32>
    %161 = arith.maximumf %159, %160 : vector<128x8xf32>
    %cst_199 = arith.constant 0.000000e+00 : f32
    %162 = vector.broadcast %cst_199 : f32 to vector<2x3x8x16xf32>
    %c0_200 = arith.constant 0 : index
    %c0_201 = arith.constant 0 : index
    %c0_202 = arith.constant 0 : index
    %c0_203 = arith.constant 0 : index
    %163 = vector.load %arg5[%c0_200, %c0_201, %c0_202, %c0_203] : memref<2x14x14x16xf32, #tpu.memory_space<vmem>>, vector<2x3x8x16xf32>
    tpu.vector_store %arg5[%c0_200, %c0_201, %c0_202, %c0_203], %162 {strides = array<i32>} : memref<2x14x14x16xf32, #tpu.memory_space<vmem>>, vector<2x3x8x16xf32>,
    %c0_204 = arith.constant 0 : index
    %c11_205 = arith.constant 11 : index
    %c0_206 = arith.constant 0 : index
    %c0_207 = arith.constant 0 : index
    %164 = vector.load %arg5[%c0_204, %c11_205, %c0_206, %c0_207] : memref<2x14x14x16xf32, #tpu.memory_space<vmem>>, vector<2x3x8x16xf32>
    tpu.vector_store %arg5[%c0_204, %c11_205, %c0_206, %c0_207], %162 {strides = array<i32>} : memref<2x14x14x16xf32, #tpu.memory_space<vmem>>, vector<2x3x8x16xf32>,
    %165 = vector.shape_cast %0 : vector<128x16xf32> to vector<2x8x8x16xf32>
    %c0_208 = arith.constant 0 : index
    %c3_209 = arith.constant 3 : index
    %c0_210 = arith.constant 0 : index
    %c0_211 = arith.constant 0 : index
    %166 = vector.load %arg5[%c0_208, %c3_209, %c0_210, %c0_211] : memref<2x14x14x16xf32, #tpu.memory_space<vmem>>, vector<2x8x8x16xf32>
    tpu.vector_store %arg5[%c0_208, %c3_209, %c0_210, %c0_211], %165 {strides = array<i32>} : memref<2x14x14x16xf32, #tpu.memory_space<vmem>>, vector<2x8x8x16xf32>,
    %cst_212 = arith.constant 0.000000e+00 : f32
    %167 = vector.broadcast %cst_212 : f32 to vector<128x16xf32>
    %c0_213 = arith.constant 0 : index
    %c0_214 = arith.constant 0 : index
    %c0_215 = arith.constant 0 : index
    %c0_216 = arith.constant 0 : index
    %168 = vector.load %arg5[%c0_213, %c0_214, %c0_215, %c0_216] : memref<2x14x14x16xf32, #tpu.memory_space<vmem>>, vector<2x8x8x16xf32>
    %169 = vector.shape_cast %168 : vector<2x8x8x16xf32> to vector<128x16xf32>
    %c264 = arith.constant 264 : index
    %c0_217 = arith.constant 0 : index
    %170 = vector.load %arg2[%c264, %c0_217] : memref<560x16xf32, #tpu.memory_space<vmem>>, vector<16x16xf32>
    %cst_218 = arith.constant dense<0.000000e+00> : vector<128x16xf32>
    %171 = tpu.matmul %169, %170, %cst_218 {dimension_numbers = #tpu.dot_dimension_numbers<[1], [0], [0], [1], [0, 0, 1, 1], [], []>} : vector<128x16xf32>, vector<16x16xf32>, vector<128x16xf32> -> vector<128x16xf32>
    %172 = arith.addf %167, %171 : vector<128x16xf32>
    %c0_219 = arith.constant 0 : index
    %c1_220 = arith.constant 1 : index
    %c0_221 = arith.constant 0 : index
    %c0_222 = arith.constant 0 : index
    %173 = vector.load %arg5[%c0_219, %c1_220, %c0_221, %c0_222] : memref<2x14x14x16xf32, #tpu.memory_space<vmem>>, vector<2x8x8x16xf32>
    %174 = vector.shape_cast %173 : vector<2x8x8x16xf32> to vector<128x16xf32>
    %c280 = arith.constant 280 : index
    %c0_223 = arith.constant 0 : index
    %175 = vector.load %arg2[%c280, %c0_223] : memref<560x16xf32, #tpu.memory_space<vmem>>, vector<16x16xf32>
    %cst_224 = arith.constant dense<0.000000e+00> : vector<128x16xf32>
    %176 = tpu.matmul %174, %175, %cst_224 {dimension_numbers = #tpu.dot_dimension_numbers<[1], [0], [0], [1], [0, 0, 1, 1], [], []>} : vector<128x16xf32>, vector<16x16xf32>, vector<128x16xf32> -> vector<128x16xf32>
    %177 = arith.addf %172, %176 : vector<128x16xf32>
    %c0_225 = arith.constant 0 : index
    %c2_226 = arith.constant 2 : index
    %c0_227 = arith.constant 0 : index
    %c0_228 = arith.constant 0 : index
    %178 = vector.load %arg5[%c0_225, %c2_226, %c0_227, %c0_228] : memref<2x14x14x16xf32, #tpu.memory_space<vmem>>, vector<2x8x8x16xf32>
    %179 = vector.shape_cast %178 : vector<2x8x8x16xf32> to vector<128x16xf32>
    %c296 = arith.constant 296 : index
    %c0_229 = arith.constant 0 : index
    %180 = vector.load %arg2[%c296, %c0_229] : memref<560x16xf32, #tpu.memory_space<vmem>>, vector<16x16xf32>
    %cst_230 = arith.constant dense<0.000000e+00> : vector<128x16xf32>
    %181 = tpu.matmul %179, %180, %cst_230 {dimension_numbers = #tpu.dot_dimension_numbers<[1], [0], [0], [1], [0, 0, 1, 1], [], []>} : vector<128x16xf32>, vector<16x16xf32>, vector<128x16xf32> -> vector<128x16xf32>
    %182 = arith.addf %177, %181 : vector<128x16xf32>
    %c0_231 = arith.constant 0 : index
    %c3_232 = arith.constant 3 : index
    %c0_233 = arith.constant 0 : index
    %c0_234 = arith.constant 0 : index
    %183 = vector.load %arg5[%c0_231, %c3_232, %c0_233, %c0_234] : memref<2x14x14x16xf32, #tpu.memory_space<vmem>>, vector<2x8x8x16xf32>
    %184 = vector.shape_cast %183 : vector<2x8x8x16xf32> to vector<128x16xf32>
    %c312 = arith.constant 312 : index
    %c0_235 = arith.constant 0 : index
    %185 = vector.load %arg2[%c312, %c0_235] : memref<560x16xf32, #tpu.memory_space<vmem>>, vector<16x16xf32>
    %cst_236 = arith.constant dense<0.000000e+00> : vector<128x16xf32>
    %186 = tpu.matmul %184, %185, %cst_236 {dimension_numbers = #tpu.dot_dimension_numbers<[1], [0], [0], [1], [0, 0, 1, 1], [], []>} : vector<128x16xf32>, vector<16x16xf32>, vector<128x16xf32> -> vector<128x16xf32>
    %187 = arith.addf %182, %186 : vector<128x16xf32>
    %c0_237 = arith.constant 0 : index
    %c4_238 = arith.constant 4 : index
    %c0_239 = arith.constant 0 : index
    %c0_240 = arith.constant 0 : index
    %188 = vector.load %arg5[%c0_237, %c4_238, %c0_239, %c0_240] : memref<2x14x14x16xf32, #tpu.memory_space<vmem>>, vector<2x8x8x16xf32>
    %189 = vector.shape_cast %188 : vector<2x8x8x16xf32> to vector<128x16xf32>
    %c328 = arith.constant 328 : index
    %c0_241 = arith.constant 0 : index
    %190 = vector.load %arg2[%c328, %c0_241] : memref<560x16xf32, #tpu.memory_space<vmem>>, vector<16x16xf32>
    %cst_242 = arith.constant dense<0.000000e+00> : vector<128x16xf32>
    %191 = tpu.matmul %189, %190, %cst_242 {dimension_numbers = #tpu.dot_dimension_numbers<[1], [0], [0], [1], [0, 0, 1, 1], [], []>} : vector<128x16xf32>, vector<16x16xf32>, vector<128x16xf32> -> vector<128x16xf32>
    %192 = arith.addf %187, %191 : vector<128x16xf32>
    %c0_243 = arith.constant 0 : index
    %c5_244 = arith.constant 5 : index
    %c0_245 = arith.constant 0 : index
    %c0_246 = arith.constant 0 : index
    %193 = vector.load %arg5[%c0_243, %c5_244, %c0_245, %c0_246] : memref<2x14x14x16xf32, #tpu.memory_space<vmem>>, vector<2x8x8x16xf32>
    %194 = vector.shape_cast %193 : vector<2x8x8x16xf32> to vector<128x16xf32>
    %c344 = arith.constant 344 : index
    %c0_247 = arith.constant 0 : index
    %195 = vector.load %arg2[%c344, %c0_247] : memref<560x16xf32, #tpu.memory_space<vmem>>, vector<16x16xf32>
    %cst_248 = arith.constant dense<0.000000e+00> : vector<128x16xf32>
    %196 = tpu.matmul %194, %195, %cst_248 {dimension_numbers = #tpu.dot_dimension_numbers<[1], [0], [0], [1], [0, 0, 1, 1], [], []>} : vector<128x16xf32>, vector<16x16xf32>, vector<128x16xf32> -> vector<128x16xf32>
    %197 = arith.addf %192, %196 : vector<128x16xf32>
    %c0_249 = arith.constant 0 : index
    %c6_250 = arith.constant 6 : index
    %c0_251 = arith.constant 0 : index
    %c0_252 = arith.constant 0 : index
    %198 = vector.load %arg5[%c0_249, %c6_250, %c0_251, %c0_252] : memref<2x14x14x16xf32, #tpu.memory_space<vmem>>, vector<2x8x8x16xf32>
    %199 = vector.shape_cast %198 : vector<2x8x8x16xf32> to vector<128x16xf32>
    %c360 = arith.constant 360 : index
    %c0_253 = arith.constant 0 : index
    %200 = vector.load %arg2[%c360, %c0_253] : memref<560x16xf32, #tpu.memory_space<vmem>>, vector<16x16xf32>
    %cst_254 = arith.constant dense<0.000000e+00> : vector<128x16xf32>
    %201 = tpu.matmul %199, %200, %cst_254 {dimension_numbers = #tpu.dot_dimension_numbers<[1], [0], [0], [1], [0, 0, 1, 1], [], []>} : vector<128x16xf32>, vector<16x16xf32>, vector<128x16xf32> -> vector<128x16xf32>
    %202 = arith.addf %197, %201 : vector<128x16xf32>
    %c5_255 = arith.constant 5 : index
    %c0_256 = arith.constant 0 : index
    %203 = vector.load %arg3[%c5_255, %c0_256] : memref<12x16xf32, #tpu.memory_space<vmem>>, vector<1x16xf32>
    %204 = vector.broadcast %203 : vector<1x16xf32> to vector<128x16xf32>
    %205 = arith.addf %202, %204 : vector<128x16xf32>
    %c376 = arith.constant 376 : index
    %c0_257 = arith.constant 0 : index
    %206 = vector.load %arg2[%c376, %c0_257] : memref<560x16xf32, #tpu.memory_space<vmem>>, vector<16x8xf32>
    %cst_258 = arith.constant dense<0.000000e+00> : vector<128x8xf32>
    %207 = tpu.matmul %205, %206, %cst_258 {dimension_numbers = #tpu.dot_dimension_numbers<[1], [0], [0], [1], [0, 0, 1, 1], [], []>} : vector<128x16xf32>, vector<16x8xf32>, vector<128x8xf32> -> vector<128x8xf32>
    %c6_259 = arith.constant 6 : index
    %c0_260 = arith.constant 0 : index
    %208 = vector.load %arg3[%c6_259, %c0_260] : memref<12x16xf32, #tpu.memory_space<vmem>>, vector<1x8xf32>
    %209 = vector.broadcast %208 : vector<1x8xf32> to vector<128x8xf32>
    %210 = arith.addf %207, %209 : vector<128x8xf32>
    %cst_261 = arith.constant 0.000000e+00 : f32
    %211 = vector.broadcast %cst_261 : f32 to vector<128x8xf32>
    %212 = arith.maximumf %210, %211 : vector<128x8xf32>
    %cst_262 = arith.constant 0.000000e+00 : f32
    %213 = vector.broadcast %cst_262 : f32 to vector<2x1x10x8xf32>
    %c0_263 = arith.constant 0 : index
    %c0_264 = arith.constant 0 : index
    %c0_265 = arith.constant 0 : index
    %c0_266 = arith.constant 0 : index
    %214 = vector.load %arg5[%c0_263, %c0_264, %c0_265, %c0_266] : memref<2x14x14x16xf32, #tpu.memory_space<vmem>>, vector<2x1x10x8xf32>
    tpu.vector_store %arg5[%c0_263, %c0_264, %c0_265, %c0_266], %213 {strides = array<i32>} : memref<2x14x14x16xf32, #tpu.memory_space<vmem>>, vector<2x1x10x8xf32>,
    %c0_267 = arith.constant 0 : index
    %c9_268 = arith.constant 9 : index
    %c0_269 = arith.constant 0 : index
    %c0_270 = arith.constant 0 : index
    %215 = vector.load %arg5[%c0_267, %c9_268, %c0_269, %c0_270] : memref<2x14x14x16xf32, #tpu.memory_space<vmem>>, vector<2x1x10x8xf32>
    tpu.vector_store %arg5[%c0_267, %c9_268, %c0_269, %c0_270], %213 {strides = array<i32>} : memref<2x14x14x16xf32, #tpu.memory_space<vmem>>, vector<2x1x10x8xf32>,
    %cst_271 = arith.constant 0.000000e+00 : f32
    %216 = vector.broadcast %cst_271 : f32 to vector<2x10x1x8xf32>
    %c0_272 = arith.constant 0 : index
    %c0_273 = arith.constant 0 : index
    %c0_274 = arith.constant 0 : index
    %c0_275 = arith.constant 0 : index
    %217 = vector.load %arg5[%c0_272, %c0_273, %c0_274, %c0_275] : memref<2x14x14x16xf32, #tpu.memory_space<vmem>>, vector<2x10x1x8xf32>
    tpu.vector_store %arg5[%c0_272, %c0_273, %c0_274, %c0_275], %216 {strides = array<i32>} : memref<2x14x14x16xf32, #tpu.memory_space<vmem>>, vector<2x10x1x8xf32>,
    %c0_276 = arith.constant 0 : index
    %c0_277 = arith.constant 0 : index
    %c9_278 = arith.constant 9 : index
    %c0_279 = arith.constant 0 : index
    %218 = vector.load %arg5[%c0_276, %c0_277, %c9_278, %c0_279] : memref<2x14x14x16xf32, #tpu.memory_space<vmem>>, vector<2x10x1x8xf32>
    tpu.vector_store %arg5[%c0_276, %c0_277, %c9_278, %c0_279], %216 {strides = array<i32>} : memref<2x14x14x16xf32, #tpu.memory_space<vmem>>, vector<2x10x1x8xf32>,
    %219 = vector.shape_cast %212 : vector<128x8xf32> to vector<2x8x8x8xf32>
    %c0_280 = arith.constant 0 : index
    %c1_281 = arith.constant 1 : index
    %c1_282 = arith.constant 1 : index
    %c0_283 = arith.constant 0 : index
    %220 = vector.load %arg5[%c0_280, %c1_281, %c1_282, %c0_283] : memref<2x14x14x16xf32, #tpu.memory_space<vmem>>, vector<2x8x8x8xf32>
    tpu.vector_store %arg5[%c0_280, %c1_281, %c1_282, %c0_283], %219 {strides = array<i32>} : memref<2x14x14x16xf32, #tpu.memory_space<vmem>>, vector<2x8x8x8xf32>,
    %cst_284 = arith.constant 0.000000e+00 : f32
    %221 = vector.broadcast %cst_284 : f32 to vector<128x8xf32>
    %c0_285 = arith.constant 0 : index
    %c0_286 = arith.constant 0 : index
    %c0_287 = arith.constant 0 : index
    %c0_288 = arith.constant 0 : index
    %222 = vector.load %arg5[%c0_285, %c0_286, %c0_287, %c0_288] : memref<2x14x14x16xf32, #tpu.memory_space<vmem>>, vector<2x8x8x8xf32>
    %223 = vector.shape_cast %222 : vector<2x8x8x8xf32> to vector<128x8xf32>
    %c392 = arith.constant 392 : index
    %c0_289 = arith.constant 0 : index
    %224 = vector.load %arg2[%c392, %c0_289] : memref<560x16xf32, #tpu.memory_space<vmem>>, vector<8x8xf32>
    %cst_290 = arith.constant dense<0.000000e+00> : vector<128x8xf32>
    %225 = tpu.matmul %223, %224, %cst_290 {dimension_numbers = #tpu.dot_dimension_numbers<[1], [0], [0], [1], [0, 0, 1, 1], [], []>} : vector<128x8xf32>, vector<8x8xf32>, vector<128x8xf32> -> vector<128x8xf32>
    %226 = arith.addf %221, %225 : vector<128x8xf32>
    %c0_291 = arith.constant 0 : index
    %c0_292 = arith.constant 0 : index
    %c1_293 = arith.constant 1 : index
    %c0_294 = arith.constant 0 : index
    %227 = vector.load %arg5[%c0_291, %c0_292, %c1_293, %c0_294] : memref<2x14x14x16xf32, #tpu.memory_space<vmem>>, vector<2x8x8x8xf32>
    %228 = vector.shape_cast %227 : vector<2x8x8x8xf32> to vector<128x8xf32>
    %c400 = arith.constant 400 : index
    %c0_295 = arith.constant 0 : index
    %229 = vector.load %arg2[%c400, %c0_295] : memref<560x16xf32, #tpu.memory_space<vmem>>, vector<8x8xf32>
    %cst_296 = arith.constant dense<0.000000e+00> : vector<128x8xf32>
    %230 = tpu.matmul %228, %229, %cst_296 {dimension_numbers = #tpu.dot_dimension_numbers<[1], [0], [0], [1], [0, 0, 1, 1], [], []>} : vector<128x8xf32>, vector<8x8xf32>, vector<128x8xf32> -> vector<128x8xf32>
    %231 = arith.addf %226, %230 : vector<128x8xf32>
    %c0_297 = arith.constant 0 : index
    %c0_298 = arith.constant 0 : index
    %c2_299 = arith.constant 2 : index
    %c0_300 = arith.constant 0 : index
    %232 = vector.load %arg5[%c0_297, %c0_298, %c2_299, %c0_300] : memref<2x14x14x16xf32, #tpu.memory_space<vmem>>, vector<2x8x8x8xf32>
    %233 = vector.shape_cast %232 : vector<2x8x8x8xf32> to vector<128x8xf32>
    %c408 = arith.constant 408 : index
    %c0_301 = arith.constant 0 : index
    %234 = vector.load %arg2[%c408, %c0_301] : memref<560x16xf32, #tpu.memory_space<vmem>>, vector<8x8xf32>
    %cst_302 = arith.constant dense<0.000000e+00> : vector<128x8xf32>
    %235 = tpu.matmul %233, %234, %cst_302 {dimension_numbers = #tpu.dot_dimension_numbers<[1], [0], [0], [1], [0, 0, 1, 1], [], []>} : vector<128x8xf32>, vector<8x8xf32>, vector<128x8xf32> -> vector<128x8xf32>
    %236 = arith.addf %231, %235 : vector<128x8xf32>
    %c0_303 = arith.constant 0 : index
    %c1_304 = arith.constant 1 : index
    %c0_305 = arith.constant 0 : index
    %c0_306 = arith.constant 0 : index
    %237 = vector.load %arg5[%c0_303, %c1_304, %c0_305, %c0_306] : memref<2x14x14x16xf32, #tpu.memory_space<vmem>>, vector<2x8x8x8xf32>
    %238 = vector.shape_cast %237 : vector<2x8x8x8xf32> to vector<128x8xf32>
    %c416 = arith.constant 416 : index
    %c0_307 = arith.constant 0 : index
    %239 = vector.load %arg2[%c416, %c0_307] : memref<560x16xf32, #tpu.memory_space<vmem>>, vector<8x8xf32>
    %cst_308 = arith.constant dense<0.000000e+00> : vector<128x8xf32>
    %240 = tpu.matmul %238, %239, %cst_308 {dimension_numbers = #tpu.dot_dimension_numbers<[1], [0], [0], [1], [0, 0, 1, 1], [], []>} : vector<128x8xf32>, vector<8x8xf32>, vector<128x8xf32> -> vector<128x8xf32>
    %241 = arith.addf %236, %240 : vector<128x8xf32>
    %c0_309 = arith.constant 0 : index
    %c1_310 = arith.constant 1 : index
    %c1_311 = arith.constant 1 : index
    %c0_312 = arith.constant 0 : index
    %242 = vector.load %arg5[%c0_309, %c1_310, %c1_311, %c0_312] : memref<2x14x14x16xf32, #tpu.memory_space<vmem>>, vector<2x8x8x8xf32>
    %243 = vector.shape_cast %242 : vector<2x8x8x8xf32> to vector<128x8xf32>
    %c424 = arith.constant 424 : index
    %c0_313 = arith.constant 0 : index
    %244 = vector.load %arg2[%c424, %c0_313] : memref<560x16xf32, #tpu.memory_space<vmem>>, vector<8x8xf32>
    %cst_314 = arith.constant dense<0.000000e+00> : vector<128x8xf32>
    %245 = tpu.matmul %243, %244, %cst_314 {dimension_numbers = #tpu.dot_dimension_numbers<[1], [0], [0], [1], [0, 0, 1, 1], [], []>} : vector<128x8xf32>, vector<8x8xf32>, vector<128x8xf32> -> vector<128x8xf32>
    %246 = arith.addf %241, %245 : vector<128x8xf32>
    %c0_315 = arith.constant 0 : index
    %c1_316 = arith.constant 1 : index
    %c2_317 = arith.constant 2 : index
    %c0_318 = arith.constant 0 : index
    %247 = vector.load %arg5[%c0_315, %c1_316, %c2_317, %c0_318] : memref<2x14x14x16xf32, #tpu.memory_space<vmem>>, vector<2x8x8x8xf32>
    %248 = vector.shape_cast %247 : vector<2x8x8x8xf32> to vector<128x8xf32>
    %c432 = arith.constant 432 : index
    %c0_319 = arith.constant 0 : index
    %249 = vector.load %arg2[%c432, %c0_319] : memref<560x16xf32, #tpu.memory_space<vmem>>, vector<8x8xf32>
    %cst_320 = arith.constant dense<0.000000e+00> : vector<128x8xf32>
    %250 = tpu.matmul %248, %249, %cst_320 {dimension_numbers = #tpu.dot_dimension_numbers<[1], [0], [0], [1], [0, 0, 1, 1], [], []>} : vector<128x8xf32>, vector<8x8xf32>, vector<128x8xf32> -> vector<128x8xf32>
    %251 = arith.addf %246, %250 : vector<128x8xf32>
    %c0_321 = arith.constant 0 : index
    %c2_322 = arith.constant 2 : index
    %c0_323 = arith.constant 0 : index
    %c0_324 = arith.constant 0 : index
    %252 = vector.load %arg5[%c0_321, %c2_322, %c0_323, %c0_324] : memref<2x14x14x16xf32, #tpu.memory_space<vmem>>, vector<2x8x8x8xf32>
    %253 = vector.shape_cast %252 : vector<2x8x8x8xf32> to vector<128x8xf32>
    %c440 = arith.constant 440 : index
    %c0_325 = arith.constant 0 : index
    %254 = vector.load %arg2[%c440, %c0_325] : memref<560x16xf32, #tpu.memory_space<vmem>>, vector<8x8xf32>
    %cst_326 = arith.constant dense<0.000000e+00> : vector<128x8xf32>
    %255 = tpu.matmul %253, %254, %cst_326 {dimension_numbers = #tpu.dot_dimension_numbers<[1], [0], [0], [1], [0, 0, 1, 1], [], []>} : vector<128x8xf32>, vector<8x8xf32>, vector<128x8xf32> -> vector<128x8xf32>
    %256 = arith.addf %251, %255 : vector<128x8xf32>
    %c0_327 = arith.constant 0 : index
    %c2_328 = arith.constant 2 : index
    %c1_329 = arith.constant 1 : index
    %c0_330 = arith.constant 0 : index
    %257 = vector.load %arg5[%c0_327, %c2_328, %c1_329, %c0_330] : memref<2x14x14x16xf32, #tpu.memory_space<vmem>>, vector<2x8x8x8xf32>
    %258 = vector.shape_cast %257 : vector<2x8x8x8xf32> to vector<128x8xf32>
    %c448 = arith.constant 448 : index
    %c0_331 = arith.constant 0 : index
    %259 = vector.load %arg2[%c448, %c0_331] : memref<560x16xf32, #tpu.memory_space<vmem>>, vector<8x8xf32>
    %cst_332 = arith.constant dense<0.000000e+00> : vector<128x8xf32>
    %260 = tpu.matmul %258, %259, %cst_332 {dimension_numbers = #tpu.dot_dimension_numbers<[1], [0], [0], [1], [0, 0, 1, 1], [], []>} : vector<128x8xf32>, vector<8x8xf32>, vector<128x8xf32> -> vector<128x8xf32>
    %261 = arith.addf %256, %260 : vector<128x8xf32>
    %c0_333 = arith.constant 0 : index
    %c2_334 = arith.constant 2 : index
    %c2_335 = arith.constant 2 : index
    %c0_336 = arith.constant 0 : index
    %262 = vector.load %arg5[%c0_333, %c2_334, %c2_335, %c0_336] : memref<2x14x14x16xf32, #tpu.memory_space<vmem>>, vector<2x8x8x8xf32>
    %263 = vector.shape_cast %262 : vector<2x8x8x8xf32> to vector<128x8xf32>
    %c456 = arith.constant 456 : index
    %c0_337 = arith.constant 0 : index
    %264 = vector.load %arg2[%c456, %c0_337] : memref<560x16xf32, #tpu.memory_space<vmem>>, vector<8x8xf32>
    %cst_338 = arith.constant dense<0.000000e+00> : vector<128x8xf32>
    %265 = tpu.matmul %263, %264, %cst_338 {dimension_numbers = #tpu.dot_dimension_numbers<[1], [0], [0], [1], [0, 0, 1, 1], [], []>} : vector<128x8xf32>, vector<8x8xf32>, vector<128x8xf32> -> vector<128x8xf32>
    %266 = arith.addf %261, %265 : vector<128x8xf32>
    %c7 = arith.constant 7 : index
    %c0_339 = arith.constant 0 : index
    %267 = vector.load %arg3[%c7, %c0_339] : memref<12x16xf32, #tpu.memory_space<vmem>>, vector<1x8xf32>
    %268 = vector.broadcast %267 : vector<1x8xf32> to vector<128x8xf32>
    %269 = arith.addf %266, %268 : vector<128x8xf32>
    %cst_340 = arith.constant 0.000000e+00 : f32
    %270 = vector.broadcast %cst_340 : f32 to vector<128x8xf32>
    %271 = arith.maximumf %269, %270 : vector<128x8xf32>
    %cst_341 = arith.constant 0.000000e+00 : f32
    %272 = vector.broadcast %cst_341 : f32 to vector<2x8x3x8xf32>
    %c0_342 = arith.constant 0 : index
    %c0_343 = arith.constant 0 : index
    %c0_344 = arith.constant 0 : index
    %c0_345 = arith.constant 0 : index
    %273 = vector.load %arg5[%c0_342, %c0_343, %c0_344, %c0_345] : memref<2x14x14x16xf32, #tpu.memory_space<vmem>>, vector<2x8x3x8xf32>
    tpu.vector_store %arg5[%c0_342, %c0_343, %c0_344, %c0_345], %272 {strides = array<i32>} : memref<2x14x14x16xf32, #tpu.memory_space<vmem>>, vector<2x8x3x8xf32>,
    %c0_346 = arith.constant 0 : index
    %c0_347 = arith.constant 0 : index
    %c11_348 = arith.constant 11 : index
    %c0_349 = arith.constant 0 : index
    %274 = vector.load %arg5[%c0_346, %c0_347, %c11_348, %c0_349] : memref<2x14x14x16xf32, #tpu.memory_space<vmem>>, vector<2x8x3x8xf32>
    tpu.vector_store %arg5[%c0_346, %c0_347, %c11_348, %c0_349], %272 {strides = array<i32>} : memref<2x14x14x16xf32, #tpu.memory_space<vmem>>, vector<2x8x3x8xf32>,
    %275 = vector.shape_cast %271 : vector<128x8xf32> to vector<2x8x8x8xf32>
    %c0_350 = arith.constant 0 : index
    %c0_351 = arith.constant 0 : index
    %c3_352 = arith.constant 3 : index
    %c0_353 = arith.constant 0 : index
    %276 = vector.load %arg5[%c0_350, %c0_351, %c3_352, %c0_353] : memref<2x14x14x16xf32, #tpu.memory_space<vmem>>, vector<2x8x8x8xf32>
    tpu.vector_store %arg5[%c0_350, %c0_351, %c3_352, %c0_353], %275 {strides = array<i32>} : memref<2x14x14x16xf32, #tpu.memory_space<vmem>>, vector<2x8x8x8xf32>,
    %cst_354 = arith.constant 0.000000e+00 : f32
    %277 = vector.broadcast %cst_354 : f32 to vector<128x8xf32>
    %c0_355 = arith.constant 0 : index
    %c0_356 = arith.constant 0 : index
    %c0_357 = arith.constant 0 : index
    %c0_358 = arith.constant 0 : index
    %278 = vector.load %arg5[%c0_355, %c0_356, %c0_357, %c0_358] : memref<2x14x14x16xf32, #tpu.memory_space<vmem>>, vector<2x8x8x8xf32>
    %279 = vector.shape_cast %278 : vector<2x8x8x8xf32> to vector<128x8xf32>
    %c464 = arith.constant 464 : index
    %c0_359 = arith.constant 0 : index
    %280 = vector.load %arg2[%c464, %c0_359] : memref<560x16xf32, #tpu.memory_space<vmem>>, vector<8x8xf32>
    %cst_360 = arith.constant dense<0.000000e+00> : vector<128x8xf32>
    %281 = tpu.matmul %279, %280, %cst_360 {dimension_numbers = #tpu.dot_dimension_numbers<[1], [0], [0], [1], [0, 0, 1, 1], [], []>} : vector<128x8xf32>, vector<8x8xf32>, vector<128x8xf32> -> vector<128x8xf32>
    %282 = arith.addf %277, %281 : vector<128x8xf32>
    %c0_361 = arith.constant 0 : index
    %c0_362 = arith.constant 0 : index
    %c1_363 = arith.constant 1 : index
    %c0_364 = arith.constant 0 : index
    %283 = vector.load %arg5[%c0_361, %c0_362, %c1_363, %c0_364] : memref<2x14x14x16xf32, #tpu.memory_space<vmem>>, vector<2x8x8x8xf32>
    %284 = vector.shape_cast %283 : vector<2x8x8x8xf32> to vector<128x8xf32>
    %c472 = arith.constant 472 : index
    %c0_365 = arith.constant 0 : index
    %285 = vector.load %arg2[%c472, %c0_365] : memref<560x16xf32, #tpu.memory_space<vmem>>, vector<8x8xf32>
    %cst_366 = arith.constant dense<0.000000e+00> : vector<128x8xf32>
    %286 = tpu.matmul %284, %285, %cst_366 {dimension_numbers = #tpu.dot_dimension_numbers<[1], [0], [0], [1], [0, 0, 1, 1], [], []>} : vector<128x8xf32>, vector<8x8xf32>, vector<128x8xf32> -> vector<128x8xf32>
    %287 = arith.addf %282, %286 : vector<128x8xf32>
    %c0_367 = arith.constant 0 : index
    %c0_368 = arith.constant 0 : index
    %c2_369 = arith.constant 2 : index
    %c0_370 = arith.constant 0 : index
    %288 = vector.load %arg5[%c0_367, %c0_368, %c2_369, %c0_370] : memref<2x14x14x16xf32, #tpu.memory_space<vmem>>, vector<2x8x8x8xf32>
    %289 = vector.shape_cast %288 : vector<2x8x8x8xf32> to vector<128x8xf32>
    %c480 = arith.constant 480 : index
    %c0_371 = arith.constant 0 : index
    %290 = vector.load %arg2[%c480, %c0_371] : memref<560x16xf32, #tpu.memory_space<vmem>>, vector<8x8xf32>
    %cst_372 = arith.constant dense<0.000000e+00> : vector<128x8xf32>
    %291 = tpu.matmul %289, %290, %cst_372 {dimension_numbers = #tpu.dot_dimension_numbers<[1], [0], [0], [1], [0, 0, 1, 1], [], []>} : vector<128x8xf32>, vector<8x8xf32>, vector<128x8xf32> -> vector<128x8xf32>
    %292 = arith.addf %287, %291 : vector<128x8xf32>
    %c0_373 = arith.constant 0 : index
    %c0_374 = arith.constant 0 : index
    %c3_375 = arith.constant 3 : index
    %c0_376 = arith.constant 0 : index
    %293 = vector.load %arg5[%c0_373, %c0_374, %c3_375, %c0_376] : memref<2x14x14x16xf32, #tpu.memory_space<vmem>>, vector<2x8x8x8xf32>
    %294 = vector.shape_cast %293 : vector<2x8x8x8xf32> to vector<128x8xf32>
    %c488 = arith.constant 488 : index
    %c0_377 = arith.constant 0 : index
    %295 = vector.load %arg2[%c488, %c0_377] : memref<560x16xf32, #tpu.memory_space<vmem>>, vector<8x8xf32>
    %cst_378 = arith.constant dense<0.000000e+00> : vector<128x8xf32>
    %296 = tpu.matmul %294, %295, %cst_378 {dimension_numbers = #tpu.dot_dimension_numbers<[1], [0], [0], [1], [0, 0, 1, 1], [], []>} : vector<128x8xf32>, vector<8x8xf32>, vector<128x8xf32> -> vector<128x8xf32>
    %297 = arith.addf %292, %296 : vector<128x8xf32>
    %c0_379 = arith.constant 0 : index
    %c0_380 = arith.constant 0 : index
    %c4_381 = arith.constant 4 : index
    %c0_382 = arith.constant 0 : index
    %298 = vector.load %arg5[%c0_379, %c0_380, %c4_381, %c0_382] : memref<2x14x14x16xf32, #tpu.memory_space<vmem>>, vector<2x8x8x8xf32>
    %299 = vector.shape_cast %298 : vector<2x8x8x8xf32> to vector<128x8xf32>
    %c496 = arith.constant 496 : index
    %c0_383 = arith.constant 0 : index
    %300 = vector.load %arg2[%c496, %c0_383] : memref<560x16xf32, #tpu.memory_space<vmem>>, vector<8x8xf32>
    %cst_384 = arith.constant dense<0.000000e+00> : vector<128x8xf32>
    %301 = tpu.matmul %299, %300, %cst_384 {dimension_numbers = #tpu.dot_dimension_numbers<[1], [0], [0], [1], [0, 0, 1, 1], [], []>} : vector<128x8xf32>, vector<8x8xf32>, vector<128x8xf32> -> vector<128x8xf32>
    %302 = arith.addf %297, %301 : vector<128x8xf32>
    %c0_385 = arith.constant 0 : index
    %c0_386 = arith.constant 0 : index
    %c5_387 = arith.constant 5 : index
    %c0_388 = arith.constant 0 : index
    %303 = vector.load %arg5[%c0_385, %c0_386, %c5_387, %c0_388] : memref<2x14x14x16xf32, #tpu.memory_space<vmem>>, vector<2x8x8x8xf32>
    %304 = vector.shape_cast %303 : vector<2x8x8x8xf32> to vector<128x8xf32>
    %c504 = arith.constant 504 : index
    %c0_389 = arith.constant 0 : index
    %305 = vector.load %arg2[%c504, %c0_389] : memref<560x16xf32, #tpu.memory_space<vmem>>, vector<8x8xf32>
    %cst_390 = arith.constant dense<0.000000e+00> : vector<128x8xf32>
    %306 = tpu.matmul %304, %305, %cst_390 {dimension_numbers = #tpu.dot_dimension_numbers<[1], [0], [0], [1], [0, 0, 1, 1], [], []>} : vector<128x8xf32>, vector<8x8xf32>, vector<128x8xf32> -> vector<128x8xf32>
    %307 = arith.addf %302, %306 : vector<128x8xf32>
    %c0_391 = arith.constant 0 : index
    %c0_392 = arith.constant 0 : index
    %c6_393 = arith.constant 6 : index
    %c0_394 = arith.constant 0 : index
    %308 = vector.load %arg5[%c0_391, %c0_392, %c6_393, %c0_394] : memref<2x14x14x16xf32, #tpu.memory_space<vmem>>, vector<2x8x8x8xf32>
    %309 = vector.shape_cast %308 : vector<2x8x8x8xf32> to vector<128x8xf32>
    %c512 = arith.constant 512 : index
    %c0_395 = arith.constant 0 : index
    %310 = vector.load %arg2[%c512, %c0_395] : memref<560x16xf32, #tpu.memory_space<vmem>>, vector<8x8xf32>
    %cst_396 = arith.constant dense<0.000000e+00> : vector<128x8xf32>
    %311 = tpu.matmul %309, %310, %cst_396 {dimension_numbers = #tpu.dot_dimension_numbers<[1], [0], [0], [1], [0, 0, 1, 1], [], []>} : vector<128x8xf32>, vector<8x8xf32>, vector<128x8xf32> -> vector<128x8xf32>
    %312 = arith.addf %307, %311 : vector<128x8xf32>
    %c8 = arith.constant 8 : index
    %c0_397 = arith.constant 0 : index
    %313 = vector.load %arg3[%c8, %c0_397] : memref<12x16xf32, #tpu.memory_space<vmem>>, vector<1x8xf32>
    %314 = vector.broadcast %313 : vector<1x8xf32> to vector<128x8xf32>
    %315 = arith.addf %312, %314 : vector<128x8xf32>
    %c520 = arith.constant 520 : index
    %c0_398 = arith.constant 0 : index
    %316 = vector.load %arg2[%c520, %c0_398] : memref<560x16xf32, #tpu.memory_space<vmem>>, vector<8x8xf32>
    %cst_399 = arith.constant dense<0.000000e+00> : vector<128x8xf32>
    %317 = tpu.matmul %315, %316, %cst_399 {dimension_numbers = #tpu.dot_dimension_numbers<[1], [0], [0], [1], [0, 0, 1, 1], [], []>} : vector<128x8xf32>, vector<8x8xf32>, vector<128x8xf32> -> vector<128x8xf32>
    %c9_400 = arith.constant 9 : index
    %c0_401 = arith.constant 0 : index
    %318 = vector.load %arg3[%c9_400, %c0_401] : memref<12x16xf32, #tpu.memory_space<vmem>>, vector<1x8xf32>
    %319 = vector.broadcast %318 : vector<1x8xf32> to vector<128x8xf32>
    %320 = arith.addf %317, %319 : vector<128x8xf32>
    %cst_402 = arith.constant 0.000000e+00 : f32
    %321 = vector.broadcast %cst_402 : f32 to vector<128x8xf32>
    %322 = arith.maximumf %320, %321 : vector<128x8xf32>
    %c528 = arith.constant 528 : index
    %c0_403 = arith.constant 0 : index
    %323 = vector.load %arg2[%c528, %c0_403] : memref<560x16xf32, #tpu.memory_space<vmem>>, vector<8x16xf32>
    %cst_404 = arith.constant dense<0.000000e+00> : vector<128x16xf32>
    %324 = tpu.matmul %161, %323, %cst_404 {dimension_numbers = #tpu.dot_dimension_numbers<[1], [0], [0], [1], [0, 0, 1, 1], [], []>} : vector<128x8xf32>, vector<8x16xf32>, vector<128x16xf32> -> vector<128x16xf32>
    %c536 = arith.constant 536 : index
    %c0_405 = arith.constant 0 : index
    %325 = vector.load %arg2[%c536, %c0_405] : memref<560x16xf32, #tpu.memory_space<vmem>>, vector<8x16xf32>
    %cst_406 = arith.constant dense<0.000000e+00> : vector<128x16xf32>
    %326 = tpu.matmul %322, %325, %cst_406 {dimension_numbers = #tpu.dot_dimension_numbers<[1], [0], [0], [1], [0, 0, 1, 1], [], []>} : vector<128x8xf32>, vector<8x16xf32>, vector<128x16xf32> -> vector<128x16xf32>
    %327 = arith.addf %324, %326 : vector<128x16xf32>
    %c10 = arith.constant 10 : index
    %c0_407 = arith.constant 0 : index
    %328 = vector.load %arg3[%c10, %c0_407] : memref<12x16xf32, #tpu.memory_space<vmem>>, vector<1x16xf32>
    %329 = vector.broadcast %328 : vector<1x16xf32> to vector<128x16xf32>
    %330 = arith.addf %327, %329 : vector<128x16xf32>
    %c544 = arith.constant 544 : index
    %c0_408 = arith.constant 0 : index
    %331 = vector.load %arg2[%c544, %c0_408] : memref<560x16xf32, #tpu.memory_space<vmem>>, vector<16x16xf32>
    %cst_409 = arith.constant dense<0.000000e+00> : vector<128x16xf32>
    %332 = tpu.matmul %0, %331, %cst_409 {dimension_numbers = #tpu.dot_dimension_numbers<[1], [0], [0], [1], [0, 0, 1, 1], [], []>} : vector<128x16xf32>, vector<16x16xf32>, vector<128x16xf32> -> vector<128x16xf32>
    %c11_410 = arith.constant 11 : index
    %c0_411 = arith.constant 0 : index
    %333 = vector.load %arg3[%c11_410, %c0_411] : memref<12x16xf32, #tpu.memory_space<vmem>>, vector<1x16xf32>
    %334 = vector.broadcast %333 : vector<1x16xf32> to vector<128x16xf32>
    %335 = arith.addf %332, %334 : vector<128x16xf32>
    %336 = arith.addf %330, %335 : vector<128x16xf32>
    %cst_412 = arith.constant 0.000000e+00 : f32
    %337 = vector.broadcast %cst_412 : f32 to vector<128x16xf32>
    %338 = arith.maximumf %336, %337 : vector<128x16xf32>
    %c0_413 = arith.constant 0 : index
    %c0_414 = arith.constant 0 : index
    %339 = vector.load %arg4[%c0_413, %c0_414] : memref<128x16xf32, #tpu.memory_space<vmem>>, vector<128x16xf32>
    tpu.vector_store %arg4[%c0_413, %c0_414], %338 {strides = array<i32>} : memref<128x16xf32, #tpu.memory_space<vmem>>, vector<128x16xf32>,
    return
  }
  func.func @transform_0(%arg0: i32) -> (i32, i32) {
    %c0_i32 = arith.constant 0 : i32
    %c0_i32_0 = arith.constant 0 : i32
    %c0_i32_1 = arith.constant 0 : i32
    return %c0_i32, %c0_i32_0 : i32, i32
  }
  func.func @transform_1(%arg0: i32) -> (i32, i32) {
    %c0_i32 = arith.constant 0 : i32
    %c0_i32_0 = arith.constant 0 : i32
    %c0_i32_1 = arith.constant 0 : i32
    return %c0_i32, %c0_i32_0 : i32, i32
  }
  func.func @transform_2(%arg0: i32) -> (i32, i32) {
    %c0_i32 = arith.constant 0 : i32
    %c0_i32_0 = arith.constant 0 : i32
    %c0_i32_1 = arith.constant 0 : i32
    return %c0_i32, %c0_i32_0 : i32, i32
  }
  func.func @transform_3(%arg0: i32) -> (i32, i32) {
    %c0_i32 = arith.constant 0 : i32
    %c0_i32_0 = arith.constant 0 : i32
    %c0_i32_1 = arith.constant 0 : i32
    return %c0_i32, %c0_i32_0 : i32, i32
  }
}

</mosaic_0001>

<bundles_post_ra>
// kernel: tpu_custom_call.1
= control target key start
LH: loop header
LB: loop body
LE: loop exit
PB: predicated region body
PF: predicated region fallthrough
CT: control target
= control target key end

     0   :  { %vm30_vm0 = vcmask 124928   ;;  %vm63_vm1 = vcmask 130048   ;;  %vm1885_vm2 = vcmask 57344   ;;  %v19141_v3 = vmov 0.0   ;;  %s19135_s1 = inlined_call_operand.vmem [shape: f32[560,16], index: 1, kind: input, shape index: {}]   ;;  %s19136_s0 = inlined_call_operand.vmem [shape: f32[128,16], index: 0, kind: input, shape index: {}]   ;;  %s19137_s2 = inlined_call_operand.vmem [shape: f32[12,16], index: 2, kind: input, shape index: {}]   ;;  %s19138_s3 = inlined_call_operand.vmem [shape: f32[128,16], index: 3, kind: output, shape index: {}]  }
   0x1   :  { %v96_v0 = vld [vmem:[%s19135_s1] sm:$0xff]  ;;  %v97_v1 = vld [vmem:[%s19135_s1 + $0x8] sm:$0xff]  ;;  %31 = vst.msk [vmem:[#allocation2] sm:$0x7] %vm30_vm0, %v19141_v3  ;;  %32 = vst.msk [vmem:[#allocation2 + $0x10] sm:$0x7] %vm30_vm0, %v19141_v3 }
   0x2   :  { %v16218_v2 = vld [vmem:[%s19136_s0] sm:$0xff]  ;;  %33 = vst.msk [vmem:[#allocation2 + $0x20] sm:$0x7] %vm30_vm0, %v19141_v3  ;;  %34 = vst.msk [vmem:[#allocation2 + $0x30] sm:$0x7] %vm30_vm0, %v19141_v3  ;;  %v16292_v4 = vpack.c.bf16 %v97_v1, %v96_v0  ;;  %v519_v6 = vld [vmem:[%s19135_s1 + $0x28] sm:$0xff] }
   0x3   :  { %19173 = vst [vmem:[#allocation3_spill] sm:$0xff] %v16218_v2  ;;  %35 = vst.msk [vmem:[#allocation2 + $0x40] sm:$0x7] %vm30_vm0, %v19141_v3  ;;  %v518_v5 = vld [vmem:[%s19135_s1 + $0x20] sm:$0xff]  ;;  %v16305_v7 = vld [vmem:[%s19136_s0 + $0x8] sm:$0xff]  ;;  %vm9727_vm3 = vcmask 59392  }
   0x4   :  { %36 = vst.msk [vmem:[#allocation2 + $0x50] sm:$0x7] %vm30_vm0, %v19141_v3  ;;  %37 = vst.msk [vmem:[#allocation2 + $0x60] sm:$0x7] %vm30_vm0, %v19141_v3  ;;  %v15421_v8 = vpack.c.bf16 %v519_v6, %v518_v5  ;;  %v16312_v9 = vld [vmem:[%s19136_s0 + $0x10] sm:$0xff]  ;;  %v16317_v10 = vld [vmem:[%s19136_s0 + $0x18] sm:$0xff]  ;;  %15418 = vmatprep.subr.bf16.mxu0 %v16292_v4 }
   0x5   :  { %38 = vst.msk [vmem:[#allocation2 + $0x70] sm:$0x7] %vm30_vm0, %v19141_v3  ;;  %39 = vst.msk [vmem:[#allocation2 + $0xe0] sm:$0x7] %vm30_vm0, %v19141_v3  ;;  %v16322_v11 = vld [vmem:[%s19136_s0 + $0x20] sm:$0xff]  ;;  %v16334_v12 = vld [vmem:[%s19136_s0 + $0x28] sm:$0xff]  ;;  %15420 = vmatpush3.bf16.msra.mxu0 %v16292_v4 }
   0x6   :  { %40 = vst.msk [vmem:[#allocation2 + $0xf0] sm:$0x7] %vm30_vm0, %v19141_v3  ;;  %41 = vst.msk [vmem:[#allocation2 + $0x100] sm:$0x7] %vm30_vm0, %v19141_v3  ;;  %v16339_v13 = vld [vmem:[%s19136_s0 + $0x30] sm:$0xff]  ;;  %v16344_v14 = vld [vmem:[%s19136_s0 + $0x38] sm:$0xff]  ;;  %15422 = vmatprep.subr.bf16.mxu0 %v15421_v8 }
   0x7   :  { %42 = vst.msk [vmem:[#allocation2 + $0x110] sm:$0x7] %vm30_vm0, %v19141_v3  ;;  %43 = vst.msk [vmem:[#allocation2 + $0x120] sm:$0x7] %vm30_vm0, %v19141_v3  ;;  %v745_v15 = vld [vmem:[%s19135_s1 + $0x30] sm:$0xff]  ;;  %v746_v16 = vld [vmem:[%s19135_s1 + $0x38] sm:$0xff] }
   0x8   :  { %44 = vst.msk [vmem:[#allocation2 + $0x130] sm:$0x7] %vm30_vm0, %v19141_v3  ;;  %45 = vst.msk [vmem:[#allocation2 + $0x140] sm:$0x7] %vm30_vm0, %v19141_v3  ;;  %v16362_v17 = vld [vmem:[%s19136_s0 + $0x40] sm:$0xff]  ;;  %v16369_v18 = vld [vmem:[%s19136_s0 + $0x48] sm:$0xff]  ;;  %v15425_v26 = vpack.c.bf16 %v746_v16, %v745_v15 }
   0x9   :  { %46 = vst.msk [vmem:[#allocation2 + $0x150] sm:$0x7] %vm30_vm0, %v19141_v3  ;;  %47 = vst.msk [vmem:[#allocation2 + $0xb] sm:$0x7] %vm30_vm0, %v19141_v3  ;;  %v16374_v19 = vld [vmem:[%s19136_s0 + $0x50] sm:$0xff]  ;;  %v16379_v20 = vld [vmem:[%s19136_s0 + $0x58] sm:$0xff] }
   0xa   :  { %48 = vst.msk [vmem:[#allocation2 + $0x1b] sm:$0x7] %vm30_vm0, %v19141_v3  ;;  %49 = vst.msk [vmem:[#allocation2 + $0x2b] sm:$0x7] %vm30_vm0, %v19141_v3  ;;  %v16390_v21 = vld [vmem:[%s19136_s0 + $0x60] sm:$0xff]  ;;  %v16395_v22 = vld [vmem:[%s19136_s0 + $0x68] sm:$0xff] }
   0xb   :  { %50 = vst.msk [vmem:[#allocation2 + $0x3b] sm:$0x7] %vm30_vm0, %v19141_v3  ;;  %51 = vst.msk [vmem:[#allocation2 + $0x4b] sm:$0x7] %vm30_vm0, %v19141_v3  ;;  %v16400_v23 = vld [vmem:[%s19136_s0 + $0x70] sm:$0xff]  ;;  %v16411_v24 = vld [vmem:[%s19136_s0 + $0x78] sm:$0xff] }
   0xc   :  { %52 = vst.msk [vmem:[#allocation2 + $0x5b] sm:$0x7] %vm30_vm0, %v19141_v3  ;;  %53 = vst.msk [vmem:[#allocation2 + $0x6b] sm:$0x7] %vm30_vm0, %v19141_v3  ;;  %v972_v35 = vld [vmem:[%s19135_s1 + $0x40] sm:$0xff]  ;;  %v973_v36 = vld [vmem:[%s19135_s1 + $0x48] sm:$0xff] }
   0xd   :  { %54 = vst.msk [vmem:[#allocation2 + $0x7b] sm:$0x7] %vm30_vm0, %v19141_v3  ;;  %55 = vst.msk [vmem:[#allocation2 + $0xeb] sm:$0x7] %vm30_vm0, %v19141_v3  ;;  %v16444_v39 = vpack.c.bf16 %v973_v36, %v972_v35  ;;  %v114_v40 = vld [vmem:[%s19135_s1 + $0x10] sm:$0xff]  ;;  %v115_v42 = vld [vmem:[%s19135_s1 + $0x18] sm:$0xff] }
   0xe   :  { %56 = vst.msk [vmem:[#allocation2 + $0xfb] sm:$0x7] %vm30_vm0, %v19141_v3  ;;  %57 = vst.msk [vmem:[#allocation2 + $0x10b] sm:$0x7] %vm30_vm0, %v19141_v3  ;;  %v15413_v44 = vpack.c.bf16 %v115_v42, %v114_v40  ;;  %vm1874_vm4 = vcmask 64512   ;;  %vm1876_vm5 = vcmask 58368  }
   0xf   :  { %58 = vst.msk [vmem:[#allocation2 + $0x11b] sm:$0x7] %vm30_vm0, %v19141_v3  ;;  %59 = vst.msk [vmem:[#allocation2 + $0x12b] sm:$0x7] %vm30_vm0, %v19141_v3 }
  0x10   :  { %60 = vst.msk [vmem:[#allocation2 + $0x13b] sm:$0x7] %vm30_vm0, %v19141_v3  ;;  %61 = vst.msk [vmem:[#allocation2 + $0x14b] sm:$0x7] %vm30_vm0, %v19141_v3  ;;  %15414 = vmatprep.subr.bf16.mxu1 %v15413_v44 }
  0x11   :  { %62 = vst.msk [vmem:[#allocation2 + $0x15b] sm:$0x7] %vm30_vm0, %v19141_v3  ;;  %19174 = vst [vmem:[#allocation4_spill] sm:$0xff] %v16305_v7  ;;  %15416 = vmatpush3.bf16.msra.mxu1 %v15413_v44 }
  0x12   :  { %1894 = vst.msk [vmem:[#allocation2 + $0x80] sm:$0x1] %vm1885_vm2, %v19141_v3  ;;  %1904 = vst.msk [vmem:[#allocation2 + $0x160] sm:$0x1] %vm1885_vm2, %v19141_v3  ;;  %15481 = vmatprep.subr.bf16.mxu1 %v16292_v4 }
  0x13   :  { %1914 = vst.msk [vmem:[#allocation2 + $0x89] sm:$0x1] %vm1885_vm2, %v19141_v3  ;;  %1924 = vst.msk [vmem:[#allocation2 + $0x169] sm:$0x1] %vm1885_vm2, %v19141_v3 }
  0x14   :  { %64 = vst.msk [vmem:[#allocation2 + $0x3] sm:$0xff] %vm63_vm1, %v16218_v2  ;;  %65 = vst.msk [vmem:[#allocation2 + $0x13] sm:$0xff] %vm63_vm1, %v16305_v7 }
  0x15   :  { %19175 = vst [vmem:[#allocation5_spill] sm:$0xff] %v16312_v9  ;;  %19176 = vst [vmem:[#allocation6_spill] sm:$0xff] %v16317_v10 }
  0x16   :  { %19177 = vst [vmem:[#allocation7_spill] sm:$0xff] %v16322_v11  ;;  %66 = vst.msk [vmem:[#allocation2 + $0x23] sm:$0xff] %vm63_vm1, %v16312_v9 }
  0x17   :  { %67 = vst.msk [vmem:[#allocation2 + $0x33] sm:$0xff] %vm63_vm1, %v16317_v10  ;;  %68 = vst.msk [vmem:[#allocation2 + $0x43] sm:$0xff] %vm63_vm1, %v16322_v11 }
  0x18   :  { %19178 = vst [vmem:[#allocation8_spill] sm:$0xff] %v16334_v12  ;;  %19179 = vst [vmem:[#allocation9_spill] sm:$0xff] %v16339_v13 }
  0x19   :  { %19180 = vst [vmem:[#allocation10_spill] sm:$0xff] %v16344_v14  ;;  %69 = vst.msk [vmem:[#allocation2 + $0x53] sm:$0xff] %vm63_vm1, %v16334_v12 }
  0x1a   :  { %70 = vst.msk [vmem:[#allocation2 + $0x63] sm:$0xff] %vm63_vm1, %v16339_v13  ;;  %71 = vst.msk [vmem:[#allocation2 + $0x73] sm:$0xff] %vm63_vm1, %v16344_v14 }
  0x1b   :  { %19181 = vst [vmem:[#allocation11_spill] sm:$0xff] %v16362_v17  ;;  %72 = vst.msk [vmem:[#allocation2 + $0xe3] sm:$0xff] %vm63_vm1, %v16362_v17  ;;  %v80_v25 = vld [vmem:[#allocation2] sm:$0xff]  ;;  %v81_v27 = vld [vmem:[#allocation2 + $0x10] sm:$0xff] }
  0x1c   :  { %19182 = vst [vmem:[#allocation12_spill] sm:$0xff] %v16369_v18  ;;  %19183 = vst [vmem:[#allocation13_spill] sm:$0xff] %v16374_v19  ;;  %14033 = vmatprep.mubr.msk.f32.mxu0 %vm63_vm1, %v80_v25  ;;  %v502_v34 = vld [vmem:[#allocation2 + $0x2] sm:$0xff]  ;;  %v503_v37 = vld [vmem:[#allocation2 + $0x12] sm:$0xff] }
  0x1d   :  { %19184 = vst [vmem:[#allocation14_spill] sm:$0xff] %v16379_v20  ;;  %73 = vst.msk [vmem:[#allocation2 + $0xf3] sm:$0xff] %vm63_vm1, %v16369_v18  ;;  %14034 = vmatmul.mubr.msk.f32.vlgmr.msra.gmra.mrb[0].mxu0 %vm63_vm1, %v81_v27  ;;  %v82_v28 = vld [vmem:[#allocation2 + $0x20] sm:$0xff]  ;;  %v99_v47 = vld [vmem:[#allocation2 + $0x11] sm:$0xff] }
  0x1e   :  { %74 = vst.msk [vmem:[#allocation2 + $0x103] sm:$0xff] %vm63_vm1, %v16374_v19  ;;  %75 = vst.msk [vmem:[#allocation2 + $0x113] sm:$0xff] %vm63_vm1, %v16379_v20  ;;  %v83_v29 = vld [vmem:[#allocation2 + $0x30] sm:$0xff]  ;;  %v84_v30 = vld [vmem:[#allocation2 + $0x40] sm:$0xff]  ;;  %15424 = vmatpush3.bf16.msra.mxu0 %v15421_v8  ;;  %14036 = vmatprep.mubr.msk.f32.mxu0 %vm63_vm1, %v82_v28 }
  0x1f   :  { %19185 = vst [vmem:[#allocation15_spill] sm:$0xff] %v16390_v21  ;;  %19186 = vst [vmem:[#allocation16_spill] sm:$0xff] %v16395_v22  ;;  %15426 = vmatprep.subr.bf16.mxu0 %v15425_v26  ;;  %v504_v38 = vld [vmem:[#allocation2 + $0x22] sm:$0xff]  ;;  %v505_v41 = vld [vmem:[#allocation2 + $0x32] sm:$0xff] }
  0x20   :  { %19187 = vst [vmem:[#allocation17_spill] sm:$0xff] %v16400_v23  ;;  %76 = vst.msk [vmem:[#allocation2 + $0x123] sm:$0xff] %vm63_vm1, %v16390_v21  ;;  %v85_v31 = vld [vmem:[#allocation2 + $0x50] sm:$0xff]  ;;  %v506_v43 = vld [vmem:[#allocation2 + $0x42] sm:$0xff] }
  0x21   :  { %77 = vst.msk [vmem:[#allocation2 + $0x133] sm:$0xff] %vm63_vm1, %v16395_v22  ;;  %78 = vst.msk [vmem:[#allocation2 + $0x143] sm:$0xff] %vm63_vm1, %v16400_v23  ;;  %v86_v32 = vld [vmem:[#allocation2 + $0x60] sm:$0xff]  ;;  %v87_v33 = vld [vmem:[#allocation2 + $0x70] sm:$0xff]  ;;  %14037 = vmatmul.mubr.msk.f32.gmra.mrb[2].mxu0 %vm63_vm1, %v83_v29 }
  0x22   :  { %19188 = vst [vmem:[#allocation18_spill] sm:$0xff] %v16411_v24  ;;  %79 = vst.msk [vmem:[#allocation2 + $0x153] sm:$0xff] %vm63_vm1, %v16411_v24  ;;  %14039 = vmatprep.mubr.msk.f32.mxu0 %vm63_vm1, %v84_v30  ;;  %v98_v45 = vld [vmem:[#allocation2 + $0x1] sm:$0xff]  ;;  %v507_v46 = vld [vmem:[#allocation2 + $0x52] sm:$0xff] }
  0x23   :  { %1887 = vst.msk [vmem:[#allocation2 + $0x10] sm:$0x1] %vm1885_vm2, %v19141_v3  ;;  %1888 = vst.msk [vmem:[#allocation2 + $0x20] sm:$0x1] %vm1885_vm2, %v19141_v3  ;;  %14005 = vmatprep.mubr.msk.f32.mxu1 %vm63_vm1, %v98_v45  ;;  %v508_v48 = vld [vmem:[#allocation2 + $0x62] sm:$0xff]  ;;  %v509_v50 = vld [vmem:[#allocation2 + $0x72] sm:$0xff] }
  0x24   :  { %1889 = vst.msk [vmem:[#allocation2 + $0x30] sm:$0x1] %vm1885_vm2, %v19141_v3  ;;  %1890 = vst.msk [vmem:[#allocation2 + $0x40] sm:$0x1] %vm1885_vm2, %v19141_v3  ;;  %v100_v49 = vld [vmem:[#allocation2 + $0x21] sm:$0xff]  ;;  %14006 = vmatmul.mubr.msk.f32.vlgmr.msra.gmra.mrb[0].mxu1 %vm63_vm1, %v99_v47  ;;  %v101_v51 = vld [vmem:[#allocation2 + $0x31] sm:$0xff] }
  0x25   :  { %1891 = vst.msk [vmem:[#allocation2 + $0x50] sm:$0x1] %vm1885_vm2, %v19141_v3  ;;  %1892 = vst.msk [vmem:[#allocation2 + $0x60] sm:$0x1] %vm1885_vm2, %v19141_v3  ;;  %14040 = vmatmul.mubr.msk.f32.gmra.mrb[4].mxu0 %vm63_vm1, %v85_v31  ;;  %14008 = vmatprep.mubr.msk.f32.mxu1 %vm63_vm1, %v100_v49  ;;  %v510_v52 = vld [vmem:[#allocation2 + $0xe2] sm:$0xff]  ;;  %v511_v54 = vld [vmem:[#allocation2 + $0xf2] sm:$0xff] }
  0x26   :  { %1893 = vst.msk [vmem:[#allocation2 + $0x70] sm:$0x1] %vm1885_vm2, %v19141_v3  ;;  %14042 = vmatprep.mubr.msk.f32.mxu0 %vm63_vm1, %v86_v32  ;;  %v102_v53 = vld [vmem:[#allocation2 + $0x41] sm:$0xff]  ;;  %15482 = vmatpush3.bf16.msra.mxu1 %v16292_v4  ;;  %v16465_v56 = vld [vmem:[#allocation2 + $0x13] sm:$0xff] }
  0x27   :  { %v512_v55 = vld [vmem:[#allocation2 + $0x102] sm:$0xff]  ;;  %v16469_v58 = vld [vmem:[#allocation2 + $0x14] sm:$0xff] }
  0x28   :  { %v16467_v57 = vld [vmem:[#allocation2 + $0x4] sm:$0xff]  ;;  %v16473_v60 = vld [vmem:[#allocation2 + $0x15] sm:$0xff]  ;;  %14009 = vmatmul.mubr.msk.f32.gmra.mrb[2].mxu1 %vm63_vm1, %v101_v51 }
  0x29   :  { %14043 = vmatmul.mubr.msk.f32.gmra.mrb[6].mxu0 %vm63_vm1, %v87_v33  ;;  %v16471_v59 = vld [vmem:[#allocation2 + $0x5] sm:$0xff]  ;;  %v16479_v62 = vld [vmem:[#allocation2 + $0x33] sm:$0xff]  ;;  %14011 = vmatprep.mubr.msk.f32.mxu1 %vm63_vm1, %v102_v53 }
  0x2a   :  { %14061 = vmatprep.mubr.msk.f32.mxu0 %vm63_vm1, %v502_v34  ;;  %v16477_v61 = vld [vmem:[#allocation2 + $0x23] sm:$0xff]  ;;  %v16483_v0 = vld [vmem:[#allocation2 + $0x34] sm:$0xff] }
  0x2b   :  { %v16481_v63 = vld [vmem:[#allocation2 + $0x24] sm:$0xff]  ;;  %v16487_v4 = vld [vmem:[#allocation2 + $0x35] sm:$0xff] }
  0x2c   :  { %v16485_v1 = vld [vmem:[#allocation2 + $0x25] sm:$0xff]  ;;  %v103_v5 = vld [vmem:[#allocation2 + $0x51] sm:$0xff] }
  0x2d   :  { %14062 = vmatmul.mubr.msk.f32.vlgmr.msra.gmra.mrb[0].mxu0 %vm63_vm1, %v503_v37  ;;  %v104_v6 = vld [vmem:[#allocation2 + $0x61] sm:$0xff]  ;;  %v16490_v8 = vld [vmem:[#allocation2 + $0xf0] sm:$0xff]  ;;  %14012 = vmatmul.mubr.msk.f32.gmra.mrb[4].mxu1 %vm63_vm1, %v103_v5 }
  0x2e   :  { %15428 = vmatpush3.bf16.msra.mxu0 %v15425_v26  ;;  %14064 = vmatprep.mubr.msk.f32.mxu0 %vm63_vm1, %v504_v38  ;;  %v16492_v15 = vld [vmem:[#allocation2 + $0x43] sm:$0xff]  ;;  %1897 = vst.msk [vmem:[#allocation2 + $0xf0] sm:$0x1] %vm1885_vm2, %v19141_v3  ;;  %v16502_v27 = vld [vmem:[#allocation2 + $0x16] sm:$0xff] }
  0x2f   :  { %15430 = vmatprep.subr.bf16.mxu0 %v16444_v39  ;;  %v16494_v16 = vld [vmem:[#allocation2 + $0x44] sm:$0xff]  ;;  %19190 = vst [vmem:[#allocation20_spill] sm:$0xff] %v16502_v27  ;;  %v16506_v29 = vld [vmem:[#allocation2 + $0x112] sm:$0xff]  ;;  %1907 = vst.msk [vmem:[#allocation2 + $0x19] sm:$0x1] %vm1885_vm2, %v19141_v3  ;;  %14014 = vmatprep.mubr.msk.f32.mxu1 %vm63_vm1, %v104_v6 }
  0x30   :  { %v16496_v25 = vld [vmem:[#allocation2 + $0x45] sm:$0xff]  ;;  %v16508_v30 = vld [vmem:[#allocation2 + $0x53] sm:$0xff]  ;;  %9745 = vst.msk [vmem:[#allocation2 + $0x1b] sm:$0x7] %vm9727_vm3, %v19141_v3 }
  0x31   :  { %14065 = vmatmul.mubr.msk.f32.gmra.mrb[2].mxu0 %vm63_vm1, %v505_v41  ;;  %v16500_v26 = vld [vmem:[#allocation2 + $0x6] sm:$0xff]  ;;  %v16510_v31 = vld [vmem:[#allocation2 + $0x54] sm:$0xff] }
  0x32   :  { %14067 = vmatprep.mubr.msk.f32.mxu0 %vm63_vm1, %v506_v43  ;;  %19189 = vst [vmem:[#allocation19_spill] sm:$0xff] %v16500_v26  ;;  %v16504_v28 = vld [vmem:[#allocation2 + $0x100] sm:$0xff]  ;;  %v16512_v32 = vld [vmem:[#allocation2 + $0x55] sm:$0xff]  ;;  %9744 = vst.msk [vmem:[#allocation2 + $0xb] sm:$0x7] %vm9727_vm3, %v19141_v3 }
  0x33   :  { %v16514_v33 = vld [vmem:[#allocation2 + $0x71] sm:$0xff]  ;;  %1898 = vst.msk [vmem:[#allocation2 + $0x100] sm:$0x1] %vm1885_vm2, %v19141_v3  ;;  %v16526_v35 = vld [vmem:[#allocation2 + $0x26] sm:$0xff] }
  0x34   :  { %v16524_v34 = vld [vmem:[#allocation2 + $0x110] sm:$0xff]  ;;  %19191 = vst [vmem:[#allocation21_spill] sm:$0xff] %v16526_v35  ;;  %v16531_v37 = vld [vmem:[#allocation2 + $0x122] sm:$0xff]  ;;  %1908 = vst.msk [vmem:[#allocation2 + $0x29] sm:$0x1] %vm1885_vm2, %v19141_v3  ;;  %14015 = vmatmul.mubr.msk.f32.gmra.mrb[6].mxu1 %vm63_vm1, %v16514_v33 }
  0x35   :  { %14068 = vmatmul.mubr.msk.f32.gmra.mrb[4].mxu0 %vm63_vm1, %v507_v46  ;;  %v16528_v36 = vld [vmem:[#allocation2 + $0x36] sm:$0xff]  ;;  %v16533_v38 = vld [vmem:[#allocation2 + $0x63] sm:$0xff]  ;;  %1899 = vst.msk [vmem:[#allocation2 + $0x110] sm:$0x1] %vm1885_vm2, %v19141_v3 }
  0x36   :  { %14070 = vmatprep.mubr.msk.f32.mxu0 %vm63_vm1, %v508_v48  ;;  %19192 = vst [vmem:[#allocation22_spill] sm:$0xff] %v16528_v36  ;;  %v16535_v40 = vld [vmem:[#allocation2 + $0x73] sm:$0xff]  ;;  %v16537_v41 = vld [vmem:[#allocation2 + $0x64] sm:$0xff]  ;;  %9746 = vst.msk [vmem:[#allocation2 + $0x2b] sm:$0x7] %vm9727_vm3, %v19141_v3 }
  0x37   :  { %v16539_v42 = vld [vmem:[#allocation2 + $0x74] sm:$0xff]  ;;  %v16541_v43 = vld [vmem:[#allocation2 + $0xe4] sm:$0xff]  ;;  %1909 = vst.msk [vmem:[#allocation2 + $0x39] sm:$0x1] %vm1885_vm2, %v19141_v3 }
  0x38   :  { %v16544_v44 = vld [vmem:[#allocation2 + $0x65] sm:$0xff]  ;;  %v16546_v45 = vld [vmem:[#allocation2 + $0x75] sm:$0xff]  ;;  %9747 = vst.msk [vmem:[#allocation2 + $0x3b] sm:$0x7] %vm9727_vm3, %v19141_v3 }
  0x39   :  { %14071 = vmatmul.mubr.msk.f32.gmra.mrb[6].mxu0 %vm63_vm1, %v509_v50  ;;  %v106_v46 = vld [vmem:[#allocation2 + $0xe1] sm:$0xff]  ;;  %v16562_v49 = vld [vmem:[#allocation2 + $0x130] sm:$0xff] }
  0x3a   :  { %14073 = vmatprep.mubr.msk.f32.mxu0 %vm63_vm1, %v510_v52  ;;  %v16548_v47 = vld [vmem:[#allocation2 + $0xe5] sm:$0xff]  ;;  %v16567_v51 = vld [vmem:[#allocation2 + $0xf3] sm:$0xff]  ;;  %14017 = vmatprep.mubr.msk.f32.mxu1 %vm63_vm1, %v106_v46 }
  0x3b   :  { %v16560_v48 = vld [vmem:[#allocation2 + $0x120] sm:$0xff]  ;;  %v16571_v53 = vld [vmem:[#allocation2 + $0x113] sm:$0xff] }
  0x3c   :  { %v16564_v50 = vld [vmem:[#allocation2 + $0x46] sm:$0xff]  ;;  %v16577_v23 = vld [vmem:[#allocation2 + $0x114] sm:$0xff] }
  0x3d   :  { %14074 = vmatmul.mubr.msk.f32.gmra.mrb[8].mxu0 %vm63_vm1, %v511_v54  ;;  %19193 = vst [vmem:[#allocation23_spill] sm:$0xff] %v16564_v50  ;;  %v16569_v52 = vld [vmem:[#allocation2 + $0x103] sm:$0xff]  ;;  %v16573_v54 = vld [vmem:[#allocation2 + $0xf4] sm:$0xff] }
  0x3e   :  { %14076 = vmatprep.mubr.msk.f32.mxu0 %vm63_vm1, %v512_v55  ;;  %v16575_v5 = vld [vmem:[#allocation2 + $0x104] sm:$0xff]  ;;  %v16580_v3 = vld [vmem:[#allocation2 + $0xf5] sm:$0xff]  ;;  %v19194_v55 = vmov 0.0  }
  0x3f   :  { %v16582_v24 = vld [vmem:[#allocation2 + $0x105] sm:$0xff]  ;;  %v16584_v21 = vld [vmem:[#allocation2 + $0x115] sm:$0xff]  ;;  %1900 = vst.msk [vmem:[#allocation2 + $0x120] sm:$0x1] %vm1885_vm2, %v19194_v55  ;;  %1901 = vst.msk [vmem:[#allocation2 + $0x130] sm:$0x1] %vm1885_vm2, %v19194_v55 }
  0x40   :  { %1910 = vst.msk [vmem:[#allocation2 + $0x49] sm:$0x1] %vm1885_vm2, %v19194_v55  ;;  %v16594_v22 = vld [vmem:[#allocation2 + $0x56] sm:$0xff]  ;;  %v16596_v6 = vld [vmem:[#allocation2 + $0x140] sm:$0xff] }
  0x41   :  { %9748 = vst.msk [vmem:[#allocation2 + $0x4b] sm:$0x7] %vm9727_vm3, %v19194_v55  ;;  %19195 = vst [vmem:[#allocation24_spill] sm:$0xff] %v16594_v22  ;;  %v16598_v19 = vld [vmem:[#allocation2 + $0x150] sm:$0xff]  ;;  %v16600_v20 = vld [vmem:[#allocation2 + $0x123] sm:$0xff]  ;;  %14077 = vmatmul.mubr.msk.f32.gmra.mrb[10].mxu0 %vm63_vm1, %v16506_v29 }
  0x42   :  { %v16602_v17 = vld [vmem:[#allocation2 + $0x124] sm:$0xff]  ;;  %1911 = vst.msk [vmem:[#allocation2 + $0x59] sm:$0x1] %vm1885_vm2, %v19194_v55  ;;  %1902 = vst.msk [vmem:[#allocation2 + $0x140] sm:$0x1] %vm1885_vm2, %v19194_v55  ;;  %v16614_v13 = vld [vmem:[#allocation2 + $0x76] sm:$0xff]  ;;  %14079 = vmatprep.mubr.msk.f32.mxu0 %vm63_vm1, %v16531_v37 }
  0x43   :  { %9749 = vst.msk [vmem:[#allocation2 + $0x5b] sm:$0x7] %vm9727_vm3, %v19194_v55  ;;  %v16612_v18 = vld [vmem:[#allocation2 + $0x66] sm:$0xff]  ;;  %19197 = vst [vmem:[#allocation26_spill] sm:$0xff] %v16614_v13  ;;  %v515_v11 = vld [vmem:[#allocation2 + $0x132] sm:$0xff] }
  0x44   :  { %1903 = vst.msk [vmem:[#allocation2 + $0x150] sm:$0x1] %vm1885_vm2, %v19194_v55  ;;  %19196 = vst [vmem:[#allocation25_spill] sm:$0xff] %v16612_v18  ;;  %v16616_v14 = vld [vmem:[#allocation2 + $0xe6] sm:$0xff]  ;;  %v16618_v12 = vld [vmem:[#allocation2 + $0x133] sm:$0xff] }
  0x45   :  { %19198 = vst [vmem:[#allocation27_spill] sm:$0xff] %v16616_v14  ;;  %1912 = vst.msk [vmem:[#allocation2 + $0x69] sm:$0x1] %vm1885_vm2, %v19194_v55  ;;  %v16630_v9 = vld [vmem:[#allocation2 + $0xf6] sm:$0xff]  ;;  %v16632_v10 = vld [vmem:[#allocation2 + $0x106] sm:$0xff]  ;;  %14080 = vmatmul.mubr.msk.f32.gmra.mrb[12].mxu0 %vm63_vm1, %v515_v11 }
  0x46   :  { %9750 = vst.msk [vmem:[#allocation2 + $0x6b] sm:$0x7] %vm9727_vm3, %v19194_v55  ;;  %9751 = vst.msk [vmem:[#allocation2 + $0x7b] sm:$0x7] %vm9727_vm3, %v19194_v55  ;;  %v16634_v2 = vld [vmem:[#allocation2 + $0x116] sm:$0xff]  ;;  %v16642_v14 = vld [vmem:[#allocation2 + $0x125] sm:$0xff] }
  0x47   :  { %1913 = vst.msk [vmem:[#allocation2 + $0x79] sm:$0x1] %vm1885_vm2, %v19194_v55  ;;  %19199 = vst [vmem:[#allocation28_spill] sm:$0xff] %v16630_v9  ;;  %v16638_v7 = vld [vmem:[#allocation2 + $0x134] sm:$0xff]  ;;  %v16656_v29 = vld [vmem:[#allocation2 + $0x126] sm:$0xff] }
  0x48   :  { %9752 = vst.msk [vmem:[#allocation2 + $0xeb] sm:$0x7] %vm9727_vm3, %v19194_v55  ;;  %19200 = vst [vmem:[#allocation29_spill] sm:$0xff] %v16632_v10  ;;  %v107_v33 = vld [vmem:[#allocation2 + $0xf1] sm:$0xff]  ;;  %v516_v9 = vld [vmem:[#allocation2 + $0x142] sm:$0xff] }
  0x49   :  { %19201 = vst [vmem:[#allocation30_spill] sm:$0xff] %v16634_v2  ;;  %1917 = vst.msk [vmem:[#allocation2 + $0xf9] sm:$0x1] %vm1885_vm2, %v19194_v55  ;;  %v16661_v2 = vld [vmem:[#allocation2 + $0x135] sm:$0xff]  ;;  %v108_v13 = vld [vmem:[#allocation2 + $0x101] sm:$0xff]  ;;  %14018 = vmatmul.mubr.msk.f32.gmra.mrb[8].mxu1 %vm63_vm1, %v107_v33  ;;  %14082 = vmatprep.mubr.msk.f32.mxu0 %vm63_vm1, %v516_v9 }
  0x4a   :  { %9753 = vst.msk [vmem:[#allocation2 + $0xfb] sm:$0x7] %vm9727_vm3, %v19194_v55  ;;  %9754 = vst.msk [vmem:[#allocation2 + $0x10b] sm:$0x7] %vm9727_vm3, %v19194_v55  ;;  %v16667_v10 = vld [vmem:[#allocation2 + $0x136] sm:$0xff]  ;;  %v743_v46 = vld [vmem:[#allocation2 + $0x143] sm:$0xff]  ;;  %14020 = vmatprep.mubr.msk.f32.mxu1 %vm63_vm1, %v108_v13 }
  0x4b   :  { %1918 = vst.msk [vmem:[#allocation2 + $0x109] sm:$0x1] %vm1885_vm2, %v19194_v55  ;;  %1919 = vst.msk [vmem:[#allocation2 + $0x119] sm:$0x1] %vm1885_vm2, %v19194_v55  ;;  %v517_v37 = vld [vmem:[#allocation2 + $0x152] sm:$0xff]  ;;  %v16673_v18 = vld [vmem:[#allocation2 + $0x144] sm:$0xff] }
  0x4c   :  { %9755 = vst.msk [vmem:[#allocation2 + $0x11b] sm:$0x7] %vm9727_vm3, %v19194_v55  ;;  %19202 = vst [vmem:[#allocation31_spill] sm:$0xff] %v16656_v29  ;;  %v744_v29 = vld [vmem:[#allocation2 + $0x153] sm:$0xff]  ;;  %v16681_v50 = vld [vmem:[#allocation2 + $0x146] sm:$0xff]  ;;  %14083 = vmatmul.mubr.msk.f32.gmra.mrb[14].mxu0 %vm63_vm1, %v517_v37 }
  0x4d   :  { %1920 = vst.msk [vmem:[#allocation2 + $0x129] sm:$0x1] %vm1885_vm2, %v19194_v55  ;;  %19203 = vst [vmem:[#allocation32_spill] sm:$0xff] %v16667_v10  ;;  %v16676_v22 = vld [vmem:[#allocation2 + $0x154] sm:$0xff]  ;;  %v16679_v10 = vld [vmem:[#allocation2 + $0x145] sm:$0xff] }
  0x4e   :  { %9756 = vst.msk [vmem:[#allocation2 + $0x12b] sm:$0x7] %vm9727_vm3, %v19194_v55  ;;  %9757 = vst.msk [vmem:[#allocation2 + $0x13b] sm:$0x7] %vm9727_vm3, %v19194_v55  ;;  %v109_v36 = vld [vmem:[#allocation2 + $0x111] sm:$0xff]  ;;  %v729_v33 = vld [vmem:[#allocation2 + $0x3] sm:$0xff] }
  0x4f   :  { %1921 = vst.msk [vmem:[#allocation2 + $0x139] sm:$0x1] %vm1885_vm2, %v19194_v55  ;;  %19204 = vst [vmem:[#allocation33_spill] sm:$0xff] %v16681_v50  ;;  %v16685_v35 = vld [vmem:[#allocation2 + $0x155] sm:$0xff]  ;;  %v110_v27 = vld [vmem:[#allocation2 + $0x121] sm:$0xff]  ;;  %14021 = vmatmul.mubr.msk.f32.gmra.mrb[10].mxu1 %vm63_vm1, %v109_v36  ;;  %14089 = vmatprep.mubr.msk.f32.mxu0 %vm63_vm1, %v729_v33 }
  0x50   :  { %1922 = vst.msk [vmem:[#allocation2 + $0x149] sm:$0x1] %vm1885_vm2, %v19194_v55  ;;  %v16691_v11 = vld [vmem:[#allocation2 + $0x156] sm:$0xff]  ;;  %14023 = vmatprep.mubr.msk.f32.mxu1 %vm63_vm1, %v110_v27  ;;  %v112_v26 = vld [vmem:[#allocation2 + $0x141] sm:$0xff]  ;;  %14090 = vmatmul.mubr.msk.f32.vlgmr.msra.gmra.mrb[0].mxu0 %vm63_vm1, %v16465_v56 }
  0x51   :  { %9758 = vst.msk [vmem:[#allocation2 + $0x14b] sm:$0x7] %vm9727_vm3, %v19194_v55  ;;  %19205 = vst [vmem:[#allocation34_spill] sm:$0xff] %v16691_v11  ;;  %v1199_v9 = vld [vmem:[%s19135_s1 + $0x50] sm:$0xff]  ;;  %v1200_v13 = vld [vmem:[%s19135_s1 + $0x58] sm:$0xff]  ;;  %15432 = vmatpush3.bf16.msra.mxu0 %v16444_v39  ;;  %14092 = vmatprep.mubr.msk.f32.mxu0 %vm63_vm1, %v16477_v61 }
  0x52   :  { %1923 = vst.msk [vmem:[#allocation2 + $0x159] sm:$0x1] %vm1885_vm2, %v19194_v55  ;;  %v111_v11 = vld [vmem:[#allocation2 + $0x131] sm:$0xff]  ;;  %v15433_v50 = vpack.c.bf16 %v1200_v13, %v1199_v9  ;;  %v88_v36 = vld [vmem:[#allocation2 + $0xe0] sm:$0xff]  ;;  %v1427_v61 = vld [vmem:[%s19135_s1 + $0x68] sm:$0xff] }
  0x53   :  { %9759 = vst.msk [vmem:[#allocation2 + $0x15b] sm:$0x7] %vm9727_vm3, %v19194_v55  ;;  %14024 = vmatmul.mubr.msk.f32.gmra.mrb[12].mxu1 %vm63_vm1, %v111_v11  ;;  %v113_v37 = vld [vmem:[#allocation2 + $0x151] sm:$0xff]  ;;  %v737_v39 = vld [vmem:[#allocation2 + $0xe3] sm:$0xff] }
  0x54   :  { %15434 = vmatprep.subr.bf16.mxu0 %v15433_v50  ;;  %14026 = vmatprep.mubr.msk.f32.mxu1 %vm63_vm1, %v112_v26  ;;  %v1426_v56 = vld [vmem:[%s19135_s1 + $0x60] sm:$0xff]  ;;  %v1976_v27 = vld [vmem:[%s19135_s1 + $0x88] sm:$0xff]  ;;  %1875 = vst.msk [vmem:[#allocation2] sm:$0xff] %vm1874_vm4, %v19194_v55  ;;  %1878 = vst.msk [vmem:[#allocation2 + $0xe0] sm:$0xff] %vm1874_vm4, %v19194_v55 }
  0x55   :  { %14093 = vmatmul.mubr.msk.f32.gmra.mrb[2].mxu0 %vm63_vm1, %v16479_v62  ;;  %1881 = vst.msk [vmem:[#allocation2 + $0x90] sm:$0xff] %vm1874_vm4, %v19194_v55  ;;  %1883 = vst.msk [vmem:[#allocation2 + $0x170] sm:$0xff] %vm1874_vm4, %v19194_v55 }
  0x56   :  { %14095 = vmatprep.mubr.msk.f32.mxu0 %vm63_vm1, %v16492_v15  ;;  %v19220_v62 = vld [vmem:[#allocation33_spill] sm:$0xff]  ;;  %3990 = vst.msk [vmem:[#allocation2 + $0xb0] sm:$0xff] %vm1874_vm4, %v19194_v55  ;;  %3991 = vst.msk [vmem:[#allocation2 + $0xc0] sm:$0xff] %vm1874_vm4, %v19194_v55 }
  0x57   :  { %14027 = vmatmul.mubr.msk.f32.gmra.mrb[14].mxu1 %vm63_vm1, %v113_v37  ;;  %3992 = vst.msk [vmem:[#allocation2 + $0xd0] sm:$0xff] %vm1874_vm4, %v19194_v55  ;;  %3993 = vst.msk [vmem:[#allocation2 + $0x190] sm:$0xff] %vm1874_vm4, %v19194_v55 }
  0x58   :  { %14045 = vmatprep.mubr.msk.f32.mxu1 %vm63_vm1, %v88_v36  ;;  %3994 = vst.msk [vmem:[#allocation2 + $0x1a0] sm:$0xff] %vm1874_vm4, %v19194_v55  ;;  %3995 = vst.msk [vmem:[#allocation2 + $0x1b0] sm:$0xff] %vm1874_vm4, %v19194_v55 }
  0x59   :  { %14096 = vmatmul.mubr.msk.f32.gmra.mrb[4].mxu0 %vm63_vm1, %v16508_v30  ;;  %1877 = vst.msk [vmem:[#allocation2 + $0x8] sm:$0x3] %vm1876_vm5, %v19194_v55  ;;  %1879 = vst.msk [vmem:[#allocation2 + $0xe8] sm:$0x3] %vm1876_vm5, %v19194_v55 }
  0x5a   :  { %14098 = vmatprep.mubr.msk.f32.mxu0 %vm63_vm1, %v16533_v38  ;;  %1882 = vst.msk [vmem:[#allocation2 + $0x98] sm:$0x3] %vm1876_vm5, %v19194_v55  ;;  %1884 = vst.msk [vmem:[#allocation2 + $0x178] sm:$0x3] %vm1876_vm5, %v19194_v55 }
  0x5b   :  { %14046 = vmatmul.mubr.msk.f32.vlgmr.msra.gmra.mrb[8].mxu1 %vm63_vm1, %v16490_v8  ;;  %1886 = vst.msk [vmem:[#allocation2] sm:$0x1] %vm1885_vm2, %v19194_v55  ;;  %1895 = vst.msk [vmem:[#allocation2 + $0x90] sm:$0x1] %vm1885_vm2, %v19194_v55 }
  0x5c   :  { %14048 = vmatprep.mubr.msk.f32.mxu1 %vm63_vm1, %v16504_v28  ;;  %1896 = vst.msk [vmem:[#allocation2 + $0xe0] sm:$0x1] %vm1885_vm2, %v19194_v55  ;;  %1905 = vst.msk [vmem:[#allocation2 + $0x170] sm:$0x1] %vm1885_vm2, %v19194_v55 }
  0x5d   :  { %14099 = vmatmul.mubr.msk.f32.gmra.mrb[6].mxu0 %vm63_vm1, %v16535_v40  ;;  %1906 = vst.msk [vmem:[#allocation2 + $0x9] sm:$0x1] %vm1885_vm2, %v19194_v55  ;;  %1915 = vst.msk [vmem:[#allocation2 + $0x99] sm:$0x1] %vm1885_vm2, %v19194_v55 }
  0x5e   :  { %14101 = vmatprep.mubr.msk.f32.mxu0 %vm63_vm1, %v737_v39  ;;  %1916 = vst.msk [vmem:[#allocation2 + $0xe9] sm:$0x1] %vm1885_vm2, %v19194_v55  ;;  %1925 = vst.msk [vmem:[#allocation2 + $0x179] sm:$0x1] %vm1885_vm2, %v19194_v55 }
  0x5f   :  { %14049 = vmatmul.mubr.msk.f32.gmra.mrb[10].mxu1 %vm63_vm1, %v16524_v34 }
  0x60   :  { %14051 = vmatprep.mubr.msk.f32.mxu1 %vm63_vm1, %v16560_v48 }
  0x61   :  { %14102 = vmatmul.mubr.msk.f32.gmra.mrb[8].mxu0 %vm63_vm1, %v16567_v51 }
  0x62   :  { %14104 = vmatprep.mubr.msk.f32.mxu0 %vm63_vm1, %v16569_v52 }
  0x63   :  { %14052 = vmatmul.mubr.msk.f32.gmra.mrb[12].mxu1 %vm63_vm1, %v16562_v49 }
  0x64   :  { %14054 = vmatprep.mubr.msk.f32.mxu1 %vm63_vm1, %v16596_v6 }
  0x65   :  { %14105 = vmatmul.mubr.msk.f32.gmra.mrb[10].mxu0 %vm63_vm1, %v16571_v53 }
  0x66   :  { %14107 = vmatprep.mubr.msk.f32.mxu0 %vm63_vm1, %v16600_v20  ;;  %v19208_v20 = vld [vmem:[#allocation21_spill] sm:$0xff] }
  0x67   :  { %14055 = vmatmul.mubr.msk.f32.gmra.mrb[14].mxu1 %vm63_vm1, %v16598_v19  ;;  %v15437_v19 = vpack.c.bf16 %v1427_v61, %v1426_v56 }
  0x69   :  { %14108 = vmatmul.mubr.msk.f32.gmra.mrb[12].mxu0 %vm63_vm1, %v16618_v12  ;;  %v1658_v12 = vld [vmem:[%s19135_s1 + $0x70] sm:$0xff] }
  0x6a   :  { %14110 = vmatprep.mubr.msk.f32.mxu0 %vm63_vm1, %v743_v46 }
  0x6d   :  { %14111 = vmatmul.mubr.msk.f32.gmra.mrb[14].mxu0 %vm63_vm1, %v744_v29 }
  0x6e   :  { %14117 = vmatprep.mubr.msk.f32.mxu0 %vm63_vm1, %v16467_v57  ;;  %v19216_v57 = vld [vmem:[#allocation29_spill] sm:$0xff] }
  0x71   :  { %14118 = vmatmul.mubr.msk.f32.vlgmr.msra.gmra.mrb[0].mxu0 %vm63_vm1, %v16469_v58  ;;  %v19217_v58 = vld [vmem:[#allocation30_spill] sm:$0xff] }
  0x72   :  { %15436 = vmatpush3.bf16.msra.mxu0 %v15433_v50  ;;  %14120 = vmatprep.mubr.msk.f32.mxu0 %vm63_vm1, %v16481_v63  ;;  %v19221_v63 = vld [vmem:[#allocation34_spill] sm:$0xff] }
  0x73   :  { %15438 = vmatprep.subr.bf16.mxu0 %v15437_v19 }
  0x75   :  { %14121 = vmatmul.mubr.msk.f32.gmra.mrb[2].mxu0 %vm63_vm1, %v16483_v0 }
  0x76   :  { %14123 = vmatprep.mubr.msk.f32.mxu0 %vm63_vm1, %v16494_v16 }
  0x79   :  { %14124 = vmatmul.mubr.msk.f32.gmra.mrb[4].mxu0 %vm63_vm1, %v16510_v31 }
  0x7a   :  { %14126 = vmatprep.mubr.msk.f32.mxu0 %vm63_vm1, %v16537_v41 }
  0x7d   :  { %14127 = vmatmul.mubr.msk.f32.gmra.mrb[6].mxu0 %vm63_vm1, %v16539_v42 }
  0x7e   :  { %14129 = vmatprep.mubr.msk.f32.mxu0 %vm63_vm1, %v16541_v43  ;;  %v12335_v43 = vld [vmem:[%s19137_s2] ss:$0 sm:$0xff] }
  0x81   :  { %14130 = vmatmul.mubr.msk.f32.gmra.mrb[8].mxu0 %vm63_vm1, %v16573_v54 }
  0x82   :  { %14132 = vmatprep.mubr.msk.f32.mxu0 %vm63_vm1, %v16575_v5 }
  0x85   :  { %14133 = vmatmul.mubr.msk.f32.gmra.mrb[10].mxu0 %vm63_vm1, %v16577_v23  ;;  %v19214_v23 = vld [vmem:[#allocation27_spill] sm:$0xff] }
  0x86   :  { %14135 = vmatprep.mubr.msk.f32.mxu0 %vm63_vm1, %v16602_v17 }
  0x89   :  { %14136 = vmatmul.mubr.msk.f32.gmra.mrb[12].mxu0 %vm63_vm1, %v16638_v7  ;;  %v1659_v7 = vld [vmem:[%s19135_s1 + $0x78] sm:$0xff] }
  0x8a   :  { %14138 = vmatprep.mubr.msk.f32.mxu0 %vm63_vm1, %v16673_v18  ;;  %v15441_v17 = vpack.c.bf16 %v1659_v7, %v1658_v12  ;;  %v19206_v18 = vld [vmem:[#allocation19_spill] sm:$0xff] }
  0x8c   :  { %15442 = vmatprep.subr.bf16.mxu1 %v15441_v17 }
  0x8d   :  { %14139 = vmatmul.mubr.msk.f32.gmra.mrb[14].mxu0 %vm63_vm1, %v16676_v22  ;;  %15444 = vmatpush3.bf16.msra.mxu1 %v15441_v17  ;;  %v19213_v22 = vld [vmem:[#allocation26_spill] sm:$0xff] }
  0x8e   :  { %14145 = vmatprep.mubr.msk.f32.mxu0 %vm63_vm1, %v16471_v59  ;;  %v19218_v59 = vld [vmem:[#allocation31_spill] sm:$0xff]  ;;  %14225 = vmatprep.subr.mxu1 %v1976_v27 }
  0x91   :  { %14146 = vmatmul.mubr.msk.f32.vlgmr.msra.gmra.mrb[0].mxu0 %vm63_vm1, %v16473_v60  ;;  %v19219_v60 = vld [vmem:[#allocation32_spill] sm:$0xff] }
  0x92   :  { %15440 = vmatpush3.bf16.msra.mxu0 %v15437_v19  ;;  %14148 = vmatprep.mubr.msk.f32.mxu0 %vm63_vm1, %v16485_v1 }
  0x95   :  { %14149 = vmatmul.mubr.msk.f32.gmra.mrb[2].mxu0 %vm63_vm1, %v16487_v4 }
  0x96   :  { %14151 = vmatprep.mubr.msk.f32.mxu0 %vm63_vm1, %v16496_v25 }
  0x99   :  { %14152 = vmatmul.mubr.msk.f32.gmra.mrb[4].mxu0 %vm63_vm1, %v16512_v32 }
  0x9a   :  { %14154 = vmatprep.mubr.msk.f32.mxu0 %vm63_vm1, %v16544_v44 }
  0x9d   :  { %14155 = vmatmul.mubr.msk.f32.gmra.mrb[6].mxu0 %vm63_vm1, %v16546_v45 }
  0x9e   :  { %14157 = vmatprep.mubr.msk.f32.mxu0 %vm63_vm1, %v16548_v47 }
  0xa1   :  { %14158 = vmatmul.mubr.msk.f32.gmra.mrb[8].mxu0 %vm63_vm1, %v16580_v3  ;;  %v19207_v3 = vld [vmem:[#allocation20_spill] sm:$0xff] }
  0xa2   :  { %14160 = vmatprep.mubr.msk.f32.mxu0 %vm63_vm1, %v16582_v24  ;;  %v19215_v24 = vld [vmem:[#allocation28_spill] sm:$0xff] }
  0xa5   :  { %14161 = vmatmul.mubr.msk.f32.gmra.mrb[10].mxu0 %vm63_vm1, %v16584_v21  ;;  %v19209_v21 = vld [vmem:[#allocation22_spill] sm:$0xff] }
  0xa6   :  { %14163 = vmatprep.mubr.msk.f32.mxu0 %vm63_vm1, %v16642_v14  ;;  %v19210_v14 = vld [vmem:[#allocation23_spill] sm:$0xff] }
  0xa9   :  { %14164 = vmatmul.mubr.msk.f32.gmra.mrb[12].mxu0 %vm63_vm1, %v16661_v2  ;;  %v19211_v2 = vld [vmem:[#allocation24_spill] sm:$0xff] }
  0xaa   :  { %14166 = vmatprep.mubr.msk.f32.mxu0 %vm63_vm1, %v16679_v10  ;;  %v19212_v10 = vld [vmem:[#allocation25_spill] sm:$0xff] }
  0xad   :  { %14167 = vmatmul.mubr.msk.f32.gmra.mrb[14].mxu0 %vm63_vm1, %v16685_v35 }
  0xae   :  { %14173 = vmatprep.mubr.msk.f32.mxu0 %vm63_vm1, %v19206_v18 }
  0xb1   :  { %14174 = vmatmul.mubr.msk.f32.vlgmr.msra.gmra.mrb[0].mxu0 %vm63_vm1, %v19207_v3 }
  0xb2   :  { %14176 = vmatprep.mubr.msk.f32.mxu0 %vm63_vm1, %v19208_v20 }
  0xb5   :  { %14177 = vmatmul.mubr.msk.f32.gmra.mrb[2].mxu0 %vm63_vm1, %v19209_v21 }
  0xb6   :  { %14179 = vmatprep.mubr.msk.f32.mxu0 %vm63_vm1, %v19210_v14 }
  0xb9   :  { %14180 = vmatmul.mubr.msk.f32.gmra.mrb[4].mxu0 %vm63_vm1, %v19211_v2 }
  0xba   :  { %14182 = vmatprep.mubr.msk.f32.mxu0 %vm63_vm1, %v19212_v10 }
  0xbd   :  { %14183 = vmatmul.mubr.msk.f32.gmra.mrb[6].mxu0 %vm63_vm1, %v19213_v22 }
  0xbe   :  { %14185 = vmatprep.mubr.msk.f32.mxu0 %vm63_vm1, %v19214_v23 }
  0xc1   :  { %14186 = vmatmul.mubr.msk.f32.gmra.mrb[8].mxu0 %vm63_vm1, %v19215_v24 }
  0xc2   :  { %14188 = vmatprep.mubr.msk.f32.mxu0 %vm63_vm1, %v19216_v57 }
  0xc5   :  { %14189 = vmatmul.mubr.msk.f32.gmra.mrb[10].mxu0 %vm63_vm1, %v19217_v58 }
  0xc6   :  { %14191 = vmatprep.mubr.msk.f32.mxu0 %vm63_vm1, %v19218_v59 }
  0xc9   :  { %14192 = vmatmul.mubr.msk.f32.gmra.mrb[12].mxu0 %vm63_vm1, %v19219_v60 }
  0xca   :  { %14194 = vmatprep.mubr.msk.f32.mxu0 %vm63_vm1, %v19220_v62 }
  0xcd   :  { %14195 = vmatmul.mubr.msk.f32.gmra.mrb[14].mxu0 %vm63_vm1, %v19221_v63 }
  0xf7   :  { %v14007_v0 = vpop.f32.mrb[0].mxu1 }
  0xf8   :  { %v230_v1 = vpop.f32.mrb[1].mxu1 }
  0xfb   :  { %v14010_v4 = vpop.f32.mrb[2].mxu1 }
  0xfc   :  { %v240_v8 = vpop.f32.mrb[3].mxu1 }
 0x100   :  { %v14013_v15 = vpop.f32.mrb[4].mxu1 }
 0x101   :  { %v250_v16 = vpop.f32.mrb[5].mxu1 }
 0x107   :  { %v14016_v25 = vpop.f32.mrb[6].mxu1 }
 0x108   :  { %v260_v26 = vpop.f32.mrb[7].mxu1 }
 0x12e   :  { %v14047_v28 = vpop.f32.mrb[8].mxu1 }
 0x12f   :  { %v463_v30 = vpop.f32.mrb[9].mxu1 }
 0x132   :  { %v14050_v31 = vpop.f32.mrb[10].mxu1 }
 0x133   :  { %v473_v32 = vpop.f32.mrb[11].mxu1 }
 0x136   :  { %v14053_v34 = vpop.f32.mrb[12].mxu1 }
 0x137   :  { %v483_v35 = vpop.f32.mrb[13].mxu1 }
 0x13a   :  { %v14056_v38 = vpop.f32.mrb[14].mxu1 }
 0x13b   :  { %v493_v40 = vpop.f32.mrb[15].mxu1 }
 0x184   :  { %v14175_v41 = vpop.f32.mrb[0].mxu0 }
 0x185   :  { %v15483_v42 = vadd.f32 %v14175_v41, %v14007_v0  ;;  %v1542_v44 = vpop.f32.mrb[1].mxu0 }
 0x186   :  { %v15484_v45 = vadd.f32 %v1542_v44, %v230_v1 }
 0x187   :  { %v1643_v49 = vadd.f32 %v15483_v42, %v12335_v43 }
 0x188   :  { %v1642_v47 = vadd.f32 %v15484_v45, %v12335_v43  ;;  %v14178_v48 = vpop.f32.mrb[2].mxu0 }
 0x189   :  { %v15485_v50 = vadd.f32 %v14178_v48, %v14010_v4  ;;  %v1552_v51 = vpop.f32.mrb[3].mxu0 }
 0x18a   :  { %v15486_v52 = vadd.f32 %v1552_v51, %v240_v8  ;;  %14201 = vmatprep.mubr.msk.f32.mxu1 %vm63_vm1, %v1642_v47  ;;  %v1960_v8 = vld [vmem:[#allocation2 + $0x1] sm:$0xff] }
 0x18b   :  { %14202 = vmatmul.mubr.msk.f32.vlgmr.msra.gmra.mrb[16].mxu1 %vm63_vm1, %v1643_v49  ;;  %v1645_v5 = vadd.f32 %v15485_v50, %v12335_v43 }
 0x18c   :  { %v1644_v53 = vadd.f32 %v15486_v52, %v12335_v43  ;;  %v14181_v54 = vpop.f32.mrb[4].mxu0  ;;  %14226 = vmatpush3.msra.mxu1 %v1976_v27  ;;  %v16943_v27 = vld [vmem:[#allocation2 + $0xe0] sm:$0xff] }
 0x18d   :  { %v15487_v6 = vadd.f32 %v14181_v54, %v14013_v15  ;;  %v1562_v29 = vpop.f32.mrb[5].mxu0  ;;  %v1959_v15 = vld [vmem:[%s19135_s1 + $0x80] sm:$0xff] }
 0x18e   :  { %v15488_v46 = vadd.f32 %v1562_v29, %v250_v16  ;;  %14204 = vmatprep.mubr.msk.f32.mxu1 %vm63_vm1, %v1644_v53  ;;  %14251 = vmatprep.subr.mxu1 %v1959_v15  ;;  %v16931_v16 = vld [vmem:[#allocation2] sm:$0xff]  ;;  %v16971_v53 = vld [vmem:[%s19135_s1 + $0x90] sm:$0xff] }
 0x18f   :  { %14205 = vmatmul.mubr.msk.f32.gmra.mrb[18].mxu1 %vm63_vm1, %v1645_v5  ;;  %v1647_v9 = vadd.f32 %v15487_v6, %v12335_v43 }
 0x190   :  { %v1646_v11 = vadd.f32 %v15488_v46, %v12335_v43  ;;  %v14184_v33 = vpop.f32.mrb[6].mxu0 }
 0x191   :  { %v15489_v13 = vadd.f32 %v14184_v33, %v14016_v25  ;;  %v1572_v37 = vpop.f32.mrb[7].mxu0  ;;  %v16933_v25 = vld [vmem:[#allocation2 + $0x2] sm:$0xff] }
 0x192   :  { %v15490_v36 = vadd.f32 %v1572_v37, %v260_v26  ;;  %14207 = vmatprep.mubr.msk.f32.mxu1 %vm63_vm1, %v1646_v11  ;;  %3983 = vst.msk [vmem:[#allocation2] sm:$0xff] %vm1874_vm4, %v19194_v55  ;;  %v16941_v26 = vld [vmem:[#allocation2 + $0xe1] sm:$0xff] }
 0x193   :  { %14208 = vmatmul.mubr.msk.f32.gmra.mrb[20].mxu1 %vm63_vm1, %v1647_v9  ;;  %v1649_v61 = vadd.f32 %v15489_v13, %v12335_v43  ;;  %7625 = vst.msk [vmem:[#allocation2 + $0x8] sm:$0x3] %vm1876_vm5, %v19194_v55 }
 0x194   :  { %v1648_v39 = vadd.f32 %v15490_v36, %v12335_v43  ;;  %v14187_v56 = vpop.f32.mrb[8].mxu0  ;;  %7652 = vst.msk [vmem:[#allocation2 + $0x9] sm:$0x1] %vm1885_vm2, %v19194_v55 }
 0x195   :  { %v15491_v19 = vadd.f32 %v14187_v56, %v14047_v28  ;;  %v1582_v12 = vpop.f32.mrb[9].mxu0  ;;  %v16945_v28 = vld [vmem:[#allocation2 + $0xe2] sm:$0xff] }
 0x196   :  { %v15492_v7 = vadd.f32 %v1582_v12, %v463_v30  ;;  %14210 = vmatprep.mubr.msk.f32.mxu1 %vm63_vm1, %v1648_v39  ;;  %3986 = vst.msk [vmem:[#allocation2 + $0xe0] sm:$0xff] %vm1874_vm4, %v19194_v55  ;;  %v16956_v30 = vld [vmem:[%s19137_s2 + $0x1] ss:$0 sm:$0xff] }
 0x197   :  { %14211 = vmatmul.mubr.msk.f32.gmra.mrb[22].mxu1 %vm63_vm1, %v1649_v61  ;;  %v1651_v3 = vadd.f32 %v15491_v19, %v12335_v43  ;;  %7627 = vst.msk [vmem:[#allocation2 + $0xe8] sm:$0x3] %vm1876_vm5, %v19194_v55 }
 0x198   :  { %v1650_v17 = vadd.f32 %v15492_v7, %v12335_v43  ;;  %v14190_v18 = vpop.f32.mrb[10].mxu0  ;;  %7662 = vst.msk [vmem:[#allocation2 + $0xe9] sm:$0x1] %vm1885_vm2, %v19194_v55 }
 0x199   :  { %v15493_v20 = vadd.f32 %v14190_v18, %v14050_v31  ;;  %v1592_v21 = vpop.f32.mrb[11].mxu0 }
 0x19a   :  { %v15494_v14 = vadd.f32 %v1592_v21, %v473_v32  ;;  %14213 = vmatprep.mubr.msk.f32.mxu1 %vm63_vm1, %v1650_v17 }
 0x19b   :  { %14214 = vmatmul.mubr.msk.f32.gmra.mrb[24].mxu1 %vm63_vm1, %v1651_v3  ;;  %v1653_v22 = vadd.f32 %v15493_v20, %v12335_v43 }
 0x19c   :  { %v1652_v2 = vadd.f32 %v15494_v14, %v12335_v43  ;;  %v14193_v10 = vpop.f32.mrb[12].mxu0 }
 0x19d   :  { %v15495_v23 = vadd.f32 %v14193_v10, %v14053_v34  ;;  %v1602_v24 = vpop.f32.mrb[13].mxu0 }
 0x19e   :  { %v15496_v57 = vadd.f32 %v1602_v24, %v483_v35  ;;  %14216 = vmatprep.mubr.msk.f32.mxu1 %vm63_vm1, %v1652_v2 }
 0x19f   :  { %14217 = vmatmul.mubr.msk.f32.gmra.mrb[26].mxu1 %vm63_vm1, %v1653_v22  ;;  %v1655_v60 = vadd.f32 %v15495_v23, %v12335_v43 }
 0x1a0   :  { %v1654_v58 = vadd.f32 %v15496_v57, %v12335_v43  ;;  %v14196_v59 = vpop.f32.mrb[14].mxu0 }
 0x1a1   :  { %v15497_v62 = vadd.f32 %v14196_v59, %v14056_v38  ;;  %v1612_v63 = vpop.f32.mrb[15].mxu0 }
 0x1a2   :  { %v15498_v0 = vadd.f32 %v1612_v63, %v493_v40  ;;  %14219 = vmatprep.mubr.msk.f32.mxu1 %vm63_vm1, %v1654_v58 }
 0x1a3   :  { %14220 = vmatmul.mubr.msk.f32.gmra.mrb[28].mxu1 %vm63_vm1, %v1655_v60  ;;  %v1657_v4 = vadd.f32 %v15497_v62, %v12335_v43 }
 0x1a4   :  { %v1656_v1 = vadd.f32 %v15498_v0, %v12335_v43 }
 0x1a6   :  { %14222 = vmatprep.mubr.msk.f32.mxu1 %vm63_vm1, %v1656_v1 }
 0x1a7   :  { %14223 = vmatmul.mubr.msk.f32.gmra.mrb[30].mxu1 %vm63_vm1, %v1657_v4 }
 0x1a8   :  { %14227 = vmatprep.mubr.msk.f32.mxu1 %vm1874_vm4, %v1960_v8 }
 0x25e   :  { %v14203_v31 = vpop.f32.mrb[16].mxu1 }
 0x25f   :  { %v1785_v32 = vadd.f32 %v14203_v31, %v16956_v30  ;;  %v1779_v34 = vpop.f32.mrb[17].mxu1 }
 0x260   :  { %v1780_v35 = vadd.f32 %v16956_v30, %v1779_v34 }
 0x261   :  { %v1859_v38 = vmax.f32 %v1785_v32, 0.0 }
 0x262   :  { %v1858_v40 = vmax.f32 %v1780_v35, 0.0  ;;  %v14206_v41 = vpop.f32.mrb[18].mxu1 }
 0x263   :  { %v1795_v42 = vadd.f32 %v14206_v41, %v16956_v30  ;;  %v1789_v43 = vpop.f32.mrb[19].mxu1  ;;  %1928 = vst.msk [vmem:[#allocation2 + $0x21] sm:$0xff] %vm1874_vm4, %v1859_v38 }
 0x264   :  { %v1790_v44 = vadd.f32 %v16956_v30, %v1789_v43  ;;  %1927 = vst.msk [vmem:[#allocation2 + $0x11] sm:$0xff] %vm1874_vm4, %v1858_v40 }
 0x265   :  { %v1861_v45 = vmax.f32 %v1795_v42, 0.0 }
 0x266   :  { %v1860_v47 = vmax.f32 %v1790_v44, 0.0  ;;  %v14209_v48 = vpop.f32.mrb[20].mxu1 }
 0x267   :  { %v1805_v49 = vadd.f32 %v14209_v48, %v16956_v30  ;;  %v1799_v50 = vpop.f32.mrb[21].mxu1  ;;  %1930 = vst.msk [vmem:[#allocation2 + $0x41] sm:$0xff] %vm1874_vm4, %v1861_v45 }
 0x268   :  { %v1800_v51 = vadd.f32 %v16956_v30, %v1799_v50  ;;  %1929 = vst.msk [vmem:[#allocation2 + $0x31] sm:$0xff] %vm1874_vm4, %v1860_v47 }
 0x269   :  { %v1863_v52 = vmax.f32 %v1805_v49, 0.0 }
 0x26a   :  { %v1862_v54 = vmax.f32 %v1800_v51, 0.0  ;;  %v14212_v5 = vpop.f32.mrb[22].mxu1  ;;  %v16973_v6 = vld [vmem:[#allocation2 + $0x21] sm:$0xff] }
 0x26b   :  { %v16975_v29 = vld [vmem:[#allocation2 + $0x20] sm:$0xff]  ;;  %v1815_v11 = vadd.f32 %v14212_v5, %v16956_v30  ;;  %1932 = vst.msk [vmem:[#allocation2 + $0x61] sm:$0xff] %vm1874_vm4, %v1863_v52  ;;  %v1809_v33 = vpop.f32.mrb[23].mxu1  ;;  %v16981_v9 = vld [vmem:[#allocation2 + $0x11] sm:$0xff] }
 0x26c   :  { %v16977_v46 = vld [vmem:[#allocation2 + $0x22] sm:$0xff]  ;;  %v16983_v13 = vld [vmem:[#allocation2 + $0x10] sm:$0xff]  ;;  %1931 = vst.msk [vmem:[#allocation2 + $0x51] sm:$0xff] %vm1874_vm4, %v1862_v54  ;;  %v1810_v36 = vadd.f32 %v16956_v30, %v1809_v33  ;;  %14228 = vmatmul.mubr.msk.f32.vlgmr.msra.gmra.mrb[32].mxu1 %vm1874_vm4, %v16981_v9 }
 0x26d   :  { %v16985_v37 = vld [vmem:[#allocation2 + $0x12] sm:$0xff]  ;;  %3985 = vst.msk [vmem:[#allocation2 + $0x20] sm:$0xff] %vm1874_vm4, %v19194_v55  ;;  %v1865_v39 = vmax.f32 %v1815_v11, 0.0  ;;  %14252 = vmatpush3.msra.mxu1 %v1959_v15  ;;  %14230 = vmatprep.mubr.msk.f32.mxu1 %vm1874_vm4, %v16973_v6 }
 0x26e   :  { %7654 = vst.msk [vmem:[#allocation2 + $0x29] sm:$0x1] %vm1885_vm2, %v19194_v55  ;;  %7653 = vst.msk [vmem:[#allocation2 + $0x19] sm:$0x1] %vm1885_vm2, %v19194_v55  ;;  %v1864_v56 = vmax.f32 %v1810_v36, 0.0  ;;  %v14215_v61 = vpop.f32.mrb[24].mxu1  ;;  %14277 = vmatprep.subr.mxu1 %v16971_v53 }
 0x26f   :  { %3984 = vst.msk [vmem:[#allocation2 + $0x10] sm:$0xff] %vm1874_vm4, %v19194_v55  ;;  %v17002_v19 = vld [vmem:[#allocation2 + $0x42] sm:$0xff]  ;;  %1934 = vst.msk [vmem:[#allocation2 + $0x81] sm:$0xff] %vm1874_vm4, %v1865_v39  ;;  %v1825_v12 = vadd.f32 %v14215_v61, %v16956_v30  ;;  %v1819_v7 = vpop.f32.mrb[25].mxu1  ;;  %v17006_v17 = vld [vmem:[#allocation2 + $0x31] sm:$0xff] }
 0x270   :  { %v17008_v18 = vld [vmem:[#allocation2 + $0x32] sm:$0xff]  ;;  %7656 = vst.msk [vmem:[#allocation2 + $0x49] sm:$0x1] %vm1885_vm2, %v19194_v55  ;;  %v1820_v3 = vadd.f32 %v16956_v30, %v1819_v7  ;;  %14231 = vmatmul.mubr.msk.f32.gmra.mrb[34].mxu1 %vm1874_vm4, %v17006_v17  ;;  %v17016_v20 = vld [vmem:[#allocation2 + $0x41] sm:$0xff] }
 0x271   :  { %1933 = vst.msk [vmem:[#allocation2 + $0x71] sm:$0xff] %vm1874_vm4, %v1864_v56  ;;  %v1867_v21 = vmax.f32 %v1825_v12, 0.0  ;;  %14233 = vmatprep.mubr.msk.f32.mxu1 %vm1874_vm4, %v17016_v20  ;;  %v2605_v61 = vld [vmem:[%s19135_s1 + $0x98] sm:$0xff]  ;;  %v17144_v12 = vld [vmem:[#allocation2 + $0x30] sm:$0xff]  ;;  %v17148_v7 = vld [vmem:[#allocation2 + $0x40] sm:$0xff] }
 0x272   :  { %7655 = vst.msk [vmem:[#allocation2 + $0x39] sm:$0x1] %vm1885_vm2, %v19194_v55  ;;  %v1866_v14 = vmax.f32 %v1820_v3, 0.0  ;;  %v14218_v2 = vpop.f32.mrb[26].mxu1  ;;  %v17022_v10 = vld [vmem:[#allocation2 + $0x62] sm:$0xff] }
 0x273   :  { %1936 = vst.msk [vmem:[#allocation2 + $0x101] sm:$0xff] %vm1874_vm4, %v1867_v21  ;;  %v1835_v22 = vadd.f32 %v14218_v2, %v16956_v30  ;;  %v1829_v23 = vpop.f32.mrb[27].mxu1  ;;  %v17026_v24 = vld [vmem:[#allocation2 + $0x51] sm:$0xff]  ;;  %v17036_v59 = vld [vmem:[#allocation2 + $0x61] sm:$0xff] }
 0x274   :  { %v17028_v57 = vld [vmem:[#allocation2 + $0x52] sm:$0xff]  ;;  %7658 = vst.msk [vmem:[#allocation2 + $0x69] sm:$0x1] %vm1885_vm2, %v19194_v55  ;;  %v1830_v58 = vadd.f32 %v16956_v30, %v1829_v23  ;;  %14234 = vmatmul.mubr.msk.f32.gmra.mrb[36].mxu1 %vm1874_vm4, %v17026_v24  ;;  %v2831_v23 = vld [vmem:[%s19135_s1 + $0xa0] sm:$0xff] }
 0x275   :  { %1935 = vst.msk [vmem:[#allocation2 + $0xf1] sm:$0xff] %vm1874_vm4, %v1866_v14  ;;  %v1869_v60 = vmax.f32 %v1835_v22, 0.0  ;;  %14236 = vmatprep.mubr.msk.f32.mxu1 %vm1874_vm4, %v17036_v59 }
 0x276   :  { %7657 = vst.msk [vmem:[#allocation2 + $0x59] sm:$0x1] %vm1885_vm2, %v19194_v55  ;;  %v1868_v62 = vmax.f32 %v1830_v58, 0.0  ;;  %v14221_v63 = vpop.f32.mrb[28].mxu1  ;;  %v17042_v0 = vld [vmem:[#allocation2 + $0x82] sm:$0xff]  ;;  %v3284_v58 = vld [vmem:[%s19135_s1 + $0xb0] sm:$0xff] }
 0x277   :  { %1938 = vst.msk [vmem:[#allocation2 + $0x121] sm:$0xff] %vm1874_vm4, %v1869_v60  ;;  %v1845_v1 = vadd.f32 %v14221_v63, %v16956_v30  ;;  %v1839_v4 = vpop.f32.mrb[29].mxu1  ;;  %v17283_v60 = vld [vmem:[#allocation2 + $0x92] sm:$0xff] }
 0x278   :  { %v17046_v8 = vld [vmem:[#allocation2 + $0x71] sm:$0xff]  ;;  %7660 = vst.msk [vmem:[#allocation2 + $0x89] sm:$0x1] %vm1885_vm2, %v19194_v55  ;;  %v1840_v31 = vadd.f32 %v16956_v30, %v1839_v4 }
 0x279   :  { %v17048_v15 = vld [vmem:[#allocation2 + $0x72] sm:$0xff]  ;;  %1937 = vst.msk [vmem:[#allocation2 + $0x111] sm:$0xff] %vm1874_vm4, %v1868_v62  ;;  %14237 = vmatmul.mubr.msk.f32.gmra.mrb[38].mxu1 %vm1874_vm4, %v17046_v8  ;;  %v1871_v32 = vmax.f32 %v1845_v1, 0.0  ;;  %v17287_v62 = vld [vmem:[#allocation2 + $0x81] sm:$0xff] }
 0x27a   :  { %7659 = vst.msk [vmem:[#allocation2 + $0x79] sm:$0x1] %vm1885_vm2, %v19194_v55  ;;  %14239 = vmatprep.mubr.msk.f32.mxu1 %vm1874_vm4, %v16941_v26  ;;  %v1870_v34 = vmax.f32 %v1840_v31, 0.0  ;;  %v14224_v35 = vpop.f32.mrb[30].mxu1  ;;  %v17060_v38 = vld [vmem:[#allocation2 + $0x101] sm:$0xff]  ;;  %v17160_v3 = vld [vmem:[#allocation2 + $0x70] sm:$0xff] }
 0x27b   :  { %v17062_v40 = vld [vmem:[#allocation2 + $0x100] sm:$0xff]  ;;  %1940 = vst.msk [vmem:[#allocation2 + $0x141] sm:$0xff] %vm1874_vm4, %v1871_v32  ;;  %v1855_v42 = vadd.f32 %v14224_v35, %v16956_v30  ;;  %v1849_v43 = vpop.f32.mrb[31].mxu1  ;;  %v17307_v63 = vld [vmem:[#allocation2 + $0x171] sm:$0xff] }
 0x27c   :  { %v17064_v41 = vld [vmem:[#allocation2 + $0x102] sm:$0xff]  ;;  %v17068_v44 = vld [vmem:[#allocation2 + $0xf1] sm:$0xff]  ;;  %1939 = vst.msk [vmem:[#allocation2 + $0x131] sm:$0xff] %vm1874_vm4, %v1870_v34  ;;  %v1850_v26 = vadd.f32 %v16956_v30, %v1849_v43 }
 0x27d   :  { %v17070_v45 = vld [vmem:[#allocation2 + $0xf0] sm:$0xff]  ;;  %3988 = vst.msk [vmem:[#allocation2 + $0x100] sm:$0xff] %vm1874_vm4, %v19194_v55  ;;  %14240 = vmatmul.mubr.msk.f32.gmra.mrb[40].mxu1 %vm1874_vm4, %v17068_v44  ;;  %v1873_v48 = vmax.f32 %v1855_v42, 0.0  ;;  %v3510_v32 = vld [vmem:[%s19135_s1 + $0xb8] sm:$0xff] }
 0x27e   :  { %v17072_v47 = vld [vmem:[#allocation2 + $0xf2] sm:$0xff]  ;;  %7664 = vst.msk [vmem:[#allocation2 + $0x109] sm:$0x1] %vm1885_vm2, %v19194_v55  ;;  %14242 = vmatprep.mubr.msk.f32.mxu1 %vm1874_vm4, %v17060_v38  ;;  %v1872_v49 = vmax.f32 %v1850_v26, 0.0  ;;  %v17088_v50 = vld [vmem:[#allocation2 + $0x122] sm:$0xff] }
 0x27f   :  { %3987 = vst.msk [vmem:[#allocation2 + $0xf0] sm:$0xff] %vm1874_vm4, %v19194_v55  ;;  %1942 = vst.msk [vmem:[#allocation2 + $0x161] sm:$0xff] %vm1874_vm4, %v1873_v48  ;;  %v17100_v52 = vld [vmem:[#allocation2 + $0x121] sm:$0xff]  ;;  %v17309_v1 = vld [vmem:[#allocation2 + $0x172] sm:$0xff] }
 0x280   :  { %7663 = vst.msk [vmem:[#allocation2 + $0xf9] sm:$0x1] %vm1885_vm2, %v19194_v55  ;;  %v17091_v51 = vld [vmem:[#allocation2 + $0x111] sm:$0xff]  ;;  %7666 = vst.msk [vmem:[#allocation2 + $0x129] sm:$0x1] %vm1885_vm2, %v19194_v55  ;;  %v17174_v14 = vld [vmem:[#allocation2 + $0x120] sm:$0xff] }
 0x281   :  { %v17093_v30 = vld [vmem:[#allocation2 + $0x112] sm:$0xff]  ;;  %1941 = vst.msk [vmem:[#allocation2 + $0x151] sm:$0xff] %vm1874_vm4, %v1872_v49  ;;  %14243 = vmatmul.mubr.msk.f32.gmra.mrb[42].mxu1 %vm1874_vm4, %v17091_v51 }
 0x282   :  { %7665 = vst.msk [vmem:[#allocation2 + $0x119] sm:$0x1] %vm1885_vm2, %v19194_v55  ;;  %14245 = vmatprep.mubr.msk.f32.mxu1 %vm1874_vm4, %v17100_v52  ;;  %v17106_v54 = vld [vmem:[#allocation2 + $0x142] sm:$0xff]  ;;  %v17170_v21 = vld [vmem:[#allocation2 + $0x110] sm:$0xff] }
 0x283   :  { %v17108_v5 = vld [vmem:[#allocation2 + $0x131] sm:$0xff]  ;;  %7668 = vst.msk [vmem:[#allocation2 + $0x149] sm:$0x1] %vm1885_vm2, %v19194_v55  ;;  %v17116_v33 = vld [vmem:[#allocation2 + $0x141] sm:$0xff] }
 0x284   :  { %v17110_v11 = vld [vmem:[#allocation2 + $0x132] sm:$0xff]  ;;  %7631 = vst.msk [vmem:[#allocation2 + $0x178] sm:$0x3] %vm1876_vm5, %v19194_v55 }
 0x285   :  { %14246 = vmatmul.mubr.msk.f32.gmra.mrb[44].mxu1 %vm1874_vm4, %v17108_v5  ;;  %7667 = vst.msk [vmem:[#allocation2 + $0x139] sm:$0x1] %vm1885_vm2, %v19194_v55  ;;  %v17178_v2 = vld [vmem:[#allocation2 + $0x130] sm:$0xff]  ;;  %7671 = vst.msk [vmem:[#allocation2 + $0x179] sm:$0x1] %vm1885_vm2, %v19194_v55 }
 0x286   :  { %14248 = vmatprep.mubr.msk.f32.mxu1 %vm1874_vm4, %v17116_v33  ;;  %v17122_v36 = vld [vmem:[#allocation2 + $0x162] sm:$0xff]  ;;  %v4046_v31 = vld [vmem:[%s19135_s1 + $0xd0] sm:$0xff] }
 0x287   :  { %7670 = vst.msk [vmem:[#allocation2 + $0x169] sm:$0x1] %vm1885_vm2, %v19194_v55  ;;  %v2830_v4 = vld [vmem:[#allocation2 + $0x161] sm:$0xff]  ;;  %14459 = vmatprep.subr.mxu0 %v4046_v31  ;;  %v3283_v34 = vld [vmem:[#allocation2 + $0x170] sm:$0xff] }
 0x288   :  { %v17124_v39 = vld [vmem:[#allocation2 + $0x151] sm:$0xff]  ;;  %14460 = vmatpush3.msra.mxu0 %v4046_v31 }
 0x289   :  { %v17126_v56 = vld [vmem:[#allocation2 + $0x152] sm:$0xff]  ;;  %14249 = vmatmul.mubr.msk.f32.gmra.mrb[46].mxu1 %vm1874_vm4, %v17124_v39 }
 0x28a   :  { %7669 = vst.msk [vmem:[#allocation2 + $0x159] sm:$0x1] %vm1885_vm2, %v19194_v55  ;;  %14253 = vmatprep.mubr.msk.f32.mxu1 %vm1874_vm4, %v16931_v16  ;;  %v17152_v16 = vld [vmem:[#allocation2 + $0x50] sm:$0xff] }
 0x28b   :  { %v17186_v22 = vld [vmem:[#allocation2 + $0x150] sm:$0xff] }
 0x28d   :  { %14254 = vmatmul.mubr.msk.f32.vlgmr.msra.gmra.mrb[32].mxu1 %vm1874_vm4, %v16983_v13 }
 0x28e   :  { %14278 = vmatpush3.msra.mxu1 %v16971_v53  ;;  %14256 = vmatprep.mubr.msk.f32.mxu1 %vm1874_vm4, %v16975_v29  ;;  %v17156_v53 = vld [vmem:[#allocation2 + $0x60] sm:$0xff] }
 0x28f   :  { %14303 = vmatprep.subr.mxu1 %v2605_v61 }
 0x291   :  { %14257 = vmatmul.mubr.msk.f32.gmra.mrb[34].mxu1 %vm1874_vm4, %v17144_v12 }
 0x292   :  { %14259 = vmatprep.mubr.msk.f32.mxu1 %vm1874_vm4, %v17148_v7 }
 0x295   :  { %14260 = vmatmul.mubr.msk.f32.gmra.mrb[36].mxu1 %vm1874_vm4, %v17152_v16 }
 0x296   :  { %14262 = vmatprep.mubr.msk.f32.mxu1 %vm1874_vm4, %v17156_v53 }
 0x299   :  { %14263 = vmatmul.mubr.msk.f32.gmra.mrb[38].mxu1 %vm1874_vm4, %v17160_v3 }
 0x29a   :  { %14265 = vmatprep.mubr.msk.f32.mxu1 %vm1874_vm4, %v16943_v27  ;;  %v17182_v27 = vld [vmem:[#allocation2 + $0x140] sm:$0xff] }
 0x29d   :  { %14266 = vmatmul.mubr.msk.f32.gmra.mrb[40].mxu1 %vm1874_vm4, %v17070_v45 }
 0x29e   :  { %14268 = vmatprep.mubr.msk.f32.mxu1 %vm1874_vm4, %v17062_v40 }
 0x2a1   :  { %14269 = vmatmul.mubr.msk.f32.gmra.mrb[42].mxu1 %vm1874_vm4, %v17170_v21 }
 0x2a2   :  { %14271 = vmatprep.mubr.msk.f32.mxu1 %vm1874_vm4, %v17174_v14 }
 0x2a5   :  { %14272 = vmatmul.mubr.msk.f32.gmra.mrb[44].mxu1 %vm1874_vm4, %v17178_v2 }
 0x2a6   :  { %14274 = vmatprep.mubr.msk.f32.mxu1 %vm1874_vm4, %v17182_v27 }
 0x2a9   :  { %14275 = vmatmul.mubr.msk.f32.gmra.mrb[46].mxu1 %vm1874_vm4, %v17186_v22 }
 0x2aa   :  { %14279 = vmatprep.mubr.msk.f32.mxu1 %vm1874_vm4, %v16933_v25  ;;  %v3057_v25 = vld [vmem:[%s19135_s1 + $0xa8] sm:$0xff] }
 0x2ad   :  { %14280 = vmatmul.mubr.msk.f32.vlgmr.msra.gmra.mrb[32].mxu1 %vm1874_vm4, %v16985_v37 }
 0x2ae   :  { %14304 = vmatpush3.msra.mxu1 %v2605_v61  ;;  %14282 = vmatprep.mubr.msk.f32.mxu1 %vm1874_vm4, %v16977_v46 }
 0x2af   :  { %14329 = vmatprep.subr.mxu1 %v2831_v23 }
 0x2b1   :  { %14283 = vmatmul.mubr.msk.f32.gmra.mrb[34].mxu1 %vm1874_vm4, %v17008_v18 }
 0x2b2   :  { %14285 = vmatprep.mubr.msk.f32.mxu1 %vm1874_vm4, %v17002_v19 }
 0x2b5   :  { %14286 = vmatmul.mubr.msk.f32.gmra.mrb[36].mxu1 %vm1874_vm4, %v17028_v57 }
 0x2b6   :  { %14288 = vmatprep.mubr.msk.f32.mxu1 %vm1874_vm4, %v17022_v10 }
 0x2b9   :  { %14289 = vmatmul.mubr.msk.f32.gmra.mrb[38].mxu1 %vm1874_vm4, %v17048_v15 }
 0x2ba   :  { %14291 = vmatprep.mubr.msk.f32.mxu1 %vm1874_vm4, %v16945_v28  ;;  %v17242_v28 = vld [vmem:[#allocation2 + $0x80] sm:$0xff] }
 0x2bd   :  { %14292 = vmatmul.mubr.msk.f32.gmra.mrb[40].mxu1 %vm1874_vm4, %v17072_v47 }
 0x2be   :  { %14294 = vmatprep.mubr.msk.f32.mxu1 %vm1874_vm4, %v17064_v41 }
 0x2c1   :  { %14295 = vmatmul.mubr.msk.f32.gmra.mrb[42].mxu1 %vm1874_vm4, %v17093_v30 }
 0x2c2   :  { %14297 = vmatprep.mubr.msk.f32.mxu1 %vm1874_vm4, %v17088_v50 }
 0x2c5   :  { %14298 = vmatmul.mubr.msk.f32.gmra.mrb[44].mxu1 %vm1874_vm4, %v17110_v11 }
 0x2c6   :  { %14300 = vmatprep.mubr.msk.f32.mxu1 %vm1874_vm4, %v17106_v54 }
 0x2c9   :  { %14301 = vmatmul.mubr.msk.f32.gmra.mrb[46].mxu1 %vm1874_vm4, %v17126_v56 }
 0x2ca   :  { %14305 = vmatprep.mubr.msk.f32.mxu1 %vm1874_vm4, %v16983_v13  ;;  %v17260_v13 = vld [vmem:[#allocation2 + $0x160] sm:$0xff] }
 0x2cd   :  { %14306 = vmatmul.mubr.msk.f32.vlgmr.msra.gmra.mrb[32].mxu1 %vm1874_vm4, %v16975_v29 }
 0x2ce   :  { %14330 = vmatpush3.msra.mxu1 %v2831_v23  ;;  %14308 = vmatprep.mubr.msk.f32.mxu1 %vm1874_vm4, %v17144_v12 }
 0x2cf   :  { %14355 = vmatprep.subr.mxu1 %v3057_v25 }
 0x2d1   :  { %14309 = vmatmul.mubr.msk.f32.gmra.mrb[34].mxu1 %vm1874_vm4, %v17148_v7 }
 0x2d2   :  { %14311 = vmatprep.mubr.msk.f32.mxu1 %vm1874_vm4, %v17152_v16 }
 0x2d5   :  { %14312 = vmatmul.mubr.msk.f32.gmra.mrb[36].mxu1 %vm1874_vm4, %v17156_v53 }
 0x2d6   :  { %14314 = vmatprep.mubr.msk.f32.mxu1 %vm1874_vm4, %v17160_v3 }
 0x2d9   :  { %14315 = vmatmul.mubr.msk.f32.gmra.mrb[38].mxu1 %vm1874_vm4, %v17242_v28 }
 0x2da   :  { %14317 = vmatprep.mubr.msk.f32.mxu1 %vm1874_vm4, %v17070_v45 }
 0x2dd   :  { %14318 = vmatmul.mubr.msk.f32.gmra.mrb[40].mxu1 %vm1874_vm4, %v17062_v40 }
 0x2de   :  { %14320 = vmatprep.mubr.msk.f32.mxu1 %vm1874_vm4, %v17170_v21 }
 0x2e1   :  { %14321 = vmatmul.mubr.msk.f32.gmra.mrb[42].mxu1 %vm1874_vm4, %v17174_v14 }
 0x2e2   :  { %14323 = vmatprep.mubr.msk.f32.mxu1 %vm1874_vm4, %v17178_v2 }
 0x2e5   :  { %14324 = vmatmul.mubr.msk.f32.gmra.mrb[44].mxu1 %vm1874_vm4, %v17182_v27 }
 0x2e6   :  { %14326 = vmatprep.mubr.msk.f32.mxu1 %vm1874_vm4, %v17186_v22 }
 0x2e9   :  { %14327 = vmatmul.mubr.msk.f32.gmra.mrb[46].mxu1 %vm1874_vm4, %v17260_v13 }
 0x2ea   :  { %14331 = vmatprep.mubr.msk.f32.mxu1 %vm1874_vm4, %v16981_v9  ;;  %v17281_v9 = vld [vmem:[#allocation2 + $0x91] sm:$0xff] }
 0x2eb   :  { %7629 = vst.msk [vmem:[#allocation2 + $0x98] sm:$0x3] %vm1876_vm5, %v19194_v55 }
 0x2ec   :  { %7661 = vst.msk [vmem:[#allocation2 + $0x99] sm:$0x1] %vm1885_vm2, %v19194_v55 }
 0x2ed   :  { %14332 = vmatmul.mubr.msk.f32.vlgmr.msra.gmra.mrb[32].mxu1 %vm1874_vm4, %v16973_v6 }
 0x2ee   :  { %14356 = vmatpush3.msra.mxu1 %v3057_v25  ;;  %14334 = vmatprep.mubr.msk.f32.mxu1 %vm1874_vm4, %v17006_v17 }
 0x2ef   :  { %14381 = vmatprep.subr.mxu1 %v3284_v58 }
 0x2f1   :  { %14335 = vmatmul.mubr.msk.f32.gmra.mrb[34].mxu1 %vm1874_vm4, %v17016_v20 }
 0x2f2   :  { %14337 = vmatprep.mubr.msk.f32.mxu1 %vm1874_vm4, %v17026_v24 }
 0x2f5   :  { %14338 = vmatmul.mubr.msk.f32.gmra.mrb[36].mxu1 %vm1874_vm4, %v17036_v59 }
 0x2f6   :  { %14340 = vmatprep.mubr.msk.f32.mxu1 %vm1874_vm4, %v17046_v8 }
 0x2f9   :  { %14341 = vmatmul.mubr.msk.f32.gmra.mrb[38].mxu1 %vm1874_vm4, %v17287_v62 }
 0x2fa   :  { %14343 = vmatprep.mubr.msk.f32.mxu1 %vm1874_vm4, %v17068_v44 }
 0x2fd   :  { %14344 = vmatmul.mubr.msk.f32.gmra.mrb[40].mxu1 %vm1874_vm4, %v17060_v38 }
 0x2fe   :  { %14346 = vmatprep.mubr.msk.f32.mxu1 %vm1874_vm4, %v17091_v51 }
 0x301   :  { %14347 = vmatmul.mubr.msk.f32.gmra.mrb[42].mxu1 %vm1874_vm4, %v17100_v52 }
 0x302   :  { %14349 = vmatprep.mubr.msk.f32.mxu1 %vm1874_vm4, %v17108_v5 }
 0x305   :  { %14350 = vmatmul.mubr.msk.f32.gmra.mrb[44].mxu1 %vm1874_vm4, %v17116_v33 }
 0x306   :  { %14352 = vmatprep.mubr.msk.f32.mxu1 %vm1874_vm4, %v17124_v39 }
 0x309   :  { %14353 = vmatmul.mubr.msk.f32.gmra.mrb[46].mxu1 %vm1874_vm4, %v2830_v4 }
 0x30a   :  { %14357 = vmatprep.mubr.msk.f32.mxu1 %vm1874_vm4, %v16985_v37  ;;  %v3736_v37 = vld [vmem:[%s19135_s1 + $0xc0] sm:$0xff] }
 0x30d   :  { %14358 = vmatmul.mubr.msk.f32.vlgmr.msra.gmra.mrb[32].mxu1 %vm1874_vm4, %v16977_v46 }
 0x30e   :  { %14382 = vmatpush3.msra.mxu1 %v3284_v58  ;;  %14360 = vmatprep.mubr.msk.f32.mxu1 %vm1874_vm4, %v17008_v18 }
 0x30f   :  { %14407 = vmatprep.subr.mxu1 %v3510_v32 }
 0x311   :  { %14361 = vmatmul.mubr.msk.f32.gmra.mrb[34].mxu1 %vm1874_vm4, %v17002_v19 }
 0x312   :  { %14363 = vmatprep.mubr.msk.f32.mxu1 %vm1874_vm4, %v17028_v57 }
 0x315   :  { %14364 = vmatmul.mubr.msk.f32.gmra.mrb[36].mxu1 %vm1874_vm4, %v17022_v10 }
 0x316   :  { %14366 = vmatprep.mubr.msk.f32.mxu1 %vm1874_vm4, %v17048_v15 }
 0x319   :  { %14367 = vmatmul.mubr.msk.f32.gmra.mrb[38].mxu1 %vm1874_vm4, %v17042_v0 }
 0x31a   :  { %14369 = vmatprep.mubr.msk.f32.mxu1 %vm1874_vm4, %v17072_v47 }
 0x31d   :  { %14370 = vmatmul.mubr.msk.f32.gmra.mrb[40].mxu1 %vm1874_vm4, %v17064_v41 }
 0x31e   :  { %14372 = vmatprep.mubr.msk.f32.mxu1 %vm1874_vm4, %v17093_v30 }
 0x321   :  { %14373 = vmatmul.mubr.msk.f32.gmra.mrb[42].mxu1 %vm1874_vm4, %v17088_v50 }
 0x322   :  { %14375 = vmatprep.mubr.msk.f32.mxu1 %vm1874_vm4, %v17110_v11 }
 0x325   :  { %14376 = vmatmul.mubr.msk.f32.gmra.mrb[44].mxu1 %vm1874_vm4, %v17106_v54 }
 0x326   :  { %14378 = vmatprep.mubr.msk.f32.mxu1 %vm1874_vm4, %v17126_v56 }
 0x329   :  { %14379 = vmatmul.mubr.msk.f32.gmra.mrb[46].mxu1 %vm1874_vm4, %v17122_v36 }
 0x32a   :  { %14383 = vmatprep.mubr.msk.f32.mxu1 %vm1874_vm4, %v16975_v29  ;;  %v3275_v29 = vld [vmem:[#allocation2 + $0x90] sm:$0xff] }
 0x32d   :  { %14384 = vmatmul.mubr.msk.f32.vlgmr.msra.gmra.mrb[32].mxu1 %vm1874_vm4, %v17144_v12 }
 0x32e   :  { %14408 = vmatpush3.msra.mxu1 %v3510_v32  ;;  %14386 = vmatprep.mubr.msk.f32.mxu1 %vm1874_vm4, %v17148_v7 }
 0x32f   :  { %14433 = vmatprep.subr.mxu1 %v3736_v37 }
 0x331   :  { %14387 = vmatmul.mubr.msk.f32.gmra.mrb[34].mxu1 %vm1874_vm4, %v17152_v16 }
 0x332   :  { %14389 = vmatprep.mubr.msk.f32.mxu1 %vm1874_vm4, %v17156_v53 }
 0x335   :  { %14390 = vmatmul.mubr.msk.f32.gmra.mrb[36].mxu1 %vm1874_vm4, %v17160_v3 }
 0x336   :  { %14392 = vmatprep.mubr.msk.f32.mxu1 %vm1874_vm4, %v17242_v28  ;;  %v17536_v28 = vld [vmem:[#allocation2 + $0xb0] sm:$0xff] }
 0x337   :  { %5808 = vst.msk [vmem:[#allocation2 + $0xb0] sm:$0xff] %vm63_vm1, %v19194_v55 }
 0x339   :  { %14393 = vmatmul.mubr.msk.f32.gmra.mrb[38].mxu1 %vm1874_vm4, %v3275_v29 }
 0x33a   :  { %14395 = vmatprep.mubr.msk.f32.mxu1 %vm1874_vm4, %v17062_v40 }
 0x33d   :  { %14396 = vmatmul.mubr.msk.f32.gmra.mrb[40].mxu1 %vm1874_vm4, %v17170_v21  ;;  %v19224_v21 = vld [vmem:[#allocation6_spill] sm:$0xff] }
 0x33e   :  { %14398 = vmatprep.mubr.msk.f32.mxu1 %vm1874_vm4, %v17174_v14 }
 0x341   :  { %14399 = vmatmul.mubr.msk.f32.gmra.mrb[42].mxu1 %vm1874_vm4, %v17178_v2  ;;  %v19225_v2 = vld [vmem:[#allocation5_spill] sm:$0xff] }
 0x342   :  { %14401 = vmatprep.mubr.msk.f32.mxu1 %vm1874_vm4, %v17182_v27 }
 0x345   :  { %14402 = vmatmul.mubr.msk.f32.gmra.mrb[44].mxu1 %vm1874_vm4, %v17186_v22 }
 0x346   :  { %14404 = vmatprep.mubr.msk.f32.mxu1 %vm1874_vm4, %v17260_v13 }
 0x349   :  { %14405 = vmatmul.mubr.msk.f32.gmra.mrb[46].mxu1 %vm1874_vm4, %v3283_v34 }
 0x34a   :  { %14409 = vmatprep.mubr.msk.f32.mxu1 %vm1874_vm4, %v16973_v6  ;;  %v17450_v6 = vld [vmem:[#allocation2 + $0x10] sm:$0xff] }
 0x34b   :  { %14461 = vmatprep.mubr.msk.f32.mxu0 %vm1874_vm4, %v17450_v6  ;;  %5803 = vst.msk [vmem:[#allocation2 + $0x10] sm:$0xff] %vm63_vm1, %v19194_v55 }
 0x34d   :  { %14410 = vmatmul.mubr.msk.f32.vlgmr.msra.gmra.mrb[32].mxu1 %vm1874_vm4, %v17006_v17  ;;  %v17465_v17 = vld [vmem:[#allocation2 + $0xf0] sm:$0xff] }
 0x34e   :  { %14434 = vmatpush3.msra.mxu1 %v3736_v37  ;;  %14412 = vmatprep.mubr.msk.f32.mxu1 %vm1874_vm4, %v17016_v20  ;;  %5806 = vst.msk [vmem:[#allocation2 + $0xf0] sm:$0xff] %vm63_vm1, %v19194_v55  ;;  %v17473_v20 = vld [vmem:[#allocation2] sm:$0xff] }
 0x34f   :  { %5802 = vst.msk [vmem:[#allocation2] sm:$0xff] %vm63_vm1, %v19194_v55 }
 0x351   :  { %14413 = vmatmul.mubr.msk.f32.gmra.mrb[34].mxu1 %vm1874_vm4, %v17026_v24  ;;  %v17483_v24 = vld [vmem:[#allocation2 + $0xe0] sm:$0xff] }
 0x352   :  { %14415 = vmatprep.mubr.msk.f32.mxu1 %vm1874_vm4, %v17036_v59  ;;  %5805 = vst.msk [vmem:[#allocation2 + $0xe0] sm:$0xff] %vm63_vm1, %v19194_v55 }
 0x355   :  { %14416 = vmatmul.mubr.msk.f32.gmra.mrb[36].mxu1 %vm1874_vm4, %v17046_v8 }
 0x356   :  { %14418 = vmatprep.mubr.msk.f32.mxu1 %vm1874_vm4, %v17287_v62 }
 0x359   :  { %14419 = vmatmul.mubr.msk.f32.gmra.mrb[38].mxu1 %vm1874_vm4, %v17281_v9 }
 0x35a   :  { %14421 = vmatprep.mubr.msk.f32.mxu1 %vm1874_vm4, %v17060_v38 }
 0x35d   :  { %14422 = vmatmul.mubr.msk.f32.gmra.mrb[40].mxu1 %vm1874_vm4, %v17091_v51 }
 0x35e   :  { %14424 = vmatprep.mubr.msk.f32.mxu1 %vm1874_vm4, %v17100_v52 }
 0x361   :  { %14425 = vmatmul.mubr.msk.f32.gmra.mrb[42].mxu1 %vm1874_vm4, %v17108_v5 }
 0x362   :  { %14427 = vmatprep.mubr.msk.f32.mxu1 %vm1874_vm4, %v17116_v33  ;;  %v19222_v33 = vld [vmem:[#allocation4_spill] sm:$0xff] }
 0x365   :  { %14428 = vmatmul.mubr.msk.f32.gmra.mrb[44].mxu1 %vm1874_vm4, %v17124_v39  ;;  %v19223_v39 = vld [vmem:[#allocation3_spill] sm:$0xff] }
 0x366   :  { %14430 = vmatprep.mubr.msk.f32.mxu1 %vm1874_vm4, %v2830_v4 }
 0x369   :  { %14431 = vmatmul.mubr.msk.f32.gmra.mrb[46].mxu1 %vm1874_vm4, %v17307_v63  ;;  %v19227_v63 = vld [vmem:[#allocation7_spill] sm:$0xff] }
 0x36a   :  { %14435 = vmatprep.mubr.msk.f32.mxu1 %vm1874_vm4, %v16977_v46  ;;  %v17454_v46 = vld [vmem:[#allocation2 + $0x20] sm:$0xff] }
 0x36b   :  { %14462 = vmatmul.mubr.msk.f32.vlgmr.msra.gmra.mrb[16].mxu0 %vm1874_vm4, %v17454_v46  ;;  %5804 = vst.msk [vmem:[#allocation2 + $0x20] sm:$0xff] %vm63_vm1, %v19194_v55 }
 0x36d   :  { %14436 = vmatmul.mubr.msk.f32.vlgmr.msra.gmra.mrb[32].mxu1 %vm1874_vm4, %v17008_v18  ;;  %v17467_v18 = vld [vmem:[#allocation2 + $0x100] sm:$0xff] }
 0x36e   :  { %14438 = vmatprep.mubr.msk.f32.mxu1 %vm1874_vm4, %v17002_v19  ;;  %v4029_v19 = vld [vmem:[%s19135_s1 + $0xc8] sm:$0xff]  ;;  %5807 = vst.msk [vmem:[#allocation2 + $0x100] sm:$0xff] %vm63_vm1, %v19194_v55 }
 0x36f   :  { %14485 = vmatprep.subr.mxu0 %v4029_v19 }
 0x370   :  { %14486 = vmatpush3.msra.mxu0 %v4029_v19  ;;  %v19228_v19 = vld [vmem:[#allocation10_spill] sm:$0xff] }
 0x371   :  { %14439 = vmatmul.mubr.msk.f32.gmra.mrb[34].mxu1 %vm1874_vm4, %v17028_v57  ;;  %v17490_v57 = vld [vmem:[%s19137_s2 + $0x2] ss:$0 sm:$0xff] }
 0x372   :  { %14441 = vmatprep.mubr.msk.f32.mxu1 %vm1874_vm4, %v17022_v10  ;;  %v17480_v10 = vld [vmem:[%s19135_s1 + $0xd8] sm:$0xff] }
 0x373   :  { %14511 = vmatprep.subr.mxu0 %v17480_v10 }
 0x375   :  { %14442 = vmatmul.mubr.msk.f32.gmra.mrb[36].mxu1 %vm1874_vm4, %v17048_v15 }
 0x376   :  { %14444 = vmatprep.mubr.msk.f32.mxu1 %vm1874_vm4, %v17042_v0 }
 0x379   :  { %14445 = vmatmul.mubr.msk.f32.gmra.mrb[38].mxu1 %vm1874_vm4, %v17283_v60  ;;  %v19226_v60 = vld [vmem:[#allocation8_spill] sm:$0xff] }
 0x37a   :  { %14447 = vmatprep.mubr.msk.f32.mxu1 %vm1874_vm4, %v17064_v41 }
 0x37d   :  { %14448 = vmatmul.mubr.msk.f32.gmra.mrb[40].mxu1 %vm1874_vm4, %v17093_v30 }
 0x37e   :  { %14450 = vmatprep.mubr.msk.f32.mxu1 %vm1874_vm4, %v17088_v50 }
 0x381   :  { %14451 = vmatmul.mubr.msk.f32.gmra.mrb[42].mxu1 %vm1874_vm4, %v17110_v11 }
 0x382   :  { %14453 = vmatprep.mubr.msk.f32.mxu1 %vm1874_vm4, %v17106_v54 }
 0x385   :  { %14454 = vmatmul.mubr.msk.f32.gmra.mrb[44].mxu1 %vm1874_vm4, %v17126_v56 }
 0x386   :  { %14456 = vmatprep.mubr.msk.f32.mxu1 %vm1874_vm4, %v17122_v36 }
 0x389   :  { %14457 = vmatmul.mubr.msk.f32.gmra.mrb[46].mxu1 %vm1874_vm4, %v17309_v1 }
 0x440   :  { %v14437_v59 = vpop.f32.mrb[32].mxu1 }
 0x441   :  { %v3952_v0 = vadd.f32 %v14437_v59, %v17490_v57  ;;  %v3851_v8 = vpop.f32.mrb[33].mxu1 }
 0x442   :  { %v3951_v15 = vadd.f32 %v17490_v57, %v3851_v8 }
 0x443   :  { %v3968_v35 = vmax.f32 %v3952_v0, 0.0  ;;  %v19229_v0 = vld [vmem:[#allocation9_spill] sm:$0xff] }
 0x444   :  { %v3967_v38 = vmax.f32 %v3951_v15, 0.0  ;;  %v14440_v40 = vpop.f32.mrb[34].mxu1 }
 0x445   :  { %3998 = vst.msk [vmem:[#allocation2 + $0x40] sm:$0xff] %vm1874_vm4, %v3968_v35  ;;  %v3954_v41 = vadd.f32 %v14440_v40, %v17490_v57  ;;  %v3861_v42 = vpop.f32.mrb[35].mxu1 }
 0x446   :  { %3997 = vst.msk [vmem:[#allocation2 + $0x30] sm:$0xff] %vm1874_vm4, %v3967_v38  ;;  %v3953_v43 = vadd.f32 %v17490_v57, %v3861_v42 }
 0x447   :  { %v3970_v44 = vmax.f32 %v3954_v41, 0.0 }
 0x448   :  { %v3969_v45 = vmax.f32 %v3953_v43, 0.0  ;;  %v14443_v47 = vpop.f32.mrb[36].mxu1  ;;  %v19230_v43 = vld [vmem:[#allocation12_spill] sm:$0xff] }
 0x449   :  { %4000 = vst.msk [vmem:[#allocation2 + $0x60] sm:$0xff] %vm1874_vm4, %v3970_v44  ;;  %v3956_v26 = vadd.f32 %v14443_v47, %v17490_v57  ;;  %v3871_v48 = vpop.f32.mrb[37].mxu1 }
 0x44a   :  { %3999 = vst.msk [vmem:[#allocation2 + $0x50] sm:$0xff] %vm1874_vm4, %v3969_v45  ;;  %v3955_v49 = vadd.f32 %v17490_v57, %v3871_v48  ;;  %v19231_v45 = vld [vmem:[#allocation11_spill] sm:$0xff] }
 0x44b   :  { %v3972_v50 = vmax.f32 %v3956_v26, 0.0 }
 0x44c   :  { %v3971_v51 = vmax.f32 %v3955_v49, 0.0  ;;  %v14446_v30 = vpop.f32.mrb[38].mxu1  ;;  %v17502_v52 = vld [vmem:[#allocation2 + $0x40] sm:$0xff] }
 0x44d   :  { %4002 = vst.msk [vmem:[#allocation2 + $0x80] sm:$0xff] %vm1874_vm4, %v3972_v50  ;;  %v3958_v54 = vadd.f32 %v14446_v30, %v17490_v57  ;;  %v3881_v5 = vpop.f32.mrb[39].mxu1  ;;  %v17506_v11 = vld [vmem:[#allocation2 + $0x30] sm:$0xff]  ;;  %v19232_v50 = vld [vmem:[#allocation14_spill] sm:$0xff] }
 0x44e   :  { %5815 = vst.msk [vmem:[#allocation2 + $0x40] sm:$0xff] %vm63_vm1, %v19222_v33  ;;  %v3957_v36 = vadd.f32 %v17490_v57, %v3881_v5  ;;  %14464 = vmatprep.mubr.msk.f32.mxu0 %vm1874_vm4, %v17506_v11  ;;  %5814 = vst.msk [vmem:[#allocation2 + $0x30] sm:$0xff] %vm63_vm1, %v19223_v39  ;;  %v17602_v30 = vld [vmem:[#allocation2 + $0x190] sm:$0xff]  ;;  %v19234_v5 = vld [vmem:[#allocation16_spill] sm:$0xff] }
 0x44f   :  { %4001 = vst.msk [vmem:[#allocation2 + $0x70] sm:$0xff] %vm1874_vm4, %v3971_v51  ;;  %v3974_v56 = vmax.f32 %v3958_v54, 0.0  ;;  %14465 = vmatmul.mubr.msk.f32.gmra.mrb[18].mxu0 %vm1874_vm4, %v17502_v52 }
 0x450   :  { %v3973_v61 = vmax.f32 %v3957_v36, 0.0  ;;  %v14449_v12 = vpop.f32.mrb[40].mxu1  ;;  %v17518_v7 = vld [vmem:[#allocation2 + $0x60] sm:$0xff]  ;;  %5811 = vst.msk [vmem:[#allocation2 + $0x190] sm:$0xff] %vm63_vm1, %v19194_v55 }
 0x451   :  { %4004 = vst.msk [vmem:[#allocation2 + $0xa0] sm:$0xff] %vm1874_vm4, %v3974_v56  ;;  %v3960_v16 = vadd.f32 %v14449_v12, %v17490_v57  ;;  %v3891_v53 = vpop.f32.mrb[41].mxu1  ;;  %v17522_v3 = vld [vmem:[#allocation2 + $0x50] sm:$0xff]  ;;  %v19235_v36 = vld [vmem:[#allocation15_spill] sm:$0xff]  ;;  %v19236_v12 = vld [vmem:[#allocation18_spill] sm:$0xff] }
 0x452   :  { %5817 = vst.msk [vmem:[#allocation2 + $0x60] sm:$0xff] %vm63_vm1, %v19224_v21  ;;  %v3959_v14 = vadd.f32 %v17490_v57, %v3891_v53  ;;  %14467 = vmatprep.mubr.msk.f32.mxu0 %vm1874_vm4, %v17522_v3  ;;  %5816 = vst.msk [vmem:[#allocation2 + $0x50] sm:$0xff] %vm63_vm1, %v19225_v2  ;;  %v19237_v53 = vld [vmem:[#allocation17_spill] sm:$0xff] }
 0x453   :  { %4003 = vst.msk [vmem:[#allocation2 + $0x90] sm:$0xff] %vm1874_vm4, %v3973_v61  ;;  %v3976_v27 = vmax.f32 %v3960_v16, 0.0  ;;  %14468 = vmatmul.mubr.msk.f32.gmra.mrb[20].mxu0 %vm1874_vm4, %v17518_v7  ;;  %v4675_v16 = vld [vmem:[%s19135_s1 + $0xe0] sm:$0xff] }
 0x454   :  { %v3975_v22 = vmax.f32 %v3959_v14, 0.0  ;;  %v14452_v23 = vpop.f32.mrb[42].mxu1  ;;  %v17534_v25 = vld [vmem:[#allocation2 + $0x80] sm:$0xff]  ;;  %v17854_v14 = vld [vmem:[#allocation2 + $0x10] sm:$0xff] }
 0x455   :  { %4006 = vst.msk [vmem:[#allocation2 + $0x120] sm:$0xff] %vm1874_vm4, %v3976_v27  ;;  %v3962_v13 = vadd.f32 %v14452_v23, %v17490_v57  ;;  %v3901_v58 = vpop.f32.mrb[43].mxu1  ;;  %v17856_v27 = vld [vmem:[#allocation2 + $0x20] sm:$0xff] }
 0x456   :  { %v17540_v9 = vld [vmem:[#allocation2 + $0x70] sm:$0xff]  ;;  %5819 = vst.msk [vmem:[#allocation2 + $0x80] sm:$0xff] %vm63_vm1, %v19226_v60  ;;  %v3961_v62 = vadd.f32 %v17490_v57, %v3901_v58  ;;  %v17864_v23 = vld [vmem:[#allocation2 + $0x40] sm:$0xff] }
 0x457   :  { %4005 = vst.msk [vmem:[#allocation2 + $0x110] sm:$0xff] %vm1874_vm4, %v3975_v22  ;;  %14470 = vmatprep.mubr.msk.f32.mxu0 %vm1874_vm4, %v17540_v9  ;;  %v3978_v1 = vmax.f32 %v3962_v13, 0.0  ;;  %v17862_v22 = vld [vmem:[#allocation2 + $0x30] sm:$0xff] }
 0x458   :  { %5818 = vst.msk [vmem:[#allocation2 + $0x70] sm:$0xff] %vm63_vm1, %v19227_v63  ;;  %14471 = vmatmul.mubr.msk.f32.gmra.mrb[22].mxu0 %vm1874_vm4, %v17534_v25  ;;  %v3977_v4 = vmax.f32 %v3961_v62, 0.0  ;;  %v14455_v31 = vpop.f32.mrb[44].mxu1  ;;  %v17556_v32 = vld [vmem:[#allocation2 + $0xa0] sm:$0xff] }
 0x459   :  { %14473 = vmatprep.mubr.msk.f32.mxu0 %vm1874_vm4, %v17465_v17  ;;  %4008 = vst.msk [vmem:[#allocation2 + $0x140] sm:$0xff] %vm1874_vm4, %v3978_v1  ;;  %v3964_v37 = vadd.f32 %v14455_v31, %v17490_v57  ;;  %v3911_v29 = vpop.f32.mrb[45].mxu1  ;;  %v17888_v62 = vld [vmem:[#allocation2 + $0x100] sm:$0xff] }
 0x45a   :  { %v17560_v34 = vld [vmem:[#allocation2 + $0x90] sm:$0xff]  ;;  %5821 = vst.msk [vmem:[#allocation2 + $0xa0] sm:$0xff] %vm63_vm1, %v19228_v19  ;;  %v3963_v59 = vadd.f32 %v17490_v57, %v3911_v29 }
 0x45b   :  { %4007 = vst.msk [vmem:[#allocation2 + $0x130] sm:$0xff] %vm1874_vm4, %v3977_v4  ;;  %v3980_v8 = vmax.f32 %v3964_v37, 0.0 }
 0x45c   :  { %5820 = vst.msk [vmem:[#allocation2 + $0x90] sm:$0xff] %vm63_vm1, %v19229_v0  ;;  %14474 = vmatmul.mubr.msk.f32.gmra.mrb[24].mxu0 %vm1874_vm4, %v17467_v18  ;;  %v3979_v15 = vmax.f32 %v3963_v59, 0.0  ;;  %v14458_v35 = vpop.f32.mrb[46].mxu1  ;;  %v17570_v38 = vld [vmem:[#allocation2 + $0x120] sm:$0xff] }
 0x45d   :  { %4010 = vst.msk [vmem:[#allocation2 + $0x160] sm:$0xff] %vm1874_vm4, %v3980_v8  ;;  %v3966_v40 = vadd.f32 %v14458_v35, %v17490_v57  ;;  %v3921_v41 = vpop.f32.mrb[47].mxu1  ;;  %v17880_v58 = vld [vmem:[#allocation2 + $0x80] sm:$0xff] }
 0x45e   :  { %v17574_v42 = vld [vmem:[#allocation2 + $0x110] sm:$0xff]  ;;  %5823 = vst.msk [vmem:[#allocation2 + $0x120] sm:$0xff] %vm63_vm1, %v19230_v43  ;;  %v3965_v44 = vadd.f32 %v17490_v57, %v3921_v41  ;;  %v17924_v59 = vld [vmem:[#allocation2 + $0xe0] sm:$0xff] }
 0x45f   :  { %4009 = vst.msk [vmem:[#allocation2 + $0x150] sm:$0xff] %vm1874_vm4, %v3979_v15  ;;  %14476 = vmatprep.mubr.msk.f32.mxu0 %vm1874_vm4, %v17574_v42  ;;  %v3982_v47 = vmax.f32 %v3966_v40, 0.0  ;;  %v19233_v57 = vld [vmem:[#allocation13_spill] sm:$0xff]  ;;  %7626 = vst.msk [vmem:[#allocation2 + $0xe0] sm:$0xff] %vm1874_vm4, %v19194_v55  ;;  %v12610_v35 = vld [vmem:[%s19137_s2 + $0x3] ss:$0 sm:$0xff] }
 0x460   :  { %5822 = vst.msk [vmem:[#allocation2 + $0x110] sm:$0xff] %vm63_vm1, %v19231_v45  ;;  %14477 = vmatmul.mubr.msk.f32.gmra.mrb[26].mxu0 %vm1874_vm4, %v17570_v38  ;;  %v3981_v26 = vmax.f32 %v3965_v44, 0.0  ;;  %v17586_v48 = vld [vmem:[#allocation2 + $0x140] sm:$0xff]  ;;  %v17878_v13 = vld [vmem:[#allocation2 + $0x70] sm:$0xff]  ;;  %v5846_v40 = vld [vmem:[%s19135_s1 + $0x108] sm:$0xff] }
 0x461   :  { %4012 = vst.msk [vmem:[#allocation2 + $0x180] sm:$0xff] %vm1874_vm4, %v3982_v47  ;;  %v5847_v41 = vld [vmem:[%s19135_s1 + $0x110] sm:$0xff] }
 0x462   :  { %v17589_v49 = vld [vmem:[#allocation2 + $0x130] sm:$0xff]  ;;  %5825 = vst.msk [vmem:[#allocation2 + $0x140] sm:$0xff] %vm63_vm1, %v19232_v50 }
 0x463   :  { %4011 = vst.msk [vmem:[#allocation2 + $0x170] sm:$0xff] %vm1874_vm4, %v3981_v26  ;;  %14479 = vmatprep.mubr.msk.f32.mxu0 %vm1874_vm4, %v17589_v49  ;;  %v17930_v8 = vld [vmem:[#allocation2 + $0x90] sm:$0xff]  ;;  %v15449_v26 = vpack.c.bf16 %v5847_v41, %v5846_v40 }
 0x464   :  { %5824 = vst.msk [vmem:[#allocation2 + $0x130] sm:$0xff] %vm63_vm1, %v19233_v57  ;;  %14480 = vmatmul.mubr.msk.f32.gmra.mrb[28].mxu0 %vm1874_vm4, %v17586_v48  ;;  %v17600_v51 = vld [vmem:[#allocation2 + $0x160] sm:$0xff] }
 0x465   :  { %5827 = vst.msk [vmem:[#allocation2 + $0x160] sm:$0xff] %vm63_vm1, %v19234_v5  ;;  %v17896_v4 = vld [vmem:[#allocation2 + $0x120] sm:$0xff] }
 0x466   :  { %v17604_v54 = vld [vmem:[#allocation2 + $0x150] sm:$0xff]  ;;  %7633 = vst.msk [vmem:[#allocation2 + $0x10] sm:$0x1] %vm1885_vm2, %v19194_v55  ;;  %7634 = vst.msk [vmem:[#allocation2 + $0x20] sm:$0x1] %vm1885_vm2, %v19194_v55 }
 0x467   :  { %14482 = vmatprep.mubr.msk.f32.mxu0 %vm1874_vm4, %v17604_v54  ;;  %5826 = vst.msk [vmem:[#allocation2 + $0x150] sm:$0xff] %vm63_vm1, %v19235_v36  ;;  %v17894_v1 = vld [vmem:[#allocation2 + $0x110] sm:$0xff] }
 0x468   :  { %14483 = vmatmul.mubr.msk.f32.gmra.mrb[30].mxu0 %vm1874_vm4, %v17600_v51  ;;  %v17618_v56 = vld [vmem:[#allocation2 + $0x180] sm:$0xff]  ;;  %7635 = vst.msk [vmem:[#allocation2 + $0x30] sm:$0x1] %vm1885_vm2, %v19194_v55  ;;  %7636 = vst.msk [vmem:[#allocation2 + $0x40] sm:$0x1] %vm1885_vm2, %v19194_v55 }
 0x469   :  { %14487 = vmatprep.mubr.msk.f32.mxu0 %vm1874_vm4, %v17473_v20  ;;  %5829 = vst.msk [vmem:[#allocation2 + $0x180] sm:$0xff] %vm63_vm1, %v19236_v12  ;;  %v17642_v20 = vld [vmem:[#allocation2 + $0xc0] sm:$0xff] }
 0x46a   :  { %v17620_v61 = vld [vmem:[#allocation2 + $0x170] sm:$0xff]  ;;  %5809 = vst.msk [vmem:[#allocation2 + $0xc0] sm:$0xff] %vm63_vm1, %v19194_v55 }
 0x46b   :  { %5828 = vst.msk [vmem:[#allocation2 + $0x170] sm:$0xff] %vm63_vm1, %v19237_v53  ;;  %v17902_v31 = vld [vmem:[#allocation2 + $0x130] sm:$0xff] }
 0x46c   :  { %14488 = vmatmul.mubr.msk.f32.vlgmr.msra.gmra.mrb[16].mxu0 %vm1874_vm4, %v17450_v6  ;;  %v17662_v6 = vld [vmem:[#allocation2 + $0x1a0] sm:$0xff]  ;;  %7639 = vst.msk [vmem:[#allocation2 + $0x70] sm:$0x1] %vm1885_vm2, %v19194_v55  ;;  %7640 = vst.msk [vmem:[#allocation2 + $0x80] sm:$0x1] %vm1885_vm2, %v19194_v55 }
 0x46d   :  { %14512 = vmatpush3.msra.mxu0 %v17480_v10  ;;  %14490 = vmatprep.mubr.msk.f32.mxu0 %vm1874_vm4, %v17454_v46  ;;  %5812 = vst.msk [vmem:[#allocation2 + $0x1a0] sm:$0xff] %vm63_vm1, %v19194_v55  ;;  %v17705_v10 = vld [vmem:[#allocation2 + $0x1b0] sm:$0xff]  ;;  %v17912_v29 = vld [vmem:[#allocation2 + $0x160] sm:$0xff] }
 0x46e   :  { %14537 = vmatprep.subr.mxu0 %v4675_v16  ;;  %5813 = vst.msk [vmem:[#allocation2 + $0x1b0] sm:$0xff] %vm63_vm1, %v19194_v55  ;;  %v17910_v37 = vld [vmem:[#allocation2 + $0x150] sm:$0xff] }
 0x46f   :  { %7644 = vst.msk [vmem:[#allocation2 + $0x100] sm:$0x1] %vm1885_vm2, %v19194_v55  ;;  %7645 = vst.msk [vmem:[#allocation2 + $0x110] sm:$0x1] %vm1885_vm2, %v19194_v55 }
 0x470   :  { %14491 = vmatmul.mubr.msk.f32.gmra.mrb[18].mxu0 %vm1874_vm4, %v17506_v11  ;;  %7646 = vst.msk [vmem:[#allocation2 + $0x120] sm:$0x1] %vm1885_vm2, %v19194_v55  ;;  %7647 = vst.msk [vmem:[#allocation2 + $0x130] sm:$0x1] %vm1885_vm2, %v19194_v55 }
 0x471   :  { %14493 = vmatprep.mubr.msk.f32.mxu0 %vm1874_vm4, %v17502_v52  ;;  %7649 = vst.msk [vmem:[#allocation2 + $0x150] sm:$0x1] %vm1885_vm2, %v19194_v55  ;;  %7650 = vst.msk [vmem:[#allocation2 + $0x160] sm:$0x1] %vm1885_vm2, %v19194_v55 }
 0x472   :  { %7642 = vst.msk [vmem:[#allocation2 + $0xe0] sm:$0x1] %vm1885_vm2, %v19194_v55  ;;  %v17936_v15 = vld [vmem:[#allocation2 + $0x170] sm:$0xff] }
 0x473   :  { %7628 = vst.msk [vmem:[#allocation2 + $0x90] sm:$0xff] %vm1874_vm4, %v19194_v55  ;;  %7630 = vst.msk [vmem:[#allocation2 + $0x170] sm:$0xff] %vm1874_vm4, %v19194_v55 }
 0x474   :  { %14494 = vmatmul.mubr.msk.f32.gmra.mrb[20].mxu0 %vm1874_vm4, %v17522_v3  ;;  %7641 = vst.msk [vmem:[#allocation2 + $0x90] sm:$0x1] %vm1885_vm2, %v19194_v55  ;;  %7651 = vst.msk [vmem:[#allocation2 + $0x170] sm:$0x1] %vm1885_vm2, %v19194_v55 }
 0x475   :  { %14496 = vmatprep.mubr.msk.f32.mxu0 %vm1874_vm4, %v17518_v7 }
 0x478   :  { %14497 = vmatmul.mubr.msk.f32.gmra.mrb[22].mxu0 %vm1874_vm4, %v17540_v9 }
 0x479   :  { %14499 = vmatprep.mubr.msk.f32.mxu0 %vm1874_vm4, %v17483_v24  ;;  %v5129_v24 = vld [vmem:[%s19135_s1 + $0xf0] sm:$0xff] }
 0x47c   :  { %14500 = vmatmul.mubr.msk.f32.gmra.mrb[24].mxu0 %vm1874_vm4, %v17465_v17  ;;  %v4902_v17 = vld [vmem:[%s19135_s1 + $0xe8] sm:$0xff] }
 0x47d   :  { %14502 = vmatprep.mubr.msk.f32.mxu0 %vm1874_vm4, %v17467_v18 }
 0x480   :  { %14503 = vmatmul.mubr.msk.f32.gmra.mrb[26].mxu0 %vm1874_vm4, %v17574_v42 }
 0x481   :  { %14505 = vmatprep.mubr.msk.f32.mxu0 %vm1874_vm4, %v17570_v38 }
 0x484   :  { %14506 = vmatmul.mubr.msk.f32.gmra.mrb[28].mxu0 %vm1874_vm4, %v17589_v49 }
 0x485   :  { %14508 = vmatprep.mubr.msk.f32.mxu0 %vm1874_vm4, %v17586_v48 }
 0x488   :  { %14509 = vmatmul.mubr.msk.f32.gmra.mrb[30].mxu0 %vm1874_vm4, %v17604_v54 }
 0x489   :  { %14513 = vmatprep.mubr.msk.f32.mxu0 %vm1874_vm4, %v17454_v46  ;;  %v17685_v46 = vld [vmem:[#allocation2 + $0xd0] sm:$0xff] }
 0x48a   :  { %5810 = vst.msk [vmem:[#allocation2 + $0xd0] sm:$0xff] %vm63_vm1, %v19194_v55 }
 0x48c   :  { %14514 = vmatmul.mubr.msk.f32.vlgmr.msra.gmra.mrb[16].mxu0 %vm1874_vm4, %v17506_v11 }
 0x48d   :  { %14538 = vmatpush3.msra.mxu0 %v4675_v16  ;;  %14516 = vmatprep.mubr.msk.f32.mxu0 %vm1874_vm4, %v17502_v52 }
 0x48e   :  { %14563 = vmatprep.subr.mxu0 %v4902_v17 }
 0x490   :  { %14517 = vmatmul.mubr.msk.f32.gmra.mrb[18].mxu0 %vm1874_vm4, %v17522_v3 }
 0x491   :  { %14519 = vmatprep.mubr.msk.f32.mxu0 %vm1874_vm4, %v17518_v7 }
 0x494   :  { %14520 = vmatmul.mubr.msk.f32.gmra.mrb[20].mxu0 %vm1874_vm4, %v17540_v9 }
 0x495   :  { %14522 = vmatprep.mubr.msk.f32.mxu0 %vm1874_vm4, %v17534_v25 }
 0x498   :  { %14523 = vmatmul.mubr.msk.f32.gmra.mrb[22].mxu0 %vm1874_vm4, %v17560_v34 }
 0x499   :  { %14525 = vmatprep.mubr.msk.f32.mxu0 %vm1874_vm4, %v17467_v18  ;;  %v5587_v18 = vld [vmem:[%s19135_s1 + $0x100] sm:$0xff] }
 0x49a   :  { %14641 = vmatprep.subr.mxu1 %v5587_v18 }
 0x49b   :  { %14642 = vmatpush3.msra.mxu1 %v5587_v18 }
 0x49c   :  { %14526 = vmatmul.mubr.msk.f32.gmra.mrb[24].mxu0 %vm1874_vm4, %v17574_v42 }
 0x49d   :  { %14528 = vmatprep.mubr.msk.f32.mxu0 %vm1874_vm4, %v17570_v38 }
 0x4a0   :  { %14529 = vmatmul.mubr.msk.f32.gmra.mrb[26].mxu0 %vm1874_vm4, %v17589_v49 }
 0x4a1   :  { %14531 = vmatprep.mubr.msk.f32.mxu0 %vm1874_vm4, %v17586_v48 }
 0x4a4   :  { %14532 = vmatmul.mubr.msk.f32.gmra.mrb[28].mxu0 %vm1874_vm4, %v17604_v54 }
 0x4a5   :  { %14534 = vmatprep.mubr.msk.f32.mxu0 %vm1874_vm4, %v17600_v51 }
 0x4a8   :  { %14535 = vmatmul.mubr.msk.f32.gmra.mrb[30].mxu0 %vm1874_vm4, %v17620_v61 }
 0x4a9   :  { %14539 = vmatprep.mubr.msk.f32.mxu0 %vm1874_vm4, %v17506_v11  ;;  %v5356_v11 = vld [vmem:[%s19135_s1 + $0xf8] sm:$0xff] }
 0x4ac   :  { %14540 = vmatmul.mubr.msk.f32.vlgmr.msra.gmra.mrb[16].mxu0 %vm1874_vm4, %v17502_v52 }
 0x4ad   :  { %14564 = vmatpush3.msra.mxu0 %v4902_v17  ;;  %14542 = vmatprep.mubr.msk.f32.mxu0 %vm1874_vm4, %v17522_v3 }
 0x4ae   :  { %14589 = vmatprep.subr.mxu0 %v5129_v24 }
 0x4b0   :  { %14543 = vmatmul.mubr.msk.f32.gmra.mrb[18].mxu0 %vm1874_vm4, %v17518_v7 }
 0x4b1   :  { %14545 = vmatprep.mubr.msk.f32.mxu0 %vm1874_vm4, %v17540_v9 }
 0x4b4   :  { %14546 = vmatmul.mubr.msk.f32.gmra.mrb[20].mxu0 %vm1874_vm4, %v17534_v25 }
 0x4b5   :  { %14548 = vmatprep.mubr.msk.f32.mxu0 %vm1874_vm4, %v17560_v34 }
 0x4b8   :  { %14549 = vmatmul.mubr.msk.f32.gmra.mrb[22].mxu0 %vm1874_vm4, %v17556_v32 }
 0x4b9   :  { %14551 = vmatprep.mubr.msk.f32.mxu0 %vm1874_vm4, %v17574_v42 }
 0x4bc   :  { %14552 = vmatmul.mubr.msk.f32.gmra.mrb[24].mxu0 %vm1874_vm4, %v17570_v38 }
 0x4bd   :  { %14554 = vmatprep.mubr.msk.f32.mxu0 %vm1874_vm4, %v17589_v49 }
 0x4c0   :  { %14555 = vmatmul.mubr.msk.f32.gmra.mrb[26].mxu0 %vm1874_vm4, %v17586_v48 }
 0x4c1   :  { %14557 = vmatprep.mubr.msk.f32.mxu0 %vm1874_vm4, %v17604_v54 }
 0x4c4   :  { %14558 = vmatmul.mubr.msk.f32.gmra.mrb[28].mxu0 %vm1874_vm4, %v17600_v51 }
 0x4c5   :  { %14560 = vmatprep.mubr.msk.f32.mxu0 %vm1874_vm4, %v17620_v61 }
 0x4c8   :  { %14561 = vmatmul.mubr.msk.f32.gmra.mrb[30].mxu0 %vm1874_vm4, %v17618_v56 }
 0x4c9   :  { %14565 = vmatprep.mubr.msk.f32.mxu0 %vm1874_vm4, %v17502_v52  ;;  %v5864_v52 = vld [vmem:[%s19135_s1 + $0x118] sm:$0xff] }
 0x4cc   :  { %14566 = vmatmul.mubr.msk.f32.vlgmr.msra.gmra.mrb[16].mxu0 %vm1874_vm4, %v17522_v3 }
 0x4cd   :  { %14590 = vmatpush3.msra.mxu0 %v5129_v24  ;;  %14568 = vmatprep.mubr.msk.f32.mxu0 %vm1874_vm4, %v17518_v7 }
 0x4ce   :  { %14615 = vmatprep.subr.mxu0 %v5356_v11 }
 0x4d0   :  { %14569 = vmatmul.mubr.msk.f32.gmra.mrb[18].mxu0 %vm1874_vm4, %v17540_v9 }
 0x4d1   :  { %14571 = vmatprep.mubr.msk.f32.mxu0 %vm1874_vm4, %v17534_v25 }
 0x4d4   :  { %14572 = vmatmul.mubr.msk.f32.gmra.mrb[20].mxu0 %vm1874_vm4, %v17560_v34 }
 0x4d5   :  { %14574 = vmatprep.mubr.msk.f32.mxu0 %vm1874_vm4, %v17556_v32 }
 0x4d8   :  { %14575 = vmatmul.mubr.msk.f32.gmra.mrb[22].mxu0 %vm1874_vm4, %v17536_v28 }
 0x4d9   :  { %14577 = vmatprep.mubr.msk.f32.mxu0 %vm1874_vm4, %v17570_v38 }
 0x4dc   :  { %14578 = vmatmul.mubr.msk.f32.gmra.mrb[24].mxu0 %vm1874_vm4, %v17589_v49 }
 0x4dd   :  { %14580 = vmatprep.mubr.msk.f32.mxu0 %vm1874_vm4, %v17586_v48 }
 0x4e0   :  { %14581 = vmatmul.mubr.msk.f32.gmra.mrb[26].mxu0 %vm1874_vm4, %v17604_v54 }
 0x4e1   :  { %14583 = vmatprep.mubr.msk.f32.mxu0 %vm1874_vm4, %v17600_v51 }
 0x4e4   :  { %14584 = vmatmul.mubr.msk.f32.gmra.mrb[28].mxu0 %vm1874_vm4, %v17620_v61 }
 0x4e5   :  { %14586 = vmatprep.mubr.msk.f32.mxu0 %vm1874_vm4, %v17618_v56 }
 0x4e8   :  { %14587 = vmatmul.mubr.msk.f32.gmra.mrb[30].mxu0 %vm1874_vm4, %v17602_v30 }
 0x4e9   :  { %14591 = vmatprep.mubr.msk.f32.mxu0 %vm1874_vm4, %v17522_v3 }
 0x4ec   :  { %14592 = vmatmul.mubr.msk.f32.vlgmr.msra.gmra.mrb[16].mxu0 %vm1874_vm4, %v17518_v7 }
 0x4ed   :  { %14616 = vmatpush3.msra.mxu0 %v5356_v11  ;;  %14594 = vmatprep.mubr.msk.f32.mxu0 %vm1874_vm4, %v17540_v9 }
 0x4f0   :  { %14595 = vmatmul.mubr.msk.f32.gmra.mrb[18].mxu0 %vm1874_vm4, %v17534_v25 }
 0x4f1   :  { %14597 = vmatprep.mubr.msk.f32.mxu0 %vm1874_vm4, %v17560_v34 }
 0x4f4   :  { %14598 = vmatmul.mubr.msk.f32.gmra.mrb[20].mxu0 %vm1874_vm4, %v17556_v32 }
 0x4f5   :  { %14600 = vmatprep.mubr.msk.f32.mxu0 %vm1874_vm4, %v17536_v28 }
 0x4f8   :  { %14601 = vmatmul.mubr.msk.f32.gmra.mrb[22].mxu0 %vm1874_vm4, %v17642_v20 }
 0x4f9   :  { %14603 = vmatprep.mubr.msk.f32.mxu0 %vm1874_vm4, %v17589_v49 }
 0x4fc   :  { %14604 = vmatmul.mubr.msk.f32.gmra.mrb[24].mxu0 %vm1874_vm4, %v17586_v48 }
 0x4fd   :  { %14606 = vmatprep.mubr.msk.f32.mxu0 %vm1874_vm4, %v17604_v54 }
 0x500   :  { %14607 = vmatmul.mubr.msk.f32.gmra.mrb[26].mxu0 %vm1874_vm4, %v17600_v51 }
 0x501   :  { %14609 = vmatprep.mubr.msk.f32.mxu0 %vm1874_vm4, %v17620_v61 }
 0x504   :  { %14610 = vmatmul.mubr.msk.f32.gmra.mrb[28].mxu0 %vm1874_vm4, %v17618_v56 }
 0x505   :  { %14612 = vmatprep.mubr.msk.f32.mxu0 %vm1874_vm4, %v17602_v30 }
 0x508   :  { %14613 = vmatmul.mubr.msk.f32.gmra.mrb[30].mxu0 %vm1874_vm4, %v17662_v6 }
 0x509   :  { %14617 = vmatprep.mubr.msk.f32.mxu0 %vm1874_vm4, %v17518_v7  ;;  %v5865_v7 = vld [vmem:[%s19135_s1 + $0x120] sm:$0xff] }
 0x50a   :  { %v15445_v3 = vpack.c.bf16 %v5865_v7, %v5864_v52 }
 0x50c   :  { %14618 = vmatmul.mubr.msk.f32.vlgmr.msra.gmra.mrb[16].mxu0 %vm1874_vm4, %v17540_v9  ;;  %15446 = vmatprep.subr.bf16.mxu1 %v15445_v3  ;;  %v17886_v9 = vld [vmem:[#allocation2 + $0xf0] sm:$0xff] }
 0x50d   :  { %14620 = vmatprep.mubr.msk.f32.mxu0 %vm1874_vm4, %v17534_v25  ;;  %v17870_v25 = vld [vmem:[#allocation2 + $0x50] sm:$0xff]  ;;  %7643 = vst.msk [vmem:[#allocation2 + $0xf0] sm:$0x1] %vm1885_vm2, %v19194_v55 }
 0x50e   :  { %7637 = vst.msk [vmem:[#allocation2 + $0x50] sm:$0x1] %vm1885_vm2, %v19194_v55 }
 0x510   :  { %14621 = vmatmul.mubr.msk.f32.gmra.mrb[18].mxu0 %vm1874_vm4, %v17560_v34  ;;  %v17918_v34 = vld [vmem:[#allocation2] sm:$0xff] }
 0x511   :  { %14623 = vmatprep.mubr.msk.f32.mxu0 %vm1874_vm4, %v17556_v32  ;;  %v17904_v32 = vld [vmem:[#allocation2 + $0x140] sm:$0xff]  ;;  %7624 = vst.msk [vmem:[#allocation2] sm:$0xff] %vm1874_vm4, %v19194_v55 }
 0x512   :  { %7648 = vst.msk [vmem:[#allocation2 + $0x140] sm:$0x1] %vm1885_vm2, %v19194_v55  ;;  %7632 = vst.msk [vmem:[#allocation2] sm:$0x1] %vm1885_vm2, %v19194_v55 }
 0x514   :  { %14624 = vmatmul.mubr.msk.f32.gmra.mrb[20].mxu0 %vm1874_vm4, %v17536_v28  ;;  %v17872_v28 = vld [vmem:[#allocation2 + $0x60] sm:$0xff] }
 0x515   :  { %14626 = vmatprep.mubr.msk.f32.mxu0 %vm1874_vm4, %v17642_v20  ;;  %7638 = vst.msk [vmem:[#allocation2 + $0x60] sm:$0x1] %vm1885_vm2, %v19194_v55 }
 0x518   :  { %14627 = vmatmul.mubr.msk.f32.gmra.mrb[22].mxu0 %vm1874_vm4, %v17685_v46 }
 0x519   :  { %14629 = vmatprep.mubr.msk.f32.mxu0 %vm1874_vm4, %v17586_v48 }
 0x51c   :  { %14630 = vmatmul.mubr.msk.f32.gmra.mrb[24].mxu0 %vm1874_vm4, %v17604_v54 }
 0x51d   :  { %14632 = vmatprep.mubr.msk.f32.mxu0 %vm1874_vm4, %v17600_v51 }
 0x520   :  { %14633 = vmatmul.mubr.msk.f32.gmra.mrb[26].mxu0 %vm1874_vm4, %v17620_v61 }
 0x521   :  { %14635 = vmatprep.mubr.msk.f32.mxu0 %vm1874_vm4, %v17618_v56 }
 0x524   :  { %14636 = vmatmul.mubr.msk.f32.gmra.mrb[28].mxu0 %vm1874_vm4, %v17602_v30 }
 0x525   :  { %14638 = vmatprep.mubr.msk.f32.mxu0 %vm1874_vm4, %v17662_v6 }
 0x528   :  { %14639 = vmatmul.mubr.msk.f32.gmra.mrb[30].mxu0 %vm1874_vm4, %v17705_v10 }
 0x5df   :  { %v14619_v38 = vpop.f32.mrb[16].mxu0 }
 0x5e0   :  { %v5471_v42 = vpop.f32.mrb[17].mxu0  ;;  %v5572_v47 = vadd.f32 %v14619_v38, %v12610_v35 }
 0x5e1   :  { %v5571_v44 = vadd.f32 %v12610_v35, %v5471_v42 }
 0x5e3   :  { %v14622_v48 = vpop.f32.mrb[18].mxu0  ;;  %14643 = vmatprep.mubr.msk.f32.mxu1 %vm1874_vm4, %v5571_v44 }
 0x5e4   :  { %v5481_v49 = vpop.f32.mrb[19].mxu0  ;;  %14644 = vmatmul.mubr.msk.f32.vlgmr.msra.gmra.mrb[48].mxu1 %vm1874_vm4, %v5572_v47  ;;  %v5574_v30 = vadd.f32 %v14622_v48, %v12610_v35 }
 0x5e5   :  { %v5573_v51 = vadd.f32 %v12610_v35, %v5481_v49  ;;  %15448 = vmatpush3.bf16.msra.mxu1 %v15445_v3 }
 0x5e6   :  { %15450 = vmatprep.subr.bf16.mxu1 %v15449_v26 }
 0x5e7   :  { %v14625_v54 = vpop.f32.mrb[20].mxu0  ;;  %14646 = vmatprep.mubr.msk.f32.mxu1 %vm1874_vm4, %v5573_v51 }
 0x5e8   :  { %v5491_v56 = vpop.f32.mrb[21].mxu0  ;;  %14647 = vmatmul.mubr.msk.f32.gmra.mrb[50].mxu1 %vm1874_vm4, %v5574_v30  ;;  %v5576_v16 = vadd.f32 %v14625_v54, %v12610_v35  ;;  %v6268_v30 = vld [vmem:[%s19135_s1 + $0x128] sm:$0xff]  ;;  %v6269_v54 = vld [vmem:[%s19135_s1 + $0x130] sm:$0xff] }
 0x5e9   :  { %v5575_v61 = vadd.f32 %v12610_v35, %v5491_v56  ;;  %v15453_v56 = vpack.c.bf16 %v6269_v54, %v6268_v30 }
 0x5eb   :  { %v14628_v20 = vpop.f32.mrb[22].mxu0  ;;  %14649 = vmatprep.mubr.msk.f32.mxu1 %vm1874_vm4, %v5575_v61 }
 0x5ec   :  { %v5501_v6 = vpop.f32.mrb[23].mxu0  ;;  %14650 = vmatmul.mubr.msk.f32.gmra.mrb[52].mxu1 %vm1874_vm4, %v5576_v16  ;;  %v5578_v46 = vadd.f32 %v14628_v20, %v12610_v35  ;;  %v7409_v16 = vld [vmem:[%s19135_s1 + $0x180] sm:$0xff] }
 0x5ed   :  { %v5577_v17 = vadd.f32 %v12610_v35, %v5501_v6 }
 0x5ef   :  { %v14631_v10 = vpop.f32.mrb[24].mxu0  ;;  %14652 = vmatprep.mubr.msk.f32.mxu1 %vm1874_vm4, %v5577_v17  ;;  %v18125_v17 = vld [vmem:[#allocation2 + $0x180] sm:$0xff] }
 0x5f0   :  { %v5511_v18 = vpop.f32.mrb[25].mxu0  ;;  %14653 = vmatmul.mubr.msk.f32.gmra.mrb[54].mxu1 %vm1874_vm4, %v5578_v46  ;;  %v5580_v11 = vadd.f32 %v14631_v10, %v12610_v35  ;;  %v7177_v46 = vld [vmem:[%s19135_s1 + $0x170] sm:$0xff] }
 0x5f1   :  { %v5579_v24 = vadd.f32 %v12610_v35, %v5511_v18  ;;  %v6721_v18 = vld [vmem:[#allocation2 + $0x190] sm:$0xff] }
 0x5f3   :  { %v14634_v52 = vpop.f32.mrb[26].mxu0  ;;  %14655 = vmatprep.mubr.msk.f32.mxu1 %vm1874_vm4, %v5579_v24 }
 0x5f4   :  { %v5521_v7 = vpop.f32.mrb[27].mxu0  ;;  %14656 = vmatmul.mubr.msk.f32.gmra.mrb[56].mxu1 %vm1874_vm4, %v5580_v11  ;;  %v5582_v38 = vadd.f32 %v14634_v52, %v12610_v35 }
 0x5f5   :  { %v5581_v3 = vadd.f32 %v12610_v35, %v5521_v7 }
 0x5f7   :  { %v14637_v40 = vpop.f32.mrb[28].mxu0  ;;  %14658 = vmatprep.mubr.msk.f32.mxu1 %vm1874_vm4, %v5581_v3 }
 0x5f8   :  { %v5531_v41 = vpop.f32.mrb[29].mxu0  ;;  %14659 = vmatmul.mubr.msk.f32.gmra.mrb[58].mxu1 %vm1874_vm4, %v5582_v38  ;;  %v5584_v44 = vadd.f32 %v14637_v40, %v12610_v35 }
 0x5f9   :  { %v5583_v42 = vadd.f32 %v12610_v35, %v5531_v41 }
 0x5fb   :  { %v14640_v47 = vpop.f32.mrb[30].mxu0  ;;  %14661 = vmatprep.mubr.msk.f32.mxu1 %vm1874_vm4, %v5583_v42 }
 0x5fc   :  { %v5541_v48 = vpop.f32.mrb[31].mxu0  ;;  %14662 = vmatmul.mubr.msk.f32.gmra.mrb[60].mxu1 %vm1874_vm4, %v5584_v44  ;;  %v5586_v51 = vadd.f32 %v14640_v47, %v12610_v35 }
 0x5fd   :  { %v5585_v49 = vadd.f32 %v12610_v35, %v5541_v48  ;;  %v6495_v35 = vld [vmem:[%s19135_s1 + $0x138] sm:$0xff] }
 0x5ff   :  { %14664 = vmatprep.mubr.msk.f32.mxu1 %vm1874_vm4, %v5585_v49 }
 0x600   :  { %14665 = vmatmul.mubr.msk.f32.gmra.mrb[62].mxu1 %vm1874_vm4, %v5586_v51 }
 0x601   :  { %14671 = vmatprep.mubr.msk.f32.mxu1 %vm63_vm1, %v17854_v14 }
 0x604   :  { %14672 = vmatmul.mubr.msk.f32.vlgmr.msra.gmra.mrb[64].mxu1 %vm63_vm1, %v17856_v27 }
 0x605   :  { %15452 = vmatpush3.bf16.msra.mxu1 %v15449_v26  ;;  %14674 = vmatprep.mubr.msk.f32.mxu1 %vm63_vm1, %v17862_v22  ;;  %v6496_v26 = vld [vmem:[%s19135_s1 + $0x140] sm:$0xff] }
 0x606   :  { %15454 = vmatprep.subr.bf16.mxu1 %v15453_v56  ;;  %v15457_v61 = vpack.c.bf16 %v6496_v26, %v6495_v35 }
 0x608   :  { %14675 = vmatmul.mubr.msk.f32.gmra.mrb[66].mxu1 %vm63_vm1, %v17864_v23 }
 0x609   :  { %14677 = vmatprep.mubr.msk.f32.mxu1 %vm63_vm1, %v17870_v25 }
 0x60c   :  { %14678 = vmatmul.mubr.msk.f32.gmra.mrb[68].mxu1 %vm63_vm1, %v17872_v28 }
 0x60d   :  { %14680 = vmatprep.mubr.msk.f32.mxu1 %vm63_vm1, %v17878_v13 }
 0x610   :  { %14681 = vmatmul.mubr.msk.f32.gmra.mrb[70].mxu1 %vm63_vm1, %v17880_v58 }
 0x611   :  { %14683 = vmatprep.mubr.msk.f32.mxu1 %vm63_vm1, %v17886_v9 }
 0x614   :  { %14684 = vmatmul.mubr.msk.f32.gmra.mrb[72].mxu1 %vm63_vm1, %v17888_v62 }
 0x615   :  { %14686 = vmatprep.mubr.msk.f32.mxu1 %vm63_vm1, %v17894_v1 }
 0x618   :  { %14687 = vmatmul.mubr.msk.f32.gmra.mrb[74].mxu1 %vm63_vm1, %v17896_v4 }
 0x619   :  { %14689 = vmatprep.mubr.msk.f32.mxu1 %vm63_vm1, %v17902_v31 }
 0x61c   :  { %14690 = vmatmul.mubr.msk.f32.gmra.mrb[76].mxu1 %vm63_vm1, %v17904_v32 }
 0x61d   :  { %14692 = vmatprep.mubr.msk.f32.mxu1 %vm63_vm1, %v17910_v37 }
 0x620   :  { %14693 = vmatmul.mubr.msk.f32.gmra.mrb[78].mxu1 %vm63_vm1, %v17912_v29 }
 0x621   :  { %14699 = vmatprep.mubr.msk.f32.mxu1 %vm63_vm1, %v17918_v34 }
 0x624   :  { %14700 = vmatmul.mubr.msk.f32.vlgmr.msra.gmra.mrb[64].mxu1 %vm63_vm1, %v17854_v14  ;;  %v6722_v14 = vld [vmem:[%s19135_s1 + $0x148] sm:$0xff] }
 0x625   :  { %15456 = vmatpush3.bf16.msra.mxu1 %v15453_v56  ;;  %14702 = vmatprep.mubr.msk.f32.mxu1 %vm63_vm1, %v17856_v27 }
 0x626   :  { %15458 = vmatprep.subr.bf16.mxu1 %v15457_v61 }
 0x628   :  { %14703 = vmatmul.mubr.msk.f32.gmra.mrb[66].mxu1 %vm63_vm1, %v17862_v22 }
 0x629   :  { %14705 = vmatprep.mubr.msk.f32.mxu1 %vm63_vm1, %v17864_v23 }
 0x62c   :  { %14706 = vmatmul.mubr.msk.f32.gmra.mrb[68].mxu1 %vm63_vm1, %v17870_v25 }
 0x62d   :  { %14708 = vmatprep.mubr.msk.f32.mxu1 %vm63_vm1, %v17872_v28 }
 0x630   :  { %14709 = vmatmul.mubr.msk.f32.gmra.mrb[70].mxu1 %vm63_vm1, %v17878_v13 }
 0x631   :  { %14711 = vmatprep.mubr.msk.f32.mxu1 %vm63_vm1, %v17924_v59  ;;  %v7408_v59 = vld [vmem:[%s19135_s1 + $0x178] sm:$0xff] }
 0x632   :  { %v15473_v20 = vpack.c.bf16 %v7409_v16, %v7408_v59 }
 0x634   :  { %14712 = vmatmul.mubr.msk.f32.gmra.mrb[72].mxu1 %vm63_vm1, %v17886_v9  ;;  %v6723_v9 = vld [vmem:[%s19135_s1 + $0x150] sm:$0xff]  ;;  %15474 = vmatprep.subr.bf16.mxu0 %v15473_v20 }
 0x635   :  { %14714 = vmatprep.mubr.msk.f32.mxu1 %vm63_vm1, %v17888_v62  ;;  %v15461_v34 = vpack.c.bf16 %v6723_v9, %v6722_v14  ;;  %15476 = vmatpush3.bf16.msra.mxu0 %v15473_v20 }
 0x638   :  { %14715 = vmatmul.mubr.msk.f32.gmra.mrb[74].mxu1 %vm63_vm1, %v17894_v1 }
 0x639   :  { %14717 = vmatprep.mubr.msk.f32.mxu1 %vm63_vm1, %v17896_v4 }
 0x63c   :  { %14718 = vmatmul.mubr.msk.f32.gmra.mrb[76].mxu1 %vm63_vm1, %v17902_v31 }
 0x63d   :  { %14720 = vmatprep.mubr.msk.f32.mxu1 %vm63_vm1, %v17904_v32 }
 0x640   :  { %14721 = vmatmul.mubr.msk.f32.gmra.mrb[78].mxu1 %vm63_vm1, %v17910_v37 }
 0x641   :  { %14727 = vmatprep.mubr.msk.f32.mxu1 %vm63_vm1, %v17856_v27  ;;  %v6949_v27 = vld [vmem:[%s19135_s1 + $0x158] sm:$0xff] }
 0x644   :  { %14728 = vmatmul.mubr.msk.f32.vlgmr.msra.gmra.mrb[64].mxu1 %vm63_vm1, %v17862_v22 }
 0x645   :  { %15460 = vmatpush3.bf16.msra.mxu1 %v15457_v61  ;;  %14730 = vmatprep.mubr.msk.f32.mxu1 %vm63_vm1, %v17864_v23 }
 0x646   :  { %15462 = vmatprep.subr.bf16.mxu1 %v15461_v34 }
 0x648   :  { %14731 = vmatmul.mubr.msk.f32.gmra.mrb[66].mxu1 %vm63_vm1, %v17870_v25 }
 0x649   :  { %14733 = vmatprep.mubr.msk.f32.mxu1 %vm63_vm1, %v17872_v28 }
 0x64c   :  { %14734 = vmatmul.mubr.msk.f32.gmra.mrb[68].mxu1 %vm63_vm1, %v17878_v13 }
 0x64d   :  { %14736 = vmatprep.mubr.msk.f32.mxu1 %vm63_vm1, %v17880_v58 }
 0x650   :  { %14737 = vmatmul.mubr.msk.f32.gmra.mrb[70].mxu1 %vm63_vm1, %v17930_v8 }
 0x651   :  { %14739 = vmatprep.mubr.msk.f32.mxu1 %vm63_vm1, %v17888_v62  ;;  %v6950_v62 = vld [vmem:[%s19135_s1 + $0x160] sm:$0xff] }
 0x652   :  { %v15465_v6 = vpack.c.bf16 %v6950_v62, %v6949_v27 }
 0x654   :  { %14740 = vmatmul.mubr.msk.f32.gmra.mrb[72].mxu1 %vm63_vm1, %v17894_v1 }
 0x655   :  { %14742 = vmatprep.mubr.msk.f32.mxu1 %vm63_vm1, %v17896_v4 }
 0x658   :  { %14743 = vmatmul.mubr.msk.f32.gmra.mrb[74].mxu1 %vm63_vm1, %v17902_v31 }
 0x659   :  { %14745 = vmatprep.mubr.msk.f32.mxu1 %vm63_vm1, %v17904_v32 }
 0x65c   :  { %14746 = vmatmul.mubr.msk.f32.gmra.mrb[76].mxu1 %vm63_vm1, %v17910_v37 }
 0x65d   :  { %14748 = vmatprep.mubr.msk.f32.mxu1 %vm63_vm1, %v17912_v29 }
 0x660   :  { %14749 = vmatmul.mubr.msk.f32.gmra.mrb[78].mxu1 %vm63_vm1, %v17936_v15 }
 0x661   :  { %14755 = vmatprep.mubr.msk.f32.mxu1 %vm63_vm1, %v17862_v22  ;;  %v18107_v22 = vld [vmem:[#allocation2 + $0xa0] sm:$0xff] }
 0x664   :  { %14756 = vmatmul.mubr.msk.f32.vlgmr.msra.gmra.mrb[64].mxu1 %vm63_vm1, %v17864_v23 }
 0x665   :  { %15464 = vmatpush3.bf16.msra.mxu1 %v15461_v34  ;;  %14758 = vmatprep.mubr.msk.f32.mxu1 %vm63_vm1, %v17870_v25 }
 0x666   :  { %15466 = vmatprep.subr.bf16.mxu1 %v15465_v6 }
 0x668   :  { %14759 = vmatmul.mubr.msk.f32.gmra.mrb[66].mxu1 %vm63_vm1, %v17872_v28 }
 0x669   :  { %14761 = vmatprep.mubr.msk.f32.mxu1 %vm63_vm1, %v17878_v13 }
 0x66c   :  { %14762 = vmatmul.mubr.msk.f32.gmra.mrb[68].mxu1 %vm63_vm1, %v17880_v58 }
 0x66d   :  { %14764 = vmatprep.mubr.msk.f32.mxu1 %vm63_vm1, %v17930_v8 }
 0x670   :  { %14765 = vmatmul.mubr.msk.f32.gmra.mrb[70].mxu1 %vm63_vm1, %v18107_v22 }
 0x671   :  { %14767 = vmatprep.mubr.msk.f32.mxu1 %vm63_vm1, %v17894_v1  ;;  %v7176_v1 = vld [vmem:[%s19135_s1 + $0x168] sm:$0xff] }
 0x672   :  { %v15469_v10 = vpack.c.bf16 %v7177_v46, %v7176_v1 }
 0x674   :  { %14768 = vmatmul.mubr.msk.f32.gmra.mrb[72].mxu1 %vm63_vm1, %v17896_v4 }
 0x675   :  { %14770 = vmatprep.mubr.msk.f32.mxu1 %vm63_vm1, %v17902_v31 }
 0x678   :  { %14771 = vmatmul.mubr.msk.f32.gmra.mrb[74].mxu1 %vm63_vm1, %v17904_v32 }
 0x679   :  { %14773 = vmatprep.mubr.msk.f32.mxu1 %vm63_vm1, %v17910_v37 }
 0x67c   :  { %14774 = vmatmul.mubr.msk.f32.gmra.mrb[76].mxu1 %vm63_vm1, %v17912_v29 }
 0x67d   :  { %14776 = vmatprep.mubr.msk.f32.mxu1 %vm63_vm1, %v17936_v15 }
 0x680   :  { %14777 = vmatmul.mubr.msk.f32.gmra.mrb[78].mxu1 %vm63_vm1, %v18125_v17 }
 0x681   :  { %14783 = vmatprep.mubr.msk.f32.mxu1 %vm63_vm1, %v17864_v23  ;;  %v6713_v23 = vld [vmem:[#allocation2 + $0xb0] sm:$0xff] }
 0x684   :  { %14784 = vmatmul.mubr.msk.f32.vlgmr.msra.gmra.mrb[64].mxu1 %vm63_vm1, %v17870_v25 }
 0x685   :  { %15468 = vmatpush3.bf16.msra.mxu1 %v15465_v6  ;;  %14786 = vmatprep.mubr.msk.f32.mxu1 %vm63_vm1, %v17872_v28 }
 0x686   :  { %15470 = vmatprep.subr.bf16.mxu1 %v15469_v10 }
 0x688   :  { %14787 = vmatmul.mubr.msk.f32.gmra.mrb[66].mxu1 %vm63_vm1, %v17878_v13 }
 0x689   :  { %14789 = vmatprep.mubr.msk.f32.mxu1 %vm63_vm1, %v17880_v58 }
 0x68c   :  { %14790 = vmatmul.mubr.msk.f32.gmra.mrb[68].mxu1 %vm63_vm1, %v17930_v8 }
 0x68d   :  { %14792 = vmatprep.mubr.msk.f32.mxu1 %vm63_vm1, %v18107_v22 }
 0x690   :  { %14793 = vmatmul.mubr.msk.f32.gmra.mrb[70].mxu1 %vm63_vm1, %v6713_v23 }
 0x691   :  { %14795 = vmatprep.mubr.msk.f32.mxu1 %vm63_vm1, %v17896_v4  ;;  %v6940_v4 = vld [vmem:[#allocation2 + $0xc0] sm:$0xff] }
 0x694   :  { %14796 = vmatmul.mubr.msk.f32.gmra.mrb[72].mxu1 %vm63_vm1, %v17902_v31 }
 0x695   :  { %14798 = vmatprep.mubr.msk.f32.mxu1 %vm63_vm1, %v17904_v32 }
 0x698   :  { %14799 = vmatmul.mubr.msk.f32.gmra.mrb[74].mxu1 %vm63_vm1, %v17910_v37 }
 0x699   :  { %14801 = vmatprep.mubr.msk.f32.mxu1 %vm63_vm1, %v17912_v29 }
 0x69c   :  { %14802 = vmatmul.mubr.msk.f32.gmra.mrb[76].mxu1 %vm63_vm1, %v17936_v15 }
 0x69d   :  { %14804 = vmatprep.mubr.msk.f32.mxu1 %vm63_vm1, %v18125_v17 }
 0x6a0   :  { %14805 = vmatmul.mubr.msk.f32.gmra.mrb[78].mxu1 %vm63_vm1, %v6721_v18 }
 0x6a1   :  { %14811 = vmatprep.mubr.msk.f32.mxu1 %vm63_vm1, %v17870_v25 }
 0x6a4   :  { %14812 = vmatmul.mubr.msk.f32.vlgmr.msra.gmra.mrb[64].mxu1 %vm63_vm1, %v17872_v28 }
 0x6a5   :  { %15472 = vmatpush3.bf16.msra.mxu1 %v15469_v10  ;;  %14814 = vmatprep.mubr.msk.f32.mxu1 %vm63_vm1, %v17878_v13 }
 0x6a8   :  { %14815 = vmatmul.mubr.msk.f32.gmra.mrb[66].mxu1 %vm63_vm1, %v17880_v58 }
 0x6a9   :  { %14817 = vmatprep.mubr.msk.f32.mxu1 %vm63_vm1, %v17930_v8 }
 0x6ac   :  { %14818 = vmatmul.mubr.msk.f32.gmra.mrb[68].mxu1 %vm63_vm1, %v18107_v22 }
 0x6ad   :  { %14820 = vmatprep.mubr.msk.f32.mxu1 %vm63_vm1, %v6713_v23 }
 0x6b0   :  { %14821 = vmatmul.mubr.msk.f32.gmra.mrb[70].mxu1 %vm63_vm1, %v6940_v4 }
 0x6b1   :  { %14823 = vmatprep.mubr.msk.f32.mxu1 %vm63_vm1, %v17902_v31  ;;  %v6948_v31 = vld [vmem:[#allocation2 + $0x1a0] sm:$0xff] }
 0x6b4   :  { %14824 = vmatmul.mubr.msk.f32.gmra.mrb[72].mxu1 %vm63_vm1, %v17904_v32 }
 0x6b5   :  { %14826 = vmatprep.mubr.msk.f32.mxu1 %vm63_vm1, %v17910_v37 }
 0x6b7   :  { %v18185_v25 = vpop.f32.mrb[48].mxu1 }
 0x6b8   :  { %v18187_v24 = vpop.f32.mrb[49].mxu1  ;;  %14827 = vmatmul.mubr.msk.f32.gmra.mrb[74].mxu1 %vm63_vm1, %v17912_v29 }
 0x6b9   :  { %14829 = vmatprep.mubr.msk.f32.mxu1 %vm63_vm1, %v17936_v15 }
 0x6bb   :  { %v18193_v11 = vpop.f32.mrb[50].mxu1 }
 0x6bc   :  { %v18195_v52 = vpop.f32.mrb[51].mxu1  ;;  %14830 = vmatmul.mubr.msk.f32.gmra.mrb[76].mxu1 %vm63_vm1, %v18125_v17 }
 0x6bd   :  { %14832 = vmatprep.mubr.msk.f32.mxu1 %vm63_vm1, %v6721_v18 }
 0x6bf   :  { %v18200_v7 = vpop.f32.mrb[52].mxu1 }
 0x6c0   :  { %v18202_v3 = vpop.f32.mrb[53].mxu1  ;;  %14833 = vmatmul.mubr.msk.f32.gmra.mrb[78].mxu1 %vm63_vm1, %v6948_v31 }
 0x6c1   :  { %14839 = vmatprep.mubr.msk.f32.mxu1 %vm63_vm1, %v17872_v28 }
 0x6c3   :  { %v18207_v38 = vpop.f32.mrb[54].mxu1 }
 0x6c4   :  { %v18209_v40 = vpop.f32.mrb[55].mxu1  ;;  %14840 = vmatmul.mubr.msk.f32.vlgmr.msra.gmra.mrb[64].mxu1 %vm63_vm1, %v17878_v13  ;;  %v7167_v13 = vld [vmem:[#allocation2 + $0xd0] sm:$0xff] }
 0x6c5   :  { %14842 = vmatprep.mubr.msk.f32.mxu1 %vm63_vm1, %v17880_v58 }
 0x6c7   :  { %v18215_v41 = vpop.f32.mrb[56].mxu1 }
 0x6c8   :  { %v18217_v42 = vpop.f32.mrb[57].mxu1  ;;  %14843 = vmatmul.mubr.msk.f32.gmra.mrb[66].mxu1 %vm63_vm1, %v17930_v8 }
 0x6c9   :  { %14845 = vmatprep.mubr.msk.f32.mxu1 %vm63_vm1, %v18107_v22 }
 0x6cb   :  { %v18223_v28 = vpop.f32.mrb[58].mxu1 }
 0x6cc   :  { %v18225_v44 = vpop.f32.mrb[59].mxu1  ;;  %14846 = vmatmul.mubr.msk.f32.gmra.mrb[68].mxu1 %vm63_vm1, %v6713_v23 }
 0x6cd   :  { %14848 = vmatprep.mubr.msk.f32.mxu1 %vm63_vm1, %v6940_v4 }
 0x6cf   :  { %v18229_v58 = vpop.f32.mrb[60].mxu1 }
 0x6d0   :  { %v18231_v47 = vpop.f32.mrb[61].mxu1  ;;  %14849 = vmatmul.mubr.msk.f32.gmra.mrb[70].mxu1 %vm63_vm1, %v7167_v13 }
 0x6d1   :  { %14851 = vmatprep.mubr.msk.f32.mxu1 %vm63_vm1, %v17904_v32  ;;  %v7175_v32 = vld [vmem:[#allocation2 + $0x1b0] sm:$0xff] }
 0x6d3   :  { %v18236_v8 = vpop.f32.mrb[62].mxu1 }
 0x6d4   :  { %19238 = vst [vmem:[#allocation19_spill] sm:$0xff] %v18236_v8  ;;  %v18238_v48 = vpop.f32.mrb[63].mxu1  ;;  %14852 = vmatmul.mubr.msk.f32.gmra.mrb[72].mxu1 %vm63_vm1, %v17910_v37  ;;  %v7721_v37 = vld [vmem:[%s19135_s1 + $0x190] sm:$0xff]  ;;  %v8350_v8 = vld [vmem:[%s19135_s1 + $0x1a0] sm:$0xff] }
 0x6d5   :  { %14854 = vmatprep.mubr.msk.f32.mxu1 %vm63_vm1, %v17912_v29  ;;  %14891 = vmatprep.subr.mxu0 %v7721_v37  ;;  %v12740_v29 = vld [vmem:[%s19137_s2 + $0x5] ss:$0 sm:$0xff] }
 0x6d8   :  { %14855 = vmatmul.mubr.msk.f32.gmra.mrb[74].mxu1 %vm63_vm1, %v17936_v15 }
 0x6d9   :  { %14857 = vmatprep.mubr.msk.f32.mxu1 %vm63_vm1, %v18125_v17 }
 0x6dc   :  { %14858 = vmatmul.mubr.msk.f32.gmra.mrb[76].mxu1 %vm63_vm1, %v6721_v18 }
 0x6dd   :  { %14860 = vmatprep.mubr.msk.f32.mxu1 %vm63_vm1, %v6948_v31 }
 0x6e0   :  { %14861 = vmatmul.mubr.msk.f32.gmra.mrb[78].mxu1 %vm63_vm1, %v7175_v32 }
 0x797   :  { %v14841_v15 = vpop.f32.mrb[64].mxu1 }
 0x798   :  { %v7292_v49 = vpop.f32.mrb[65].mxu1  ;;  %v7393_v30 = vadd.f32 %v14841_v15, %v12740_v29 }
 0x799   :  { %v7392_v51 = vadd.f32 %v12740_v29, %v7292_v49 }
 0x79b   :  { %v14844_v54 = vpop.f32.mrb[66].mxu1  ;;  %14867 = vmatprep.mubr.msk.f32.mxu0 %vm63_vm1, %v7392_v51  ;;  %v7705_v51 = vld [vmem:[#allocation2 + $0x1] sm:$0xff] }
 0x79c   :  { %v7302_v56 = vpop.f32.mrb[67].mxu1  ;;  %14868 = vmatmul.mubr.msk.f32.vlgmr.msra.gmra.mrb[32].mxu0 %vm63_vm1, %v7393_v30  ;;  %v7395_v26 = vadd.f32 %v14844_v54, %v12740_v29  ;;  %v7704_v30 = vld [vmem:[%s19135_s1 + $0x188] sm:$0xff]  ;;  %v18277_v54 = vld [vmem:[#allocation2] sm:$0xff] }
 0x79d   :  { %v7394_v35 = vadd.f32 %v12740_v29, %v7302_v56  ;;  %14892 = vmatpush3.msra.mxu0 %v7721_v37  ;;  %v18279_v56 = vld [vmem:[#allocation2 + $0x2] sm:$0xff] }
 0x79e   :  { %14917 = vmatprep.subr.mxu0 %v7704_v30  ;;  %9728 = vst.msk [vmem:[#allocation2] sm:$0x7] %vm9727_vm3, %v19194_v55 }
 0x79f   :  { %v14847_v61 = vpop.f32.mrb[68].mxu1  ;;  %14870 = vmatprep.mubr.msk.f32.mxu0 %vm63_vm1, %v7394_v35  ;;  %v18285_v35 = vld [vmem:[#allocation2 + $0xe0] sm:$0xff] }
 0x7a0   :  { %v7312_v14 = vpop.f32.mrb[69].mxu1  ;;  %14871 = vmatmul.mubr.msk.f32.gmra.mrb[34].mxu0 %vm63_vm1, %v7395_v26  ;;  %v7397_v34 = vadd.f32 %v14847_v61, %v12740_v29  ;;  %v18287_v26 = vld [vmem:[#allocation2 + $0xe2] sm:$0xff] }
 0x7a1   :  { %v7396_v9 = vadd.f32 %v12740_v29, %v7312_v14  ;;  %v18294_v61 = vld [vmem:[%s19137_s2 + $0x6] ss:$0 sm:$0xff] }
 0x7a3   :  { %v14850_v27 = vpop.f32.mrb[70].mxu1  ;;  %14873 = vmatprep.mubr.msk.f32.mxu0 %vm63_vm1, %v7396_v9 }
 0x7a4   :  { %v7322_v62 = vpop.f32.mrb[71].mxu1  ;;  %14874 = vmatmul.mubr.msk.f32.gmra.mrb[36].mxu0 %vm63_vm1, %v7397_v34  ;;  %v7399_v16 = vadd.f32 %v14850_v27, %v12740_v29 }
 0x7a5   :  { %v7398_v59 = vadd.f32 %v12740_v29, %v7322_v62 }
 0x7a7   :  { %v14853_v20 = vpop.f32.mrb[72].mxu1  ;;  %14876 = vmatprep.mubr.msk.f32.mxu0 %vm63_vm1, %v7398_v59 }
 0x7a8   :  { %v7332_v6 = vpop.f32.mrb[73].mxu1  ;;  %14877 = vmatmul.mubr.msk.f32.gmra.mrb[38].mxu0 %vm63_vm1, %v7399_v16  ;;  %v7401_v17 = vadd.f32 %v14853_v20, %v12740_v29 }
 0x7a9   :  { %v7400_v22 = vadd.f32 %v12740_v29, %v7332_v6 }
 0x7ab   :  { %v14856_v1 = vpop.f32.mrb[74].mxu1  ;;  %14879 = vmatprep.mubr.msk.f32.mxu0 %vm63_vm1, %v7400_v22 }
 0x7ac   :  { %v7342_v46 = vpop.f32.mrb[75].mxu1  ;;  %14880 = vmatmul.mubr.msk.f32.gmra.mrb[40].mxu0 %vm63_vm1, %v7401_v17  ;;  %v7403_v23 = vadd.f32 %v14856_v1, %v12740_v29 }
 0x7ad   :  { %v7402_v10 = vadd.f32 %v12740_v29, %v7342_v46 }
 0x7af   :  { %v14859_v18 = vpop.f32.mrb[76].mxu1  ;;  %14882 = vmatprep.mubr.msk.f32.mxu0 %vm63_vm1, %v7402_v10 }
 0x7b0   :  { %v7352_v4 = vpop.f32.mrb[77].mxu1  ;;  %14883 = vmatmul.mubr.msk.f32.gmra.mrb[42].mxu0 %vm63_vm1, %v7403_v23  ;;  %v7405_v13 = vadd.f32 %v14859_v18, %v12740_v29 }
 0x7b1   :  { %v7404_v31 = vadd.f32 %v12740_v29, %v7352_v4 }
 0x7b3   :  { %v14862_v32 = vpop.f32.mrb[78].mxu1  ;;  %14885 = vmatprep.mubr.msk.f32.mxu0 %vm63_vm1, %v7404_v31  ;;  %v18309_v31 = vld [vmem:[%s19135_s1 + $0x198] sm:$0xff] }
 0x7b4   :  { %v7362_v37 = vpop.f32.mrb[79].mxu1  ;;  %14886 = vmatmul.mubr.msk.f32.gmra.mrb[44].mxu0 %vm63_vm1, %v7405_v13  ;;  %v7407_v49 = vadd.f32 %v14862_v32, %v12740_v29 }
 0x7b5   :  { %v7406_v15 = vadd.f32 %v12740_v29, %v7362_v37  ;;  %v18283_v29 = vld [vmem:[#allocation2 + $0xe1] sm:$0xff] }
 0x7b6   :  { %9736 = vst.msk [vmem:[#allocation2 + $0xe0] sm:$0x7] %vm9727_vm3, %v19194_v55 }
 0x7b7   :  { %14888 = vmatprep.mubr.msk.f32.mxu0 %vm63_vm1, %v7406_v15 }
 0x7b8   :  { %14889 = vmatmul.mubr.msk.f32.gmra.mrb[46].mxu0 %vm63_vm1, %v7407_v49 }
 0x7b9   :  { %14893 = vmatprep.mubr.msk.f32.mxu0 %vm1874_vm4, %v7705_v51 }
 0x86f   :  { %v14869_v14 = vpop.f32.mrb[32].mxu0 }
 0x870   :  { %v7535_v9 = vadd.f32 %v14869_v14, %v18294_v61  ;;  %v7529_v34 = vpop.f32.mrb[33].mxu0 }
 0x871   :  { %v7530_v27 = vadd.f32 %v18294_v61, %v7529_v34 }
 0x872   :  { %v7609_v62 = vmax.f32 %v7535_v9, 0.0 }
 0x873   :  { %v7608_v59 = vmax.f32 %v7530_v27, 0.0  ;;  %v14872_v16 = vpop.f32.mrb[34].mxu0 }
 0x874   :  { %7673 = vst.msk [vmem:[#allocation2 + $0x21] sm:$0xff] %vm1874_vm4, %v7609_v62  ;;  %v7545_v20 = vadd.f32 %v14872_v16, %v18294_v61  ;;  %v7539_v6 = vpop.f32.mrb[35].mxu0 }
 0x875   :  { %7672 = vst.msk [vmem:[#allocation2 + $0x11] sm:$0xff] %vm1874_vm4, %v7608_v59  ;;  %v7540_v22 = vadd.f32 %v18294_v61, %v7539_v6 }
 0x876   :  { %v7611_v17 = vmax.f32 %v7545_v20, 0.0 }
 0x877   :  { %v7610_v1 = vmax.f32 %v7540_v22, 0.0  ;;  %v14875_v46 = vpop.f32.mrb[36].mxu0 }
 0x878   :  { %7675 = vst.msk [vmem:[#allocation2 + $0x41] sm:$0xff] %vm1874_vm4, %v7611_v17  ;;  %v7555_v10 = vadd.f32 %v14875_v46, %v18294_v61  ;;  %v7549_v23 = vpop.f32.mrb[37].mxu0 }
 0x879   :  { %7674 = vst.msk [vmem:[#allocation2 + $0x31] sm:$0xff] %vm1874_vm4, %v7610_v1  ;;  %v7550_v18 = vadd.f32 %v18294_v61, %v7549_v23 }
 0x87a   :  { %v7613_v4 = vmax.f32 %v7555_v10, 0.0 }
 0x87b   :  { %v7612_v13 = vmax.f32 %v7550_v18, 0.0  ;;  %v14878_v32 = vpop.f32.mrb[38].mxu0  ;;  %v18311_v37 = vld [vmem:[#allocation2 + $0x21] sm:$0xff] }
 0x87c   :  { %v18313_v15 = vld [vmem:[#allocation2 + $0x20] sm:$0xff]  ;;  %7677 = vst.msk [vmem:[#allocation2 + $0x61] sm:$0xff] %vm1874_vm4, %v7613_v4  ;;  %v7565_v51 = vadd.f32 %v14878_v32, %v18294_v61  ;;  %v7559_v14 = vpop.f32.mrb[39].mxu0  ;;  %v18319_v9 = vld [vmem:[#allocation2 + $0x11] sm:$0xff] }
 0x87d   :  { %v18315_v49 = vld [vmem:[#allocation2 + $0x22] sm:$0xff]  ;;  %v18321_v34 = vld [vmem:[#allocation2 + $0x10] sm:$0xff]  ;;  %7676 = vst.msk [vmem:[#allocation2 + $0x51] sm:$0xff] %vm1874_vm4, %v7612_v13  ;;  %v7560_v62 = vadd.f32 %v18294_v61, %v7559_v14  ;;  %14894 = vmatmul.mubr.msk.f32.vlgmr.msra.gmra.mrb[48].mxu0 %vm1874_vm4, %v18319_v9 }
 0x87e   :  { %v18323_v27 = vld [vmem:[#allocation2 + $0x12] sm:$0xff]  ;;  %9730 = vst.msk [vmem:[#allocation2 + $0x20] sm:$0x7] %vm9727_vm3, %v19194_v55  ;;  %v7615_v59 = vmax.f32 %v7565_v51, 0.0  ;;  %14918 = vmatpush3.msra.mxu0 %v7704_v30  ;;  %14896 = vmatprep.mubr.msk.f32.mxu0 %vm1874_vm4, %v18311_v37 }
 0x87f   :  { %9729 = vst.msk [vmem:[#allocation2 + $0x10] sm:$0x7] %vm9727_vm3, %v19194_v55  ;;  %v7614_v16 = vmax.f32 %v7560_v62, 0.0  ;;  %v14881_v20 = vpop.f32.mrb[40].mxu0  ;;  %v18335_v6 = vld [vmem:[#allocation2 + $0x41] sm:$0xff]  ;;  %14943 = vmatprep.subr.mxu0 %v18309_v31 }
 0x880   :  { %v18338_v22 = vld [vmem:[#allocation2 + $0x40] sm:$0xff]  ;;  %7679 = vst.msk [vmem:[#allocation2 + $0x81] sm:$0xff] %vm1874_vm4, %v7615_v59  ;;  %v7575_v1 = vadd.f32 %v14881_v20, %v18294_v61  ;;  %v7569_v46 = vpop.f32.mrb[41].mxu0  ;;  %v18344_v10 = vld [vmem:[#allocation2 + $0x31] sm:$0xff] }
 0x881   :  { %v18340_v17 = vld [vmem:[#allocation2 + $0x42] sm:$0xff]  ;;  %v18346_v30 = vld [vmem:[#allocation2 + $0x30] sm:$0xff]  ;;  %7678 = vst.msk [vmem:[#allocation2 + $0x71] sm:$0xff] %vm1874_vm4, %v7614_v16  ;;  %v7570_v18 = vadd.f32 %v18294_v61, %v7569_v46  ;;  %14897 = vmatmul.mubr.msk.f32.gmra.mrb[50].mxu0 %vm1874_vm4, %v18344_v10 }
 0x882   :  { %v18348_v23 = vld [vmem:[#allocation2 + $0x32] sm:$0xff]  ;;  %9732 = vst.msk [vmem:[#allocation2 + $0x40] sm:$0x7] %vm9727_vm3, %v19194_v55  ;;  %v7617_v4 = vmax.f32 %v7575_v1, 0.0  ;;  %14899 = vmatprep.mubr.msk.f32.mxu0 %vm1874_vm4, %v18335_v6 }
 0x883   :  { %9731 = vst.msk [vmem:[#allocation2 + $0x30] sm:$0x7] %vm9727_vm3, %v19194_v55  ;;  %v7616_v13 = vmax.f32 %v7570_v18, 0.0  ;;  %v14884_v32 = vpop.f32.mrb[42].mxu0  ;;  %v18360_v51 = vld [vmem:[#allocation2 + $0x61] sm:$0xff] }
 0x884   :  { %v18362_v14 = vld [vmem:[#allocation2 + $0x60] sm:$0xff]  ;;  %7681 = vst.msk [vmem:[#allocation2 + $0x101] sm:$0xff] %vm1874_vm4, %v7617_v4  ;;  %v7585_v59 = vadd.f32 %v14884_v32, %v18294_v61  ;;  %v7579_v16 = vpop.f32.mrb[43].mxu0  ;;  %v18368_v20 = vld [vmem:[#allocation2 + $0x51] sm:$0xff] }
 0x885   :  { %v18364_v62 = vld [vmem:[#allocation2 + $0x62] sm:$0xff]  ;;  %v18370_v46 = vld [vmem:[#allocation2 + $0x50] sm:$0xff]  ;;  %7680 = vst.msk [vmem:[#allocation2 + $0xf1] sm:$0xff] %vm1874_vm4, %v7616_v13  ;;  %v7580_v18 = vadd.f32 %v18294_v61, %v7579_v16  ;;  %14900 = vmatmul.mubr.msk.f32.gmra.mrb[52].mxu0 %vm1874_vm4, %v18368_v20 }
 0x886   :  { %v18372_v1 = vld [vmem:[#allocation2 + $0x52] sm:$0xff]  ;;  %9734 = vst.msk [vmem:[#allocation2 + $0x60] sm:$0x7] %vm9727_vm3, %v19194_v55  ;;  %v7619_v4 = vmax.f32 %v7585_v59, 0.0  ;;  %14902 = vmatprep.mubr.msk.f32.mxu0 %vm1874_vm4, %v18360_v51 }
 0x887   :  { %9733 = vst.msk [vmem:[#allocation2 + $0x50] sm:$0x7] %vm9727_vm3, %v19194_v55  ;;  %v7618_v32 = vmax.f32 %v7580_v18, 0.0  ;;  %v14887_v12 = vpop.f32.mrb[44].mxu0 }
 0x888   :  { %7683 = vst.msk [vmem:[#allocation2 + $0x121] sm:$0xff] %vm1874_vm4, %v7619_v4  ;;  %v7595_v53 = vadd.f32 %v14887_v12, %v18294_v61  ;;  %v7589_v5 = vpop.f32.mrb[45].mxu0  ;;  %v18386_v13 = vld [vmem:[#allocation2 + $0x71] sm:$0xff] }
 0x889   :  { %v18388_v16 = vld [vmem:[#allocation2 + $0x70] sm:$0xff]  ;;  %7682 = vst.msk [vmem:[#allocation2 + $0x111] sm:$0xff] %vm1874_vm4, %v7618_v32  ;;  %v7590_v59 = vadd.f32 %v18294_v61, %v7589_v5  ;;  %14903 = vmatmul.mubr.msk.f32.gmra.mrb[54].mxu0 %vm1874_vm4, %v18386_v13 }
 0x88a   :  { %v18390_v36 = vld [vmem:[#allocation2 + $0x72] sm:$0xff]  ;;  %v7621_v18 = vmax.f32 %v7595_v53, 0.0  ;;  %14905 = vmatprep.mubr.msk.f32.mxu0 %vm1874_vm4, %v18283_v29 }
 0x88b   :  { %9735 = vst.msk [vmem:[#allocation2 + $0x70] sm:$0x7] %vm9727_vm3, %v19194_v55  ;;  %v7620_v12 = vmax.f32 %v7590_v59, 0.0  ;;  %v14890_v4 = vpop.f32.mrb[46].mxu0  ;;  %v18400_v50 = vld [vmem:[#allocation2 + $0x101] sm:$0xff] }
 0x88c   :  { %v18402_v57 = vld [vmem:[#allocation2 + $0x100] sm:$0xff]  ;;  %7685 = vst.msk [vmem:[#allocation2 + $0x141] sm:$0xff] %vm1874_vm4, %v7621_v18  ;;  %v7605_v5 = vadd.f32 %v14890_v4, %v18294_v61  ;;  %v7599_v32 = vpop.f32.mrb[47].mxu0  ;;  %v18408_v45 = vld [vmem:[#allocation2 + $0xf1] sm:$0xff] }
 0x88d   :  { %v18404_v43 = vld [vmem:[#allocation2 + $0x102] sm:$0xff]  ;;  %v18410_v19 = vld [vmem:[#allocation2 + $0xf0] sm:$0xff]  ;;  %7684 = vst.msk [vmem:[#allocation2 + $0x131] sm:$0xff] %vm1874_vm4, %v7620_v12  ;;  %v7600_v29 = vadd.f32 %v18294_v61, %v7599_v32  ;;  %14906 = vmatmul.mubr.msk.f32.gmra.mrb[56].mxu0 %vm1874_vm4, %v18408_v45 }
 0x88e   :  { %v18412_v53 = vld [vmem:[#allocation2 + $0xf2] sm:$0xff]  ;;  %9738 = vst.msk [vmem:[#allocation2 + $0x100] sm:$0x7] %vm9727_vm3, %v19194_v55  ;;  %v7623_v59 = vmax.f32 %v7605_v5, 0.0  ;;  %14908 = vmatprep.mubr.msk.f32.mxu0 %vm1874_vm4, %v18400_v50 }
 0x88f   :  { %9737 = vst.msk [vmem:[#allocation2 + $0xf0] sm:$0x7] %vm9727_vm3, %v19194_v55  ;;  %v7622_v18 = vmax.f32 %v7600_v29, 0.0  ;;  %v18424_v4 = vld [vmem:[#allocation2 + $0x121] sm:$0xff] }
 0x890   :  { %v18426_v0 = vld [vmem:[#allocation2 + $0x120] sm:$0xff]  ;;  %7687 = vst.msk [vmem:[#allocation2 + $0x161] sm:$0xff] %vm1874_vm4, %v7623_v59  ;;  %v18431_v61 = vld [vmem:[#allocation2 + $0x111] sm:$0xff] }
 0x891   :  { %v18428_v60 = vld [vmem:[#allocation2 + $0x122] sm:$0xff]  ;;  %v18433_v12 = vld [vmem:[#allocation2 + $0x110] sm:$0xff]  ;;  %7686 = vst.msk [vmem:[#allocation2 + $0x151] sm:$0xff] %vm1874_vm4, %v7622_v18  ;;  %14909 = vmatmul.mubr.msk.f32.gmra.mrb[58].mxu0 %vm1874_vm4, %v18431_v61 }
 0x892   :  { %v18435_v32 = vld [vmem:[#allocation2 + $0x112] sm:$0xff]  ;;  %9740 = vst.msk [vmem:[#allocation2 + $0x120] sm:$0x7] %vm9727_vm3, %v19194_v55  ;;  %14911 = vmatprep.mubr.msk.f32.mxu0 %vm1874_vm4, %v18424_v4 }
 0x893   :  { %9739 = vst.msk [vmem:[#allocation2 + $0x110] sm:$0x7] %vm9727_vm3, %v19194_v55  ;;  %v18446_v5 = vld [vmem:[#allocation2 + $0x141] sm:$0xff] }
 0x894   :  { %v18448_v29 = vld [vmem:[#allocation2 + $0x140] sm:$0xff]  ;;  %v18452_v63 = vld [vmem:[#allocation2 + $0x131] sm:$0xff] }
 0x895   :  { %v18450_v59 = vld [vmem:[#allocation2 + $0x142] sm:$0xff]  ;;  %v18454_v21 = vld [vmem:[#allocation2 + $0x130] sm:$0xff]  ;;  %14912 = vmatmul.mubr.msk.f32.gmra.mrb[60].mxu0 %vm1874_vm4, %v18452_v63 }
 0x896   :  { %v18456_v18 = vld [vmem:[#allocation2 + $0x132] sm:$0xff]  ;;  %9742 = vst.msk [vmem:[#allocation2 + $0x140] sm:$0x7] %vm9727_vm3, %v19194_v55  ;;  %14914 = vmatprep.mubr.msk.f32.mxu0 %vm1874_vm4, %v18446_v5 }
 0x897   :  { %9741 = vst.msk [vmem:[#allocation2 + $0x130] sm:$0x7] %vm9727_vm3, %v19194_v55 }
 0x898   :  { %v18466_v2 = vld [vmem:[#allocation2 + $0x151] sm:$0xff] }
 0x899   :  { %v18468_v33 = vld [vmem:[#allocation2 + $0x150] sm:$0xff]  ;;  %14915 = vmatmul.mubr.msk.f32.gmra.mrb[62].mxu0 %vm1874_vm4, %v18466_v2 }
 0x89a   :  { %v18470_v39 = vld [vmem:[#allocation2 + $0x152] sm:$0xff]  ;;  %14919 = vmatprep.mubr.msk.f32.mxu0 %vm1874_vm4, %v18277_v54  ;;  %v18564_v54 = vld [vmem:[#allocation2 + $0x80] sm:$0xff] }
 0x89b   :  { %9743 = vst.msk [vmem:[#allocation2 + $0x150] sm:$0x7] %vm9727_vm3, %v19194_v55  ;;  %v8576_v55 = vld [vmem:[%s19135_s1 + $0x1a8] sm:$0xff] }
 0x89d   :  { %14920 = vmatmul.mubr.msk.f32.vlgmr.msra.gmra.mrb[48].mxu0 %vm1874_vm4, %v18321_v34 }
 0x89e   :  { %14944 = vmatpush3.msra.mxu0 %v18309_v31  ;;  %14922 = vmatprep.mubr.msk.f32.mxu0 %vm1874_vm4, %v18313_v15  ;;  %v9254_v31 = vld [vmem:[%s19135_s1 + $0x1c0] sm:$0xff] }
 0x89f   :  { %14969 = vmatprep.subr.mxu0 %v8350_v8 }
 0x8a1   :  { %14923 = vmatmul.mubr.msk.f32.gmra.mrb[50].mxu0 %vm1874_vm4, %v18346_v30 }
 0x8a2   :  { %14925 = vmatprep.mubr.msk.f32.mxu0 %vm1874_vm4, %v18338_v22 }
 0x8a5   :  { %14926 = vmatmul.mubr.msk.f32.gmra.mrb[52].mxu0 %vm1874_vm4, %v18370_v46 }
 0x8a6   :  { %14928 = vmatprep.mubr.msk.f32.mxu0 %vm1874_vm4, %v18362_v14 }
 0x8a9   :  { %14929 = vmatmul.mubr.msk.f32.gmra.mrb[54].mxu0 %vm1874_vm4, %v18388_v16 }
 0x8aa   :  { %14931 = vmatprep.mubr.msk.f32.mxu0 %vm1874_vm4, %v18285_v35  ;;  %v18603_v35 = vld [vmem:[#allocation2 + $0x81] sm:$0xff] }
 0x8ad   :  { %14932 = vmatmul.mubr.msk.f32.gmra.mrb[56].mxu0 %vm1874_vm4, %v18410_v19 }
 0x8ae   :  { %14934 = vmatprep.mubr.msk.f32.mxu0 %vm1874_vm4, %v18402_v57 }
 0x8b1   :  { %14935 = vmatmul.mubr.msk.f32.gmra.mrb[58].mxu0 %vm1874_vm4, %v18433_v12 }
 0x8b2   :  { %14937 = vmatprep.mubr.msk.f32.mxu0 %vm1874_vm4, %v18426_v0 }
 0x8b5   :  { %14938 = vmatmul.mubr.msk.f32.gmra.mrb[60].mxu0 %vm1874_vm4, %v18454_v21 }
 0x8b6   :  { %14940 = vmatprep.mubr.msk.f32.mxu0 %vm1874_vm4, %v18448_v29 }
 0x8b9   :  { %14941 = vmatmul.mubr.msk.f32.gmra.mrb[62].mxu0 %vm1874_vm4, %v18468_v33 }
 0x8ba   :  { %14945 = vmatprep.mubr.msk.f32.mxu0 %vm1874_vm4, %v18279_v56  ;;  %v18582_v56 = vld [vmem:[#allocation2 + $0x160] sm:$0xff] }
 0x8bd   :  { %14946 = vmatmul.mubr.msk.f32.vlgmr.msra.gmra.mrb[48].mxu0 %vm1874_vm4, %v18323_v27 }
 0x8be   :  { %14970 = vmatpush3.msra.mxu0 %v8350_v8  ;;  %14948 = vmatprep.mubr.msk.f32.mxu0 %vm1874_vm4, %v18315_v49  ;;  %v8802_v8 = vld [vmem:[%s19135_s1 + $0x1b0] sm:$0xff] }
 0x8bf   :  { %14995 = vmatprep.subr.mxu0 %v8576_v55 }
 0x8c1   :  { %14949 = vmatmul.mubr.msk.f32.gmra.mrb[50].mxu0 %vm1874_vm4, %v18348_v23 }
 0x8c2   :  { %14951 = vmatprep.mubr.msk.f32.mxu0 %vm1874_vm4, %v18340_v17 }
 0x8c5   :  { %14952 = vmatmul.mubr.msk.f32.gmra.mrb[52].mxu0 %vm1874_vm4, %v18372_v1 }
 0x8c6   :  { %14954 = vmatprep.mubr.msk.f32.mxu0 %vm1874_vm4, %v18364_v62 }
 0x8c9   :  { %14955 = vmatmul.mubr.msk.f32.gmra.mrb[54].mxu0 %vm1874_vm4, %v18390_v36 }
 0x8ca   :  { %14957 = vmatprep.mubr.msk.f32.mxu0 %vm1874_vm4, %v18287_v26  ;;  %v18621_v26 = vld [vmem:[#allocation2 + $0x161] sm:$0xff] }
 0x8cd   :  { %14958 = vmatmul.mubr.msk.f32.gmra.mrb[56].mxu0 %vm1874_vm4, %v18412_v53 }
 0x8ce   :  { %14960 = vmatprep.mubr.msk.f32.mxu0 %vm1874_vm4, %v18404_v43 }
 0x8d1   :  { %14961 = vmatmul.mubr.msk.f32.gmra.mrb[58].mxu0 %vm1874_vm4, %v18435_v32 }
 0x8d2   :  { %14963 = vmatprep.mubr.msk.f32.mxu0 %vm1874_vm4, %v18428_v60 }
 0x8d5   :  { %14964 = vmatmul.mubr.msk.f32.gmra.mrb[60].mxu0 %vm1874_vm4, %v18456_v18 }
 0x8d6   :  { %14966 = vmatprep.mubr.msk.f32.mxu0 %vm1874_vm4, %v18450_v59 }
 0x8d9   :  { %14967 = vmatmul.mubr.msk.f32.gmra.mrb[62].mxu0 %vm1874_vm4, %v18470_v39 }
 0x8da   :  { %14971 = vmatprep.mubr.msk.f32.mxu0 %vm1874_vm4, %v18321_v34  ;;  %v8801_v34 = vld [vmem:[#allocation2 + $0x162] sm:$0xff] }
 0x8dd   :  { %14972 = vmatmul.mubr.msk.f32.vlgmr.msra.gmra.mrb[48].mxu0 %vm1874_vm4, %v18313_v15 }
 0x8de   :  { %14996 = vmatpush3.msra.mxu0 %v8576_v55  ;;  %14974 = vmatprep.mubr.msk.f32.mxu0 %vm1874_vm4, %v18346_v30 }
 0x8df   :  { %15021 = vmatprep.subr.mxu0 %v8802_v8 }
 0x8e1   :  { %14975 = vmatmul.mubr.msk.f32.gmra.mrb[50].mxu0 %vm1874_vm4, %v18338_v22 }
 0x8e2   :  { %14977 = vmatprep.mubr.msk.f32.mxu0 %vm1874_vm4, %v18370_v46 }
 0x8e5   :  { %14978 = vmatmul.mubr.msk.f32.gmra.mrb[52].mxu0 %vm1874_vm4, %v18362_v14 }
 0x8e6   :  { %14980 = vmatprep.mubr.msk.f32.mxu0 %vm1874_vm4, %v18388_v16 }
 0x8e9   :  { %14981 = vmatmul.mubr.msk.f32.gmra.mrb[54].mxu0 %vm1874_vm4, %v18564_v54 }
 0x8ea   :  { %14983 = vmatprep.mubr.msk.f32.mxu0 %vm1874_vm4, %v18410_v19  ;;  %v9028_v19 = vld [vmem:[%s19135_s1 + $0x1b8] sm:$0xff] }
 0x8ed   :  { %14984 = vmatmul.mubr.msk.f32.gmra.mrb[56].mxu0 %vm1874_vm4, %v18402_v57 }
 0x8ee   :  { %14986 = vmatprep.mubr.msk.f32.mxu0 %vm1874_vm4, %v18433_v12 }
 0x8f1   :  { %14987 = vmatmul.mubr.msk.f32.gmra.mrb[58].mxu0 %vm1874_vm4, %v18426_v0 }
 0x8f2   :  { %14989 = vmatprep.mubr.msk.f32.mxu0 %vm1874_vm4, %v18454_v21 }
 0x8f5   :  { %14990 = vmatmul.mubr.msk.f32.gmra.mrb[60].mxu0 %vm1874_vm4, %v18448_v29 }
 0x8f6   :  { %14992 = vmatprep.mubr.msk.f32.mxu0 %vm1874_vm4, %v18468_v33 }
 0x8f9   :  { %14993 = vmatmul.mubr.msk.f32.gmra.mrb[62].mxu0 %vm1874_vm4, %v18582_v56 }
 0x8fa   :  { %14997 = vmatprep.mubr.msk.f32.mxu0 %vm1874_vm4, %v18319_v9  ;;  %v8793_v9 = vld [vmem:[#allocation2 + $0x82] sm:$0xff] }
 0x8fd   :  { %14998 = vmatmul.mubr.msk.f32.vlgmr.msra.gmra.mrb[48].mxu0 %vm1874_vm4, %v18311_v37 }
 0x8fe   :  { %15022 = vmatpush3.msra.mxu0 %v8802_v8  ;;  %15000 = vmatprep.mubr.msk.f32.mxu0 %vm1874_vm4, %v18344_v10 }
 0x8ff   :  { %15047 = vmatprep.subr.mxu0 %v9028_v19 }
 0x901   :  { %15001 = vmatmul.mubr.msk.f32.gmra.mrb[50].mxu0 %vm1874_vm4, %v18335_v6 }
 0x902   :  { %15003 = vmatprep.mubr.msk.f32.mxu0 %vm1874_vm4, %v18368_v20 }
 0x905   :  { %15004 = vmatmul.mubr.msk.f32.gmra.mrb[52].mxu0 %vm1874_vm4, %v18360_v51 }
 0x906   :  { %15006 = vmatprep.mubr.msk.f32.mxu0 %vm1874_vm4, %v18386_v13 }
 0x909   :  { %15007 = vmatmul.mubr.msk.f32.gmra.mrb[54].mxu0 %vm1874_vm4, %v18603_v35 }
 0x90a   :  { %15009 = vmatprep.mubr.msk.f32.mxu0 %vm1874_vm4, %v18408_v45  ;;  %v9809_v45 = vld [vmem:[%s19135_s1 + $0x1d8] sm:$0xff] }
 0x90b   :  { %15125 = vmatprep.subr.mxu1 %v9809_v45 }
 0x90c   :  { %15126 = vmatpush3.msra.mxu1 %v9809_v45 }
 0x90d   :  { %15010 = vmatmul.mubr.msk.f32.gmra.mrb[56].mxu0 %vm1874_vm4, %v18400_v50 }
 0x90e   :  { %15012 = vmatprep.mubr.msk.f32.mxu0 %vm1874_vm4, %v18431_v61 }
 0x911   :  { %15013 = vmatmul.mubr.msk.f32.gmra.mrb[58].mxu0 %vm1874_vm4, %v18424_v4 }
 0x912   :  { %15015 = vmatprep.mubr.msk.f32.mxu0 %vm1874_vm4, %v18452_v63 }
 0x915   :  { %15016 = vmatmul.mubr.msk.f32.gmra.mrb[60].mxu0 %vm1874_vm4, %v18446_v5 }
 0x916   :  { %15018 = vmatprep.mubr.msk.f32.mxu0 %vm1874_vm4, %v18466_v2 }
 0x919   :  { %15019 = vmatmul.mubr.msk.f32.gmra.mrb[62].mxu0 %vm1874_vm4, %v18621_v26 }
 0x91a   :  { %15023 = vmatprep.mubr.msk.f32.mxu0 %vm1874_vm4, %v18323_v27  ;;  %v9480_v27 = vld [vmem:[%s19135_s1 + $0x1c8] sm:$0xff] }
 0x91d   :  { %15024 = vmatmul.mubr.msk.f32.vlgmr.msra.gmra.mrb[48].mxu0 %vm1874_vm4, %v18315_v49 }
 0x91e   :  { %15048 = vmatpush3.msra.mxu0 %v9028_v19  ;;  %15026 = vmatprep.mubr.msk.f32.mxu0 %vm1874_vm4, %v18348_v23 }
 0x91f   :  { %15073 = vmatprep.subr.mxu0 %v9254_v31 }
 0x921   :  { %15027 = vmatmul.mubr.msk.f32.gmra.mrb[50].mxu0 %vm1874_vm4, %v18340_v17 }
 0x922   :  { %15029 = vmatprep.mubr.msk.f32.mxu0 %vm1874_vm4, %v18372_v1 }
 0x925   :  { %15030 = vmatmul.mubr.msk.f32.gmra.mrb[52].mxu0 %vm1874_vm4, %v18364_v62 }
 0x926   :  { %15032 = vmatprep.mubr.msk.f32.mxu0 %vm1874_vm4, %v18390_v36 }
 0x929   :  { %15033 = vmatmul.mubr.msk.f32.gmra.mrb[54].mxu0 %vm1874_vm4, %v8793_v9 }
 0x92a   :  { %15035 = vmatprep.mubr.msk.f32.mxu0 %vm1874_vm4, %v18412_v53 }
 0x92d   :  { %15036 = vmatmul.mubr.msk.f32.gmra.mrb[56].mxu0 %vm1874_vm4, %v18404_v43 }
 0x92e   :  { %15038 = vmatprep.mubr.msk.f32.mxu0 %vm1874_vm4, %v18435_v32 }
 0x931   :  { %15039 = vmatmul.mubr.msk.f32.gmra.mrb[58].mxu0 %vm1874_vm4, %v18428_v60 }
 0x932   :  { %15041 = vmatprep.mubr.msk.f32.mxu0 %vm1874_vm4, %v18456_v18 }
 0x935   :  { %15042 = vmatmul.mubr.msk.f32.gmra.mrb[60].mxu0 %vm1874_vm4, %v18450_v59 }
 0x936   :  { %15044 = vmatprep.mubr.msk.f32.mxu0 %vm1874_vm4, %v18470_v39 }
 0x939   :  { %15045 = vmatmul.mubr.msk.f32.gmra.mrb[62].mxu0 %vm1874_vm4, %v8801_v34 }
 0x93a   :  { %15049 = vmatprep.mubr.msk.f32.mxu0 %vm1874_vm4, %v18313_v15  ;;  %v9019_v15 = vld [vmem:[#allocation2 + $0x90] sm:$0xff] }
 0x93d   :  { %15050 = vmatmul.mubr.msk.f32.vlgmr.msra.gmra.mrb[48].mxu0 %vm1874_vm4, %v18346_v30 }
 0x93e   :  { %15074 = vmatpush3.msra.mxu0 %v9254_v31  ;;  %15052 = vmatprep.mubr.msk.f32.mxu0 %vm1874_vm4, %v18338_v22  ;;  %v9027_v22 = vld [vmem:[#allocation2 + $0x170] sm:$0xff] }
 0x93f   :  { %15099 = vmatprep.subr.mxu0 %v9480_v27 }
 0x941   :  { %15053 = vmatmul.mubr.msk.f32.gmra.mrb[50].mxu0 %vm1874_vm4, %v18370_v46 }
 0x942   :  { %15055 = vmatprep.mubr.msk.f32.mxu0 %vm1874_vm4, %v18362_v14 }
 0x945   :  { %15056 = vmatmul.mubr.msk.f32.gmra.mrb[52].mxu0 %vm1874_vm4, %v18388_v16 }
 0x946   :  { %15058 = vmatprep.mubr.msk.f32.mxu0 %vm1874_vm4, %v18564_v54 }
 0x949   :  { %15059 = vmatmul.mubr.msk.f32.gmra.mrb[54].mxu0 %vm1874_vm4, %v9019_v15 }
 0x94a   :  { %15061 = vmatprep.mubr.msk.f32.mxu0 %vm1874_vm4, %v18402_v57 }
 0x94d   :  { %15062 = vmatmul.mubr.msk.f32.gmra.mrb[56].mxu0 %vm1874_vm4, %v18433_v12 }
 0x94e   :  { %15064 = vmatprep.mubr.msk.f32.mxu0 %vm1874_vm4, %v18426_v0  ;;  %v9792_v0 = vld [vmem:[%s19135_s1 + $0x1d0] sm:$0xff] }
 0x94f   :  { %15151 = vmatprep.subr.mxu1 %v9792_v0 }
 0x951   :  { %15065 = vmatmul.mubr.msk.f32.gmra.mrb[58].mxu0 %vm1874_vm4, %v18454_v21  ;;  %v9253_v21 = vld [vmem:[#allocation2 + $0x171] sm:$0xff] }
 0x952   :  { %15067 = vmatprep.mubr.msk.f32.mxu0 %vm1874_vm4, %v18448_v29 }
 0x955   :  { %15068 = vmatmul.mubr.msk.f32.gmra.mrb[60].mxu0 %vm1874_vm4, %v18468_v33  ;;  %v9245_v33 = vld [vmem:[#allocation2 + $0x91] sm:$0xff] }
 0x956   :  { %15070 = vmatprep.mubr.msk.f32.mxu0 %vm1874_vm4, %v18582_v56 }
 0x959   :  { %15071 = vmatmul.mubr.msk.f32.gmra.mrb[62].mxu0 %vm1874_vm4, %v9027_v22 }
 0x95a   :  { %15075 = vmatprep.mubr.msk.f32.mxu0 %vm1874_vm4, %v18311_v37 }
 0x95d   :  { %15076 = vmatmul.mubr.msk.f32.vlgmr.msra.gmra.mrb[48].mxu0 %vm1874_vm4, %v18344_v10 }
 0x95e   :  { %15100 = vmatpush3.msra.mxu0 %v9480_v27  ;;  %15078 = vmatprep.mubr.msk.f32.mxu0 %vm1874_vm4, %v18335_v6 }
 0x961   :  { %15079 = vmatmul.mubr.msk.f32.gmra.mrb[50].mxu0 %vm1874_vm4, %v18368_v20 }
 0x962   :  { %15081 = vmatprep.mubr.msk.f32.mxu0 %vm1874_vm4, %v18360_v51 }
 0x965   :  { %15082 = vmatmul.mubr.msk.f32.gmra.mrb[52].mxu0 %vm1874_vm4, %v18386_v13 }
 0x966   :  { %15084 = vmatprep.mubr.msk.f32.mxu0 %vm1874_vm4, %v18603_v35 }
 0x969   :  { %15085 = vmatmul.mubr.msk.f32.gmra.mrb[54].mxu0 %vm1874_vm4, %v9245_v33 }
 0x96a   :  { %15087 = vmatprep.mubr.msk.f32.mxu0 %vm1874_vm4, %v18400_v50 }
 0x96d   :  { %15088 = vmatmul.mubr.msk.f32.gmra.mrb[56].mxu0 %vm1874_vm4, %v18431_v61 }
 0x96e   :  { %15090 = vmatprep.mubr.msk.f32.mxu0 %vm1874_vm4, %v18424_v4 }
 0x971   :  { %15091 = vmatmul.mubr.msk.f32.gmra.mrb[58].mxu0 %vm1874_vm4, %v18452_v63  ;;  %v9479_v63 = vld [vmem:[#allocation2 + $0x172] sm:$0xff] }
 0x972   :  { %15093 = vmatprep.mubr.msk.f32.mxu0 %vm1874_vm4, %v18446_v5 }
 0x975   :  { %15094 = vmatmul.mubr.msk.f32.gmra.mrb[60].mxu0 %vm1874_vm4, %v18466_v2  ;;  %v9471_v2 = vld [vmem:[#allocation2 + $0x92] sm:$0xff] }
 0x976   :  { %15096 = vmatprep.mubr.msk.f32.mxu0 %vm1874_vm4, %v18621_v26 }
 0x979   :  { %15097 = vmatmul.mubr.msk.f32.gmra.mrb[62].mxu0 %vm1874_vm4, %v9253_v21 }
 0x97a   :  { %15101 = vmatprep.mubr.msk.f32.mxu0 %vm1874_vm4, %v18315_v49 }
 0x97d   :  { %15102 = vmatmul.mubr.msk.f32.vlgmr.msra.gmra.mrb[48].mxu0 %vm1874_vm4, %v18348_v23 }
 0x97e   :  { %15104 = vmatprep.mubr.msk.f32.mxu0 %vm1874_vm4, %v18340_v17 }
 0x981   :  { %15105 = vmatmul.mubr.msk.f32.gmra.mrb[50].mxu0 %vm1874_vm4, %v18372_v1 }
 0x982   :  { %15107 = vmatprep.mubr.msk.f32.mxu0 %vm1874_vm4, %v18364_v62 }
 0x985   :  { %15108 = vmatmul.mubr.msk.f32.gmra.mrb[52].mxu0 %vm1874_vm4, %v18390_v36 }
 0x986   :  { %15110 = vmatprep.mubr.msk.f32.mxu0 %vm1874_vm4, %v8793_v9 }
 0x989   :  { %15111 = vmatmul.mubr.msk.f32.gmra.mrb[54].mxu0 %vm1874_vm4, %v9471_v2 }
 0x98a   :  { %15113 = vmatprep.mubr.msk.f32.mxu0 %vm1874_vm4, %v18404_v43 }
 0x98d   :  { %15114 = vmatmul.mubr.msk.f32.gmra.mrb[56].mxu0 %vm1874_vm4, %v18435_v32  ;;  %v18778_v32 = vld [vmem:[%s19135_s1 + $0x1e0] sm:$0xff] }
 0x98e   :  { %15116 = vmatprep.mubr.msk.f32.mxu0 %vm1874_vm4, %v18428_v60  ;;  %v18758_v60 = vld [vmem:[%s19137_s2 + $0x7] ss:$0 sm:$0xff] }
 0x991   :  { %15117 = vmatmul.mubr.msk.f32.gmra.mrb[58].mxu0 %vm1874_vm4, %v18456_v18 }
 0x992   :  { %15119 = vmatprep.mubr.msk.f32.mxu0 %vm1874_vm4, %v18450_v59 }
 0x995   :  { %15120 = vmatmul.mubr.msk.f32.gmra.mrb[60].mxu0 %vm1874_vm4, %v18470_v39 }
 0x996   :  { %15122 = vmatprep.mubr.msk.f32.mxu0 %vm1874_vm4, %v8801_v34 }
 0x999   :  { %15123 = vmatmul.mubr.msk.f32.gmra.mrb[62].mxu0 %vm1874_vm4, %v9479_v63 }
 0xa50   :  { %v15103_v43 = vpop.f32.mrb[48].mxu0 }
 0xa51   :  { %v9696_v50 = vadd.f32 %v15103_v43, %v18758_v60  ;;  %v9595_v57 = vpop.f32.mrb[49].mxu0 }
 0xa52   :  { %v9695_v39 = vadd.f32 %v18758_v60, %v9595_v57 }
 0xa53   :  { %v9712_v36 = vmax.f32 %v9696_v50, 0.0 }
 0xa54   :  { %v9711_v37 = vmax.f32 %v9695_v39, 0.0  ;;  %v15106_v49 = vpop.f32.mrb[50].mxu0 }
 0xa55   :  { %9761 = vst.msk [vmem:[#allocation2 + $0x13] sm:$0xff] %vm1874_vm4, %v9712_v36  ;;  %v9698_v6 = vadd.f32 %v15106_v49, %v18758_v60  ;;  %v9605_v17 = vpop.f32.mrb[51].mxu0 }
 0xa56   :  { %9760 = vst.msk [vmem:[#allocation2 + $0x3] sm:$0xff] %vm1874_vm4, %v9711_v37  ;;  %v9697_v10 = vadd.f32 %v18758_v60, %v9605_v17 }
 0xa57   :  { %v9714_v30 = vmax.f32 %v9698_v6, 0.0 }
 0xa58   :  { %v9713_v23 = vmax.f32 %v9697_v10, 0.0  ;;  %v15109_v51 = vpop.f32.mrb[52].mxu0 }
 0xa59   :  { %9763 = vst.msk [vmem:[#allocation2 + $0x33] sm:$0xff] %vm1874_vm4, %v9714_v30  ;;  %v9700_v14 = vadd.f32 %v15109_v51, %v18758_v60  ;;  %v9615_v62 = vpop.f32.mrb[53].mxu0 }
 0xa5a   :  { %9762 = vst.msk [vmem:[#allocation2 + $0x23] sm:$0xff] %vm1874_vm4, %v9713_v23  ;;  %v9699_v20 = vadd.f32 %v18758_v60, %v9615_v62 }
 0xa5b   :  { %v9716_v46 = vmax.f32 %v9700_v14, 0.0 }
 0xa5c   :  { %v9715_v1 = vmax.f32 %v9699_v20, 0.0  ;;  %v15112_v13 = vpop.f32.mrb[54].mxu0  ;;  %v9794_v12 = vld [vmem:[#allocation2 + $0x11] sm:$0xff] }
 0xa5d   :  { %9765 = vst.msk [vmem:[#allocation2 + $0x53] sm:$0xff] %vm1874_vm4, %v9716_v46  ;;  %v9702_v16 = vadd.f32 %v15112_v13, %v18758_v60  ;;  %v9625_v53 = vpop.f32.mrb[55].mxu0  ;;  %v9793_v4 = vld [vmem:[#allocation2 + $0x1] sm:$0xff] }
 0xa5e   :  { %9764 = vst.msk [vmem:[#allocation2 + $0x43] sm:$0xff] %vm1874_vm4, %v9715_v1  ;;  %v9701_v61 = vadd.f32 %v18758_v60, %v9625_v53  ;;  %15127 = vmatprep.mubr.msk.f32.mxu1 %vm1874_vm4, %v9793_v4  ;;  %v9776_v46 = vld [vmem:[#allocation2] sm:$0xff]  ;;  %v9777_v1 = vld [vmem:[#allocation2 + $0x10] sm:$0xff]  ;;  %v10438_v13 = vld [vmem:[%s19135_s1 + $0x1e8] sm:$0xff] }
 0xa5f   :  { %v9718_v5 = vmax.f32 %v9702_v16, 0.0  ;;  %15128 = vmatmul.mubr.msk.f32.vlgmr.msra.gmra.mrb[80].mxu1 %vm1874_vm4, %v9794_v12 }
 0xa60   :  { %v9717_v29 = vmax.f32 %v9701_v61, 0.0  ;;  %15152 = vmatpush3.msra.mxu1 %v9792_v0  ;;  %v15115_v59 = vpop.f32.mrb[56].mxu0  ;;  %v9796_v56 = vld [vmem:[#allocation2 + $0x31] sm:$0xff] }
 0xa61   :  { %9767 = vst.msk [vmem:[#allocation2 + $0x73] sm:$0xff] %vm1874_vm4, %v9718_v5  ;;  %v9704_v18 = vadd.f32 %v15115_v59, %v18758_v60  ;;  %v9635_v55 = vpop.f32.mrb[57].mxu0  ;;  %v9795_v8 = vld [vmem:[#allocation2 + $0x21] sm:$0xff]  ;;  %15177 = vmatprep.subr.mxu1 %v18778_v32  ;;  %v9779_v53 = vld [vmem:[#allocation2 + $0x30] sm:$0xff] }
 0xa62   :  { %9766 = vst.msk [vmem:[#allocation2 + $0x63] sm:$0xff] %vm1874_vm4, %v9717_v29  ;;  %v9703_v54 = vadd.f32 %v18758_v60, %v9635_v55  ;;  %15130 = vmatprep.mubr.msk.f32.mxu1 %vm1874_vm4, %v9795_v8  ;;  %v9778_v16 = vld [vmem:[#allocation2 + $0x20] sm:$0xff] }
 0xa63   :  { %v9720_v19 = vmax.f32 %v9704_v18, 0.0  ;;  %15131 = vmatmul.mubr.msk.f32.gmra.mrb[82].mxu1 %vm1874_vm4, %v9796_v56 }
 0xa64   :  { %v9719_v35 = vmax.f32 %v9703_v54, 0.0  ;;  %v15118_v26 = vpop.f32.mrb[58].mxu0  ;;  %v9798_v27 = vld [vmem:[#allocation2 + $0x51] sm:$0xff] }
 0xa65   :  { %9769 = vst.msk [vmem:[#allocation2 + $0xf3] sm:$0xff] %vm1874_vm4, %v9720_v19  ;;  %v9706_v45 = vadd.f32 %v15118_v26, %v18758_v60  ;;  %v9645_v31 = vpop.f32.mrb[59].mxu0  ;;  %v9797_v9 = vld [vmem:[#allocation2 + $0x41] sm:$0xff]  ;;  %v9781_v61 = vld [vmem:[#allocation2 + $0x50] sm:$0xff] }
 0xa66   :  { %9768 = vst.msk [vmem:[#allocation2 + $0xe3] sm:$0xff] %vm1874_vm4, %v9719_v35  ;;  %v9705_v34 = vadd.f32 %v18758_v60, %v9645_v31  ;;  %15133 = vmatprep.mubr.msk.f32.mxu1 %vm1874_vm4, %v9797_v9  ;;  %v9780_v4 = vld [vmem:[#allocation2 + $0x40] sm:$0xff]  ;;  %v10197_v35 = vld [vmem:[#allocation2 + $0x12] sm:$0xff] }
 0xa67   :  { %v9722_v15 = vmax.f32 %v9706_v45, 0.0  ;;  %15134 = vmatmul.mubr.msk.f32.gmra.mrb[84].mxu1 %vm1874_vm4, %v9798_v27  ;;  %v10196_v19 = vld [vmem:[#allocation2 + $0x2] sm:$0xff]  ;;  %v10664_v26 = vld [vmem:[%s19135_s1 + $0x1f0] sm:$0xff] }
 0xa68   :  { %v9721_v22 = vmax.f32 %v9705_v34, 0.0  ;;  %v15121_v33 = vpop.f32.mrb[60].mxu0  ;;  %v9800_v43 = vld [vmem:[#allocation2 + $0x71] sm:$0xff]  ;;  %v10198_v45 = vld [vmem:[#allocation2 + $0x22] sm:$0xff] }
 0xa69   :  { %9771 = vst.msk [vmem:[#allocation2 + $0x113] sm:$0xff] %vm1874_vm4, %v9722_v15  ;;  %v9708_v21 = vadd.f32 %v15121_v33, %v18758_v60  ;;  %v9655_v2 = vpop.f32.mrb[61].mxu0  ;;  %v9799_v63 = vld [vmem:[#allocation2 + $0x61] sm:$0xff]  ;;  %v9783_v5 = vld [vmem:[#allocation2 + $0x70] sm:$0xff] }
 0xa6a   :  { %9770 = vst.msk [vmem:[#allocation2 + $0x103] sm:$0xff] %vm1874_vm4, %v9721_v22  ;;  %v9707_v0 = vadd.f32 %v18758_v60, %v9655_v2  ;;  %15136 = vmatprep.mubr.msk.f32.mxu1 %vm1874_vm4, %v9799_v63  ;;  %v9782_v12 = vld [vmem:[#allocation2 + $0x60] sm:$0xff]  ;;  %v10199_v31 = vld [vmem:[#allocation2 + $0x32] sm:$0xff] }
 0xa6b   :  { %v9724_v50 = vmax.f32 %v9708_v21, 0.0  ;;  %15137 = vmatmul.mubr.msk.f32.gmra.mrb[86].mxu1 %vm1874_vm4, %v9800_v43  ;;  %v10200_v9 = vld [vmem:[#allocation2 + $0x42] sm:$0xff]  ;;  %v10201_v34 = vld [vmem:[#allocation2 + $0x52] sm:$0xff] }
 0xa6c   :  { %v9723_v57 = vmax.f32 %v9707_v0, 0.0  ;;  %v15124_v39 = vpop.f32.mrb[62].mxu0  ;;  %v9802_v17 = vld [vmem:[#allocation2 + $0xf1] sm:$0xff]  ;;  %v10202_v27 = vld [vmem:[#allocation2 + $0x62] sm:$0xff] }
 0xa6d   :  { %9773 = vst.msk [vmem:[#allocation2 + $0x133] sm:$0xff] %vm1874_vm4, %v9724_v50  ;;  %v9710_v36 = vadd.f32 %v15124_v39, %v18758_v60  ;;  %v9665_v37 = vpop.f32.mrb[63].mxu0  ;;  %v9801_v49 = vld [vmem:[#allocation2 + $0xe1] sm:$0xff]  ;;  %v10203_v15 = vld [vmem:[#allocation2 + $0x72] sm:$0xff] }
 0xa6e   :  { %9772 = vst.msk [vmem:[#allocation2 + $0x123] sm:$0xff] %vm1874_vm4, %v9723_v57  ;;  %v9709_v6 = vadd.f32 %v18758_v60, %v9665_v37  ;;  %15139 = vmatprep.mubr.msk.f32.mxu1 %vm1874_vm4, %v9801_v49  ;;  %v9784_v29 = vld [vmem:[#allocation2 + $0xe0] sm:$0xff]  ;;  %v10205_v33 = vld [vmem:[#allocation2 + $0xf2] sm:$0xff]  ;;  %v11347_v39 = vld [vmem:[%s19135_s1 + $0x208] sm:$0xff] }
 0xa6f   :  { %v9726_v10 = vmax.f32 %v9710_v36, 0.0  ;;  %15140 = vmatmul.mubr.msk.f32.gmra.mrb[88].mxu1 %vm1874_vm4, %v9802_v17  ;;  %v10204_v22 = vld [vmem:[#allocation2 + $0xe2] sm:$0xff]  ;;  %15307 = vmatprep.subr.mxu0 %v11347_v39  ;;  %v10423_v36 = vld [vmem:[#allocation2 + $0x13] sm:$0xff] }
 0xa70   :  { %v9725_v30 = vmax.f32 %v9709_v6, 0.0  ;;  %v9804_v51 = vld [vmem:[#allocation2 + $0x111] sm:$0xff]  ;;  %v10422_v57 = vld [vmem:[#allocation2 + $0x3] sm:$0xff]  ;;  %15308 = vmatpush3.msra.mxu0 %v11347_v39 }
 0xa71   :  { %9775 = vst.msk [vmem:[#allocation2 + $0x153] sm:$0xff] %vm1874_vm4, %v9726_v10  ;;  %v9803_v23 = vld [vmem:[#allocation2 + $0x101] sm:$0xff]  ;;  %v9787_v18 = vld [vmem:[#allocation2 + $0x110] sm:$0xff]  ;;  %v10890_v37 = vld [vmem:[%s19135_s1 + $0x1f8] sm:$0xff] }
 0xa72   :  { %9774 = vst.msk [vmem:[#allocation2 + $0x143] sm:$0xff] %vm1874_vm4, %v9725_v30  ;;  %15142 = vmatprep.mubr.msk.f32.mxu1 %vm1874_vm4, %v9803_v23  ;;  %v9786_v59 = vld [vmem:[#allocation2 + $0x100] sm:$0xff]  ;;  %v10207_v2 = vld [vmem:[#allocation2 + $0x112] sm:$0xff] }
 0xa73   :  { %15143 = vmatmul.mubr.msk.f32.gmra.mrb[90].mxu1 %vm1874_vm4, %v9804_v51  ;;  %v10206_v21 = vld [vmem:[#allocation2 + $0x102] sm:$0xff]  ;;  %v10425_v6 = vld [vmem:[#allocation2 + $0x33] sm:$0xff] }
 0xa74   :  { %v9806_v60 = vld [vmem:[#allocation2 + $0x131] sm:$0xff]  ;;  %v10424_v49 = vld [vmem:[#allocation2 + $0x23] sm:$0xff] }
 0xa75   :  { %v9805_v14 = vld [vmem:[#allocation2 + $0x121] sm:$0xff]  ;;  %v9789_v8 = vld [vmem:[#allocation2 + $0x130] sm:$0xff] }
 0xa76   :  { %15145 = vmatprep.mubr.msk.f32.mxu1 %vm1874_vm4, %v9805_v14  ;;  %v9788_v55 = vld [vmem:[#allocation2 + $0x120] sm:$0xff]  ;;  %v10209_v0 = vld [vmem:[#allocation2 + $0x132] sm:$0xff] }
 0xa77   :  { %15146 = vmatmul.mubr.msk.f32.gmra.mrb[92].mxu1 %vm1874_vm4, %v9806_v60  ;;  %v10208_v63 = vld [vmem:[#allocation2 + $0x122] sm:$0xff]  ;;  %v10427_v10 = vld [vmem:[#allocation2 + $0x53] sm:$0xff] }
 0xa78   :  { %v9808_v20 = vld [vmem:[#allocation2 + $0x151] sm:$0xff]  ;;  %v10426_v17 = vld [vmem:[#allocation2 + $0x43] sm:$0xff] }
 0xa79   :  { %v9807_v62 = vld [vmem:[#allocation2 + $0x141] sm:$0xff]  ;;  %v9791_v56 = vld [vmem:[#allocation2 + $0x150] sm:$0xff] }
 0xa7a   :  { %15148 = vmatprep.mubr.msk.f32.mxu1 %vm1874_vm4, %v9807_v62  ;;  %v9790_v54 = vld [vmem:[#allocation2 + $0x140] sm:$0xff]  ;;  %v10211_v50 = vld [vmem:[#allocation2 + $0x152] sm:$0xff] }
 0xa7b   :  { %15149 = vmatmul.mubr.msk.f32.gmra.mrb[94].mxu1 %vm1874_vm4, %v9808_v20  ;;  %v10210_v43 = vld [vmem:[#allocation2 + $0x142] sm:$0xff]  ;;  %v10429_v23 = vld [vmem:[#allocation2 + $0x73] sm:$0xff] }
 0xa7c   :  { %15153 = vmatprep.mubr.msk.f32.mxu1 %vm1874_vm4, %v9776_v46  ;;  %v10428_v30 = vld [vmem:[#allocation2 + $0x63] sm:$0xff]  ;;  %v10431_v14 = vld [vmem:[#allocation2 + $0xf3] sm:$0xff] }
 0xa7d   :  { %v10430_v51 = vld [vmem:[#allocation2 + $0xe3] sm:$0xff]  ;;  %v10433_v62 = vld [vmem:[#allocation2 + $0x113] sm:$0xff] }
 0xa7e   :  { %v10432_v60 = vld [vmem:[#allocation2 + $0x103] sm:$0xff]  ;;  %v10435_v46 = vld [vmem:[#allocation2 + $0x133] sm:$0xff] }
 0xa7f   :  { %15154 = vmatmul.mubr.msk.f32.vlgmr.msra.gmra.mrb[80].mxu1 %vm1874_vm4, %v9777_v1  ;;  %v10434_v20 = vld [vmem:[#allocation2 + $0x123] sm:$0xff]  ;;  %v10889_v39 = vld [vmem:[#allocation2 + $0x155] sm:$0xff] }
 0xa80   :  { %15178 = vmatpush3.msra.mxu1 %v18778_v32  ;;  %15156 = vmatprep.mubr.msk.f32.mxu1 %vm1874_vm4, %v9778_v16  ;;  %v9785_v32 = vld [vmem:[#allocation2 + $0xf0] sm:$0xff]  ;;  %v10436_v1 = vld [vmem:[#allocation2 + $0x143] sm:$0xff] }
 0xa81   :  { %15203 = vmatprep.subr.mxu1 %v10438_v13  ;;  %v10648_v16 = vld [vmem:[#allocation2 + $0x4] sm:$0xff] }
 0xa83   :  { %15157 = vmatmul.mubr.msk.f32.gmra.mrb[82].mxu1 %vm1874_vm4, %v9779_v53  ;;  %v10649_v53 = vld [vmem:[#allocation2 + $0x14] sm:$0xff] }
 0xa84   :  { %15159 = vmatprep.mubr.msk.f32.mxu1 %vm1874_vm4, %v9780_v4  ;;  %v11116_v4 = vld [vmem:[%s19135_s1 + $0x200] sm:$0xff] }
 0xa87   :  { %15160 = vmatmul.mubr.msk.f32.gmra.mrb[84].mxu1 %vm1874_vm4, %v9781_v61  ;;  %v10650_v61 = vld [vmem:[#allocation2 + $0x24] sm:$0xff] }
 0xa88   :  { %15162 = vmatprep.mubr.msk.f32.mxu1 %vm1874_vm4, %v9782_v12  ;;  %v10651_v12 = vld [vmem:[#allocation2 + $0x34] sm:$0xff] }
 0xa8b   :  { %15163 = vmatmul.mubr.msk.f32.gmra.mrb[86].mxu1 %vm1874_vm4, %v9783_v5  ;;  %v10652_v5 = vld [vmem:[#allocation2 + $0x44] sm:$0xff] }
 0xa8c   :  { %15165 = vmatprep.mubr.msk.f32.mxu1 %vm1874_vm4, %v9784_v29  ;;  %v10653_v29 = vld [vmem:[#allocation2 + $0x54] sm:$0xff] }
 0xa8f   :  { %15166 = vmatmul.mubr.msk.f32.gmra.mrb[88].mxu1 %vm1874_vm4, %v9785_v32  ;;  %v10654_v32 = vld [vmem:[#allocation2 + $0x64] sm:$0xff] }
 0xa90   :  { %15168 = vmatprep.mubr.msk.f32.mxu1 %vm1874_vm4, %v9786_v59  ;;  %v10655_v59 = vld [vmem:[#allocation2 + $0x74] sm:$0xff] }
 0xa93   :  { %15169 = vmatmul.mubr.msk.f32.gmra.mrb[90].mxu1 %vm1874_vm4, %v9787_v18  ;;  %v10656_v18 = vld [vmem:[#allocation2 + $0xe4] sm:$0xff] }
 0xa94   :  { %15171 = vmatprep.mubr.msk.f32.mxu1 %vm1874_vm4, %v9788_v55  ;;  %v10657_v55 = vld [vmem:[#allocation2 + $0xf4] sm:$0xff] }
 0xa97   :  { %15172 = vmatmul.mubr.msk.f32.gmra.mrb[92].mxu1 %vm1874_vm4, %v9789_v8  ;;  %v10658_v8 = vld [vmem:[#allocation2 + $0x104] sm:$0xff] }
 0xa98   :  { %15174 = vmatprep.mubr.msk.f32.mxu1 %vm1874_vm4, %v9790_v54  ;;  %v10659_v54 = vld [vmem:[#allocation2 + $0x114] sm:$0xff] }
 0xa9b   :  { %15175 = vmatmul.mubr.msk.f32.gmra.mrb[94].mxu1 %vm1874_vm4, %v9791_v56  ;;  %v10660_v56 = vld [vmem:[#allocation2 + $0x124] sm:$0xff] }
 0xa9c   :  { %15179 = vmatprep.mubr.msk.f32.mxu1 %vm1874_vm4, %v10196_v19  ;;  %v10661_v19 = vld [vmem:[#allocation2 + $0x134] sm:$0xff] }
 0xa9f   :  { %15180 = vmatmul.mubr.msk.f32.vlgmr.msra.gmra.mrb[80].mxu1 %vm1874_vm4, %v10197_v35  ;;  %v10662_v35 = vld [vmem:[#allocation2 + $0x144] sm:$0xff] }
 0xaa0   :  { %15204 = vmatpush3.msra.mxu1 %v10438_v13  ;;  %15182 = vmatprep.mubr.msk.f32.mxu1 %vm1874_vm4, %v10198_v45  ;;  %v10437_v13 = vld [vmem:[#allocation2 + $0x153] sm:$0xff]  ;;  %v10874_v45 = vld [vmem:[#allocation2 + $0x5] sm:$0xff] }
 0xaa1   :  { %15229 = vmatprep.subr.mxu1 %v10664_v26 }
 0xaa3   :  { %15183 = vmatmul.mubr.msk.f32.gmra.mrb[82].mxu1 %vm1874_vm4, %v10199_v31  ;;  %v10875_v31 = vld [vmem:[#allocation2 + $0x15] sm:$0xff] }
 0xaa4   :  { %15185 = vmatprep.mubr.msk.f32.mxu1 %vm1874_vm4, %v10200_v9  ;;  %v10876_v9 = vld [vmem:[#allocation2 + $0x25] sm:$0xff] }
 0xaa7   :  { %15186 = vmatmul.mubr.msk.f32.gmra.mrb[84].mxu1 %vm1874_vm4, %v10201_v34  ;;  %v10877_v34 = vld [vmem:[#allocation2 + $0x35] sm:$0xff] }
 0xaa8   :  { %15188 = vmatprep.mubr.msk.f32.mxu1 %vm1874_vm4, %v10202_v27  ;;  %v10878_v27 = vld [vmem:[#allocation2 + $0x45] sm:$0xff] }
 0xaab   :  { %15189 = vmatmul.mubr.msk.f32.gmra.mrb[86].mxu1 %vm1874_vm4, %v10203_v15  ;;  %v10879_v15 = vld [vmem:[#allocation2 + $0x55] sm:$0xff] }
 0xaac   :  { %15191 = vmatprep.mubr.msk.f32.mxu1 %vm1874_vm4, %v10204_v22  ;;  %v10880_v22 = vld [vmem:[#allocation2 + $0x65] sm:$0xff] }
 0xaaf   :  { %15192 = vmatmul.mubr.msk.f32.gmra.mrb[88].mxu1 %vm1874_vm4, %v10205_v33  ;;  %v10881_v33 = vld [vmem:[#allocation2 + $0x75] sm:$0xff] }
 0xab0   :  { %15194 = vmatprep.mubr.msk.f32.mxu1 %vm1874_vm4, %v10206_v21  ;;  %v10882_v21 = vld [vmem:[#allocation2 + $0xe5] sm:$0xff] }
 0xab3   :  { %15195 = vmatmul.mubr.msk.f32.gmra.mrb[90].mxu1 %vm1874_vm4, %v10207_v2  ;;  %v10883_v2 = vld [vmem:[#allocation2 + $0xf5] sm:$0xff] }
 0xab4   :  { %15197 = vmatprep.mubr.msk.f32.mxu1 %vm1874_vm4, %v10208_v63  ;;  %v10884_v63 = vld [vmem:[#allocation2 + $0x105] sm:$0xff] }
 0xab7   :  { %15198 = vmatmul.mubr.msk.f32.gmra.mrb[92].mxu1 %vm1874_vm4, %v10209_v0  ;;  %v10885_v0 = vld [vmem:[#allocation2 + $0x115] sm:$0xff] }
 0xab8   :  { %15200 = vmatprep.mubr.msk.f32.mxu1 %vm1874_vm4, %v10210_v43  ;;  %v10886_v43 = vld [vmem:[#allocation2 + $0x125] sm:$0xff] }
 0xabb   :  { %15201 = vmatmul.mubr.msk.f32.gmra.mrb[94].mxu1 %vm1874_vm4, %v10211_v50  ;;  %v10887_v50 = vld [vmem:[#allocation2 + $0x135] sm:$0xff] }
 0xabc   :  { %15205 = vmatprep.mubr.msk.f32.mxu1 %vm1874_vm4, %v10422_v57  ;;  %v10888_v57 = vld [vmem:[#allocation2 + $0x145] sm:$0xff] }
 0xabf   :  { %15206 = vmatmul.mubr.msk.f32.vlgmr.msra.gmra.mrb[80].mxu1 %vm1874_vm4, %v10423_v36  ;;  %v11100_v36 = vld [vmem:[#allocation2 + $0x6] sm:$0xff] }
 0xac0   :  { %15230 = vmatpush3.msra.mxu1 %v10664_v26  ;;  %15208 = vmatprep.mubr.msk.f32.mxu1 %vm1874_vm4, %v10424_v49  ;;  %v10663_v26 = vld [vmem:[#allocation2 + $0x154] sm:$0xff]  ;;  %v11102_v49 = vld [vmem:[#allocation2 + $0x26] sm:$0xff] }
 0xac1   :  { %15255 = vmatprep.subr.mxu1 %v10890_v37 }
 0xac3   :  { %15209 = vmatmul.mubr.msk.f32.gmra.mrb[82].mxu1 %vm1874_vm4, %v10425_v6  ;;  %v11103_v6 = vld [vmem:[#allocation2 + $0x36] sm:$0xff] }
 0xac4   :  { %15211 = vmatprep.mubr.msk.f32.mxu1 %vm1874_vm4, %v10426_v17  ;;  %v11104_v17 = vld [vmem:[#allocation2 + $0x46] sm:$0xff] }
 0xac7   :  { %15212 = vmatmul.mubr.msk.f32.gmra.mrb[84].mxu1 %vm1874_vm4, %v10427_v10  ;;  %v11105_v10 = vld [vmem:[#allocation2 + $0x56] sm:$0xff] }
 0xac8   :  { %15214 = vmatprep.mubr.msk.f32.mxu1 %vm1874_vm4, %v10428_v30  ;;  %v11106_v30 = vld [vmem:[#allocation2 + $0x66] sm:$0xff] }
 0xacb   :  { %15215 = vmatmul.mubr.msk.f32.gmra.mrb[86].mxu1 %vm1874_vm4, %v10429_v23  ;;  %v11107_v23 = vld [vmem:[#allocation2 + $0x76] sm:$0xff] }
 0xacc   :  { %15217 = vmatprep.mubr.msk.f32.mxu1 %vm1874_vm4, %v10430_v51  ;;  %v11108_v51 = vld [vmem:[#allocation2 + $0xe6] sm:$0xff] }
 0xacf   :  { %15218 = vmatmul.mubr.msk.f32.gmra.mrb[88].mxu1 %vm1874_vm4, %v10431_v14  ;;  %v11109_v14 = vld [vmem:[#allocation2 + $0xf6] sm:$0xff] }
 0xad0   :  { %15220 = vmatprep.mubr.msk.f32.mxu1 %vm1874_vm4, %v10432_v60  ;;  %v11110_v60 = vld [vmem:[#allocation2 + $0x106] sm:$0xff] }
 0xad3   :  { %15221 = vmatmul.mubr.msk.f32.gmra.mrb[90].mxu1 %vm1874_vm4, %v10433_v62  ;;  %v11111_v62 = vld [vmem:[#allocation2 + $0x116] sm:$0xff] }
 0xad4   :  { %15223 = vmatprep.mubr.msk.f32.mxu1 %vm1874_vm4, %v10434_v20  ;;  %v11112_v20 = vld [vmem:[#allocation2 + $0x126] sm:$0xff] }
 0xad7   :  { %15224 = vmatmul.mubr.msk.f32.gmra.mrb[92].mxu1 %vm1874_vm4, %v10435_v46  ;;  %v11113_v46 = vld [vmem:[#allocation2 + $0x136] sm:$0xff] }
 0xad8   :  { %15226 = vmatprep.mubr.msk.f32.mxu1 %vm1874_vm4, %v10436_v1  ;;  %v11114_v1 = vld [vmem:[#allocation2 + $0x146] sm:$0xff] }
 0xadb   :  { %15227 = vmatmul.mubr.msk.f32.gmra.mrb[94].mxu1 %vm1874_vm4, %v10437_v13  ;;  %v11115_v13 = vld [vmem:[#allocation2 + $0x156] sm:$0xff] }
 0xadc   :  { %15231 = vmatprep.mubr.msk.f32.mxu1 %vm1874_vm4, %v10648_v16  ;;  %v11563_v16 = vld [vmem:[%s19135_s1 + $0x218] sm:$0xff] }
 0xadd   :  { %15333 = vmatprep.subr.mxu0 %v11563_v16 }
 0xadf   :  { %15232 = vmatmul.mubr.msk.f32.vlgmr.msra.gmra.mrb[80].mxu1 %vm1874_vm4, %v10649_v53  ;;  %v13015_v53 = vld [vmem:[%s19137_s2 + $0x8] ss:$0 sm:$0xff] }
 0xae0   :  { %15256 = vmatpush3.msra.mxu1 %v10890_v37  ;;  %15234 = vmatprep.mubr.msk.f32.mxu1 %vm1874_vm4, %v10650_v61  ;;  %v11101_v37 = vld [vmem:[#allocation2 + $0x16] sm:$0xff] }
 0xae1   :  { %15281 = vmatprep.subr.mxu1 %v11116_v4 }
 0xae3   :  { %15235 = vmatmul.mubr.msk.f32.gmra.mrb[82].mxu1 %vm1874_vm4, %v10651_v12 }
 0xae4   :  { %15237 = vmatprep.mubr.msk.f32.mxu1 %vm1874_vm4, %v10652_v5 }
 0xae7   :  { %15238 = vmatmul.mubr.msk.f32.gmra.mrb[84].mxu1 %vm1874_vm4, %v10653_v29 }
 0xae8   :  { %15240 = vmatprep.mubr.msk.f32.mxu1 %vm1874_vm4, %v10654_v32 }
 0xaeb   :  { %15241 = vmatmul.mubr.msk.f32.gmra.mrb[86].mxu1 %vm1874_vm4, %v10655_v59 }
 0xaec   :  { %15243 = vmatprep.mubr.msk.f32.mxu1 %vm1874_vm4, %v10656_v18 }
 0xaef   :  { %15244 = vmatmul.mubr.msk.f32.gmra.mrb[88].mxu1 %vm1874_vm4, %v10657_v55 }
 0xaf0   :  { %15246 = vmatprep.mubr.msk.f32.mxu1 %vm1874_vm4, %v10658_v8 }
 0xaf3   :  { %15247 = vmatmul.mubr.msk.f32.gmra.mrb[90].mxu1 %vm1874_vm4, %v10659_v54 }
 0xaf4   :  { %15249 = vmatprep.mubr.msk.f32.mxu1 %vm1874_vm4, %v10660_v56 }
 0xaf7   :  { %15250 = vmatmul.mubr.msk.f32.gmra.mrb[92].mxu1 %vm1874_vm4, %v10661_v19 }
 0xaf8   :  { %15252 = vmatprep.mubr.msk.f32.mxu1 %vm1874_vm4, %v10662_v35 }
 0xafb   :  { %15253 = vmatmul.mubr.msk.f32.gmra.mrb[94].mxu1 %vm1874_vm4, %v10663_v26 }
 0xafc   :  { %15257 = vmatprep.mubr.msk.f32.mxu1 %vm1874_vm4, %v10874_v45 }
 0xaff   :  { %15258 = vmatmul.mubr.msk.f32.vlgmr.msra.gmra.mrb[80].mxu1 %vm1874_vm4, %v10875_v31 }
 0xb00   :  { %15282 = vmatpush3.msra.mxu1 %v11116_v4  ;;  %15260 = vmatprep.mubr.msk.f32.mxu1 %vm1874_vm4, %v10876_v9 }
 0xb03   :  { %15261 = vmatmul.mubr.msk.f32.gmra.mrb[82].mxu1 %vm1874_vm4, %v10877_v34 }
 0xb04   :  { %15263 = vmatprep.mubr.msk.f32.mxu1 %vm1874_vm4, %v10878_v27 }
 0xb07   :  { %15264 = vmatmul.mubr.msk.f32.gmra.mrb[84].mxu1 %vm1874_vm4, %v10879_v15 }
 0xb08   :  { %15266 = vmatprep.mubr.msk.f32.mxu1 %vm1874_vm4, %v10880_v22 }
 0xb0b   :  { %15267 = vmatmul.mubr.msk.f32.gmra.mrb[86].mxu1 %vm1874_vm4, %v10881_v33 }
 0xb0c   :  { %15269 = vmatprep.mubr.msk.f32.mxu1 %vm1874_vm4, %v10882_v21 }
 0xb0f   :  { %15270 = vmatmul.mubr.msk.f32.gmra.mrb[88].mxu1 %vm1874_vm4, %v10883_v2 }
 0xb10   :  { %15272 = vmatprep.mubr.msk.f32.mxu1 %vm1874_vm4, %v10884_v63 }
 0xb13   :  { %15273 = vmatmul.mubr.msk.f32.gmra.mrb[90].mxu1 %vm1874_vm4, %v10885_v0 }
 0xb14   :  { %15275 = vmatprep.mubr.msk.f32.mxu1 %vm1874_vm4, %v10886_v43 }
 0xb17   :  { %15276 = vmatmul.mubr.msk.f32.gmra.mrb[92].mxu1 %vm1874_vm4, %v10887_v50 }
 0xb18   :  { %15278 = vmatprep.mubr.msk.f32.mxu1 %vm1874_vm4, %v10888_v57 }
 0xb1b   :  { %15279 = vmatmul.mubr.msk.f32.gmra.mrb[94].mxu1 %vm1874_vm4, %v10889_v39 }
 0xb1c   :  { %15283 = vmatprep.mubr.msk.f32.mxu1 %vm1874_vm4, %v11100_v36 }
 0xb1f   :  { %15284 = vmatmul.mubr.msk.f32.vlgmr.msra.gmra.mrb[80].mxu1 %vm1874_vm4, %v11101_v37  ;;  %v11562_v37 = vld [vmem:[%s19135_s1 + $0x210] sm:$0xff] }
 0xb20   :  { %15286 = vmatprep.mubr.msk.f32.mxu1 %vm1874_vm4, %v11102_v49  ;;  %v18954_v49 = vld [vmem:[%s19137_s2 + $0x9] ss:$0 sm:$0xff] }
 0xb23   :  { %15287 = vmatmul.mubr.msk.f32.gmra.mrb[82].mxu1 %vm1874_vm4, %v11103_v6 }
 0xb24   :  { %15289 = vmatprep.mubr.msk.f32.mxu1 %vm1874_vm4, %v11104_v17 }
 0xb27   :  { %15290 = vmatmul.mubr.msk.f32.gmra.mrb[84].mxu1 %vm1874_vm4, %v11105_v10 }
 0xb28   :  { %15292 = vmatprep.mubr.msk.f32.mxu1 %vm1874_vm4, %v11106_v30 }
 0xb2b   :  { %15293 = vmatmul.mubr.msk.f32.gmra.mrb[86].mxu1 %vm1874_vm4, %v11107_v23  ;;  %v11971_v23 = vld [vmem:[%s19135_s1 + $0x220] sm:$0xff] }
 0xb2c   :  { %15295 = vmatprep.mubr.msk.f32.mxu1 %vm1874_vm4, %v11108_v51  ;;  %v11972_v51 = vld [vmem:[%s19135_s1 + $0x228] sm:$0xff] }
 0xb2f   :  { %15296 = vmatmul.mubr.msk.f32.gmra.mrb[88].mxu1 %vm1874_vm4, %v11109_v14 }
 0xb30   :  { %15298 = vmatprep.mubr.msk.f32.mxu1 %vm1874_vm4, %v11110_v60 }
 0xb33   :  { %15299 = vmatmul.mubr.msk.f32.gmra.mrb[90].mxu1 %vm1874_vm4, %v11111_v62 }
 0xb34   :  { %15301 = vmatprep.mubr.msk.f32.mxu1 %vm1874_vm4, %v11112_v20 }
 0xb37   :  { %15302 = vmatmul.mubr.msk.f32.gmra.mrb[92].mxu1 %vm1874_vm4, %v11113_v46 }
 0xb38   :  { %15304 = vmatprep.mubr.msk.f32.mxu1 %vm1874_vm4, %v11114_v1  ;;  %v18965_v1 = vpack.c.bf16 %v11972_v51, %v11971_v23 }
 0xb3b   :  { %15305 = vmatmul.mubr.msk.f32.gmra.mrb[94].mxu1 %vm1874_vm4, %v11115_v13 }
 0xbf2   :  { %v15285_v4 = vpop.f32.mrb[80].mxu1 }
 0xbf3   :  { %v11231_v61 = vpop.f32.mrb[81].mxu1  ;;  %v11332_v5 = vadd.f32 %v15285_v4, %v13015_v53 }
 0xbf4   :  { %v11331_v12 = vadd.f32 %v13015_v53, %v11231_v61 }
 0xbf6   :  { %v15288_v29 = vpop.f32.mrb[82].mxu1  ;;  %15309 = vmatprep.mubr.msk.f32.mxu0 %vm1874_vm4, %v11331_v12 }
 0xbf7   :  { %v11241_v32 = vpop.f32.mrb[83].mxu1  ;;  %15310 = vmatmul.mubr.msk.f32.vlgmr.msra.gmra.mrb[64].mxu0 %vm1874_vm4, %v11332_v5  ;;  %v11334_v18 = vadd.f32 %v15288_v29, %v13015_v53 }
 0xbf8   :  { %v11333_v59 = vadd.f32 %v13015_v53, %v11241_v32  ;;  %15334 = vmatpush3.msra.mxu0 %v11563_v16 }
 0xbf9   :  { %15359 = vmatprep.subr.mxu0 %v11562_v37 }
 0xbfa   :  { %v15291_v55 = vpop.f32.mrb[84].mxu1  ;;  %15312 = vmatprep.mubr.msk.f32.mxu0 %vm1874_vm4, %v11333_v59 }
 0xbfb   :  { %v11251_v8 = vpop.f32.mrb[85].mxu1  ;;  %15313 = vmatmul.mubr.msk.f32.gmra.mrb[66].mxu0 %vm1874_vm4, %v11334_v18  ;;  %v11336_v56 = vadd.f32 %v15291_v55, %v13015_v53 }
 0xbfc   :  { %v11335_v54 = vadd.f32 %v13015_v53, %v11251_v8 }
 0xbfe   :  { %v15294_v19 = vpop.f32.mrb[86].mxu1  ;;  %15315 = vmatprep.mubr.msk.f32.mxu0 %vm1874_vm4, %v11335_v54 }
 0xbff   :  { %v11261_v35 = vpop.f32.mrb[87].mxu1  ;;  %15316 = vmatmul.mubr.msk.f32.gmra.mrb[68].mxu0 %vm1874_vm4, %v11336_v56  ;;  %v11338_v45 = vadd.f32 %v15294_v19, %v13015_v53 }
 0xc00   :  { %v11337_v26 = vadd.f32 %v13015_v53, %v11261_v35 }
 0xc02   :  { %v15297_v31 = vpop.f32.mrb[88].mxu1  ;;  %15318 = vmatprep.mubr.msk.f32.mxu0 %vm1874_vm4, %v11337_v26 }
 0xc03   :  { %v11271_v9 = vpop.f32.mrb[89].mxu1  ;;  %15319 = vmatmul.mubr.msk.f32.gmra.mrb[70].mxu0 %vm1874_vm4, %v11338_v45  ;;  %v11340_v27 = vadd.f32 %v15297_v31, %v13015_v53 }
 0xc04   :  { %v11339_v34 = vadd.f32 %v13015_v53, %v11271_v9 }
 0xc06   :  { %v15300_v15 = vpop.f32.mrb[90].mxu1  ;;  %15321 = vmatprep.mubr.msk.f32.mxu0 %vm1874_vm4, %v11339_v34 }
 0xc07   :  { %v11281_v22 = vpop.f32.mrb[91].mxu1  ;;  %15322 = vmatmul.mubr.msk.f32.gmra.mrb[72].mxu0 %vm1874_vm4, %v11340_v27  ;;  %v11342_v21 = vadd.f32 %v15300_v15, %v13015_v53 }
 0xc08   :  { %v11341_v33 = vadd.f32 %v13015_v53, %v11281_v22 }
 0xc0a   :  { %v15303_v2 = vpop.f32.mrb[92].mxu1  ;;  %15324 = vmatprep.mubr.msk.f32.mxu0 %vm1874_vm4, %v11341_v33 }
 0xc0b   :  { %v11291_v63 = vpop.f32.mrb[93].mxu1  ;;  %15325 = vmatmul.mubr.msk.f32.gmra.mrb[74].mxu0 %vm1874_vm4, %v11342_v21  ;;  %v11344_v43 = vadd.f32 %v15303_v2, %v13015_v53 }
 0xc0c   :  { %v11343_v0 = vadd.f32 %v13015_v53, %v11291_v63 }
 0xc0e   :  { %v15306_v50 = vpop.f32.mrb[94].mxu1  ;;  %15327 = vmatprep.mubr.msk.f32.mxu0 %vm1874_vm4, %v11343_v0 }
 0xc0f   :  { %v11301_v57 = vpop.f32.mrb[95].mxu1  ;;  %15328 = vmatmul.mubr.msk.f32.gmra.mrb[76].mxu0 %vm1874_vm4, %v11344_v43  ;;  %v11346_v36 = vadd.f32 %v15306_v50, %v13015_v53  ;;  %v12611_v50 = vld [vmem:[%s19137_s2 + $0x4] ss:$0 sm:$0xff] }
 0xc10   :  { %v11345_v39 = vadd.f32 %v13015_v53, %v11301_v57  ;;  %v5713_v23 = vadd.f32 %v18185_v25, %v12611_v50 }
 0xc12   :  { %15330 = vmatprep.mubr.msk.f32.mxu0 %vm1874_vm4, %v11345_v39 }
 0xc13   :  { %15331 = vmatmul.mubr.msk.f32.gmra.mrb[78].mxu0 %vm1874_vm4, %v11346_v36 }
 0xcca   :  { %v15311_v6 = vpop.f32.mrb[64].mxu0 }
 0xccb   :  { %v11473_v17 = vadd.f32 %v15311_v6, %v18954_v49  ;;  %v11467_v10 = vpop.f32.mrb[65].mxu0 }
 0xccc   :  { %v11468_v30 = vadd.f32 %v18954_v49, %v11467_v10 }
 0xccd   :  { %v11547_v62 = vmax.f32 %v11473_v17, 0.0  ;;  %v5708_v17 = vadd.f32 %v12611_v50, %v18187_v24  ;;  %v5787_v24 = vmax.f32 %v5713_v23, 0.0 }
 0xcce   :  { %v11546_v14 = vmax.f32 %v11468_v30, 0.0  ;;  %v15314_v60 = vpop.f32.mrb[66].mxu0 }
 0xccf   :  { %v11483_v20 = vadd.f32 %v15314_v60, %v18954_v49  ;;  %v11477_v46 = vpop.f32.mrb[67].mxu0  ;;  %v5718_v60 = vadd.f32 %v12611_v50, %v18195_v52  ;;  %v5733_v52 = vadd.f32 %v18200_v7, %v12611_v50  ;;  %v5753_v7 = vadd.f32 %v18215_v41, %v12611_v50 }
 0xcd0   :  { %v11478_v13 = vadd.f32 %v18954_v49, %v11477_v46  ;;  %15335 = vmatprep.mubr.msk.f32.mxu0 %vm1874_vm4, %v11546_v14  ;;  %v5786_v14 = vmax.f32 %v5708_v17, 0.0  ;;  %v5773_v41 = vadd.f32 %v18229_v58, %v12611_v50  ;;  %v19241_v58 = vld [vmem:[#allocation4_spill] sm:$0xff] }
 0xcd1   :  { %15336 = vmatmul.mubr.msk.f32.vlgmr.msra.gmra.mrb[80].mxu0 %vm1874_vm4, %v11547_v62  ;;  %v11549_v4 = vmax.f32 %v11483_v20, 0.0  ;;  %v5788_v62 = vmax.f32 %v5718_v60, 0.0  ;;  %v5728_v20 = vadd.f32 %v12611_v50, %v18202_v3 }
 0xcd2   :  { %v11548_v16 = vmax.f32 %v11478_v13, 0.0  ;;  %15360 = vmatpush3.msra.mxu0 %v11562_v37  ;;  %v15317_v53 = vpop.f32.mrb[68].mxu0  ;;  %v5738_v13 = vadd.f32 %v12611_v50, %v18209_v40  ;;  %v5758_v40 = vadd.f32 %v12611_v50, %v18225_v44  ;;  %v5778_v44 = vadd.f32 %v12611_v50, %v18238_v48  ;;  %v19242_v48 = vld [vmem:[#allocation5_spill] sm:$0xff] }
 0xcd3   :  { %v11493_v61 = vadd.f32 %v15317_v53, %v18954_v49  ;;  %v11487_v12 = vpop.f32.mrb[69].mxu0  ;;  %15478 = vmatprep.subr.bf16.mxu0 %v18965_v1  ;;  %v5790_v46 = vmax.f32 %v5728_v20, 0.0  ;;  %v5748_v53 = vadd.f32 %v12611_v50, %v18217_v42  ;;  %v5768_v42 = vadd.f32 %v12611_v50, %v18231_v47 }
 0xcd4   :  { %v11488_v5 = vadd.f32 %v18954_v49, %v11487_v12  ;;  %15338 = vmatprep.mubr.msk.f32.mxu0 %vm1874_vm4, %v11548_v16  ;;  %v5743_v16 = vadd.f32 %v18207_v38, %v12611_v50  ;;  %v5792_v3 = vmax.f32 %v5738_v13, 0.0  ;;  %v5763_v38 = vadd.f32 %v18223_v28, %v12611_v50 }
 0xcd5   :  { %15339 = vmatmul.mubr.msk.f32.gmra.mrb[82].mxu0 %vm1874_vm4, %v11549_v4  ;;  %v11551_v59 = vmax.f32 %v11493_v61, 0.0  ;;  %v5794_v4 = vmax.f32 %v5748_v53, 0.0  ;;  %v5795_v61 = vmax.f32 %v5753_v7, 0.0  ;;  %v5796_v12 = vmax.f32 %v5758_v40, 0.0 }
 0xcd6   :  { %v11550_v29 = vmax.f32 %v11488_v5, 0.0  ;;  %v15320_v32 = vpop.f32.mrb[70].mxu0  ;;  %v5797_v5 = vmax.f32 %v5763_v38, 0.0 }
 0xcd7   :  { %v11503_v18 = vadd.f32 %v15320_v32, %v18954_v49  ;;  %v11497_v55 = vpop.f32.mrb[71].mxu0  ;;  %v5799_v32 = vmax.f32 %v5773_v41, 0.0 }
 0xcd8   :  { %v11498_v8 = vadd.f32 %v18954_v49, %v11497_v55  ;;  %15341 = vmatprep.mubr.msk.f32.mxu0 %vm1874_vm4, %v11550_v29  ;;  %v5798_v29 = vmax.f32 %v5768_v42, 0.0  ;;  %v19240_v55 = vld [vmem:[#allocation3_spill] sm:$0xff] }
 0xcd9   :  { %15342 = vmatmul.mubr.msk.f32.gmra.mrb[84].mxu0 %vm1874_vm4, %v11551_v59  ;;  %v11553_v19 = vmax.f32 %v11503_v18, 0.0  ;;  %v19239_v59 = vld [vmem:[#allocation19_spill] sm:$0xff]  ;;  %v5800_v18 = vmax.f32 %v5778_v44, 0.0 }
 0xcda   :  { %v11552_v54 = vmax.f32 %v11498_v8, 0.0  ;;  %v15323_v56 = vpop.f32.mrb[72].mxu0  ;;  %v5783_v28 = vadd.f32 %v19239_v59, %v12611_v50  ;;  %v19243_v8 = vld [vmem:[#allocation6_spill] sm:$0xff] }
 0xcdb   :  { %v11513_v35 = vadd.f32 %v15323_v56, %v18954_v49  ;;  %v11507_v26 = vpop.f32.mrb[73].mxu0  ;;  %v19245_v56 = vld [vmem:[#allocation8_spill] sm:$0xff] }
 0xcdc   :  { %v11508_v45 = vadd.f32 %v18954_v49, %v11507_v26  ;;  %15344 = vmatprep.mubr.msk.f32.mxu0 %vm1874_vm4, %v11552_v54  ;;  %v5801_v47 = vmax.f32 %v5783_v28, 0.0  ;;  %v19244_v54 = vld [vmem:[#allocation7_spill] sm:$0xff] }
 0xcdd   :  { %15345 = vmatmul.mubr.msk.f32.gmra.mrb[86].mxu0 %vm1874_vm4, %v11553_v19  ;;  %v11555_v34 = vmax.f32 %v11513_v35, 0.0  ;;  %v19246_v19 = vld [vmem:[#allocation9_spill] sm:$0xff]  ;;  %v19247_v35 = vld [vmem:[#allocation10_spill] sm:$0xff]  ;;  %v19248_v26 = vld [vmem:[#allocation11_spill] sm:$0xff] }
 0xcde   :  { %v11554_v31 = vmax.f32 %v11508_v45, 0.0  ;;  %v15326_v9 = vpop.f32.mrb[74].mxu0  ;;  %v19249_v45 = vld [vmem:[#allocation12_spill] sm:$0xff] }
 0xcdf   :  { %v11523_v27 = vadd.f32 %v15326_v9, %v18954_v49  ;;  %v11517_v15 = vpop.f32.mrb[75].mxu0  ;;  %v19251_v9 = vld [vmem:[#allocation14_spill] sm:$0xff] }
 0xce0   :  { %v11518_v22 = vadd.f32 %v18954_v49, %v11517_v15  ;;  %15347 = vmatprep.mubr.msk.f32.mxu0 %vm1874_vm4, %v11554_v31  ;;  %v19250_v31 = vld [vmem:[#allocation13_spill] sm:$0xff] }
 0xce1   :  { %15348 = vmatmul.mubr.msk.f32.gmra.mrb[88].mxu0 %vm1874_vm4, %v11555_v34  ;;  %v11557_v2 = vmax.f32 %v11523_v27, 0.0  ;;  %v19252_v34 = vld [vmem:[#allocation15_spill] sm:$0xff]  ;;  %v19253_v27 = vld [vmem:[#allocation16_spill] sm:$0xff]  ;;  %v19254_v15 = vld [vmem:[#allocation17_spill] sm:$0xff] }
 0xce2   :  { %v11556_v33 = vmax.f32 %v11518_v22, 0.0  ;;  %v15329_v21 = vpop.f32.mrb[76].mxu0  ;;  %v19255_v22 = vld [vmem:[#allocation18_spill] sm:$0xff] }
 0xce3   :  { %v11533_v63 = vadd.f32 %v15329_v21, %v18954_v49  ;;  %v11527_v0 = vpop.f32.mrb[77].mxu0  ;;  %v13066_v21 = vld [vmem:[%s19137_s2 + $0xb] ss:$0 sm:$0xff] }
 0xce4   :  { %v11528_v43 = vadd.f32 %v18954_v49, %v11527_v0  ;;  %15350 = vmatprep.mubr.msk.f32.mxu0 %vm1874_vm4, %v11556_v33  ;;  %v13065_v33 = vld [vmem:[%s19137_s2 + $0xa] ss:$0 sm:$0xff] }
 0xce5   :  { %15351 = vmatmul.mubr.msk.f32.gmra.mrb[90].mxu0 %vm1874_vm4, %v11557_v2  ;;  %v11559_v36 = vmax.f32 %v11533_v63, 0.0  ;;  %v15505_v0 = vadd.f32 %v13066_v21, %v13065_v33 }
 0xce6   :  { %v11558_v57 = vmax.f32 %v11528_v43, 0.0  ;;  %v15332_v39 = vpop.f32.mrb[78].mxu0 }
 0xce7   :  { %v11543_v37 = vadd.f32 %v15332_v39, %v18954_v49  ;;  %v11537_v6 = vpop.f32.mrb[79].mxu0 }
 0xce8   :  { %v11538_v10 = vadd.f32 %v18954_v49, %v11537_v6  ;;  %15353 = vmatprep.mubr.msk.f32.mxu0 %vm1874_vm4, %v11558_v57  ;;  %v5723_v49 = vadd.f32 %v18193_v11, %v12611_v50  ;;  %v5791_v11 = vmax.f32 %v5733_v52, 0.0 }
 0xce9   :  { %15354 = vmatmul.mubr.msk.f32.gmra.mrb[92].mxu0 %vm1874_vm4, %v11559_v36  ;;  %v11561_v51 = vmax.f32 %v11543_v37, 0.0 }
 0xcea   :  { %v11560_v30 = vmax.f32 %v11538_v10, 0.0  ;;  %v5789_v25 = vmax.f32 %v5723_v49, 0.0 }
 0xcec   :  { %15356 = vmatprep.mubr.msk.f32.mxu0 %vm1874_vm4, %v11560_v30 }
 0xced   :  { %15357 = vmatmul.mubr.msk.f32.gmra.mrb[94].mxu0 %vm1874_vm4, %v11561_v51 }
 0xcee   :  { %15361 = vmatprep.mubr.msk.f32.mxu0 %vm1874_vm4, %v5786_v14 }
 0xcf1   :  { %15362 = vmatmul.mubr.msk.f32.vlgmr.msra.gmra.mrb[80].mxu0 %vm1874_vm4, %v5787_v24 }
 0xcf2   :  { %15480 = vmatpush3.bf16.msra.mxu0 %v18965_v1  ;;  %15364 = vmatprep.mubr.msk.f32.mxu0 %vm1874_vm4, %v5788_v62  ;;  %v5793_v1 = vmax.f32 %v5743_v16, 0.0 }
 0xcf5   :  { %15365 = vmatmul.mubr.msk.f32.gmra.mrb[82].mxu0 %vm1874_vm4, %v5789_v25 }
 0xcf6   :  { %15367 = vmatprep.mubr.msk.f32.mxu0 %vm1874_vm4, %v5790_v46 }
 0xcf9   :  { %15368 = vmatmul.mubr.msk.f32.gmra.mrb[84].mxu0 %vm1874_vm4, %v5791_v11 }
 0xcfa   :  { %15370 = vmatprep.mubr.msk.f32.mxu0 %vm1874_vm4, %v5792_v3 }
 0xcfd   :  { %15371 = vmatmul.mubr.msk.f32.gmra.mrb[86].mxu0 %vm1874_vm4, %v5793_v1 }
 0xcfe   :  { %15373 = vmatprep.mubr.msk.f32.mxu0 %vm1874_vm4, %v5794_v4 }
 0xd01   :  { %15374 = vmatmul.mubr.msk.f32.gmra.mrb[88].mxu0 %vm1874_vm4, %v5795_v61 }
 0xd02   :  { %15376 = vmatprep.mubr.msk.f32.mxu0 %vm1874_vm4, %v5796_v12 }
 0xd05   :  { %15377 = vmatmul.mubr.msk.f32.gmra.mrb[90].mxu0 %vm1874_vm4, %v5797_v5 }
 0xd06   :  { %15379 = vmatprep.mubr.msk.f32.mxu0 %vm1874_vm4, %v5798_v29 }
 0xd09   :  { %15380 = vmatmul.mubr.msk.f32.gmra.mrb[92].mxu0 %vm1874_vm4, %v5799_v32 }
 0xd0a   :  { %15382 = vmatprep.mubr.msk.f32.mxu0 %vm1874_vm4, %v5800_v18 }
 0xd0d   :  { %15383 = vmatmul.mubr.msk.f32.gmra.mrb[94].mxu0 %vm1874_vm4, %v5801_v47 }
 0xd0e   :  { %15389 = vmatprep.mubr.msk.f32.mxu0 %vm63_vm1, %v19240_v55 }
 0xd11   :  { %15390 = vmatmul.mubr.msk.f32.vlgmr.msra.gmra.mrb[80].mxu0 %vm63_vm1, %v19241_v58 }
 0xd12   :  { %15392 = vmatprep.mubr.msk.f32.mxu0 %vm63_vm1, %v19242_v48 }
 0xd15   :  { %15393 = vmatmul.mubr.msk.f32.gmra.mrb[82].mxu0 %vm63_vm1, %v19243_v8 }
 0xd16   :  { %15395 = vmatprep.mubr.msk.f32.mxu0 %vm63_vm1, %v19244_v54 }
 0xd19   :  { %15396 = vmatmul.mubr.msk.f32.gmra.mrb[84].mxu0 %vm63_vm1, %v19245_v56 }
 0xd1a   :  { %15398 = vmatprep.mubr.msk.f32.mxu0 %vm63_vm1, %v19246_v19 }
 0xd1d   :  { %15399 = vmatmul.mubr.msk.f32.gmra.mrb[86].mxu0 %vm63_vm1, %v19247_v35 }
 0xd1e   :  { %15401 = vmatprep.mubr.msk.f32.mxu0 %vm63_vm1, %v19248_v26 }
 0xd21   :  { %15402 = vmatmul.mubr.msk.f32.gmra.mrb[88].mxu0 %vm63_vm1, %v19249_v45 }
 0xd22   :  { %15404 = vmatprep.mubr.msk.f32.mxu0 %vm63_vm1, %v19250_v31 }
 0xd25   :  { %15405 = vmatmul.mubr.msk.f32.gmra.mrb[90].mxu0 %vm63_vm1, %v19251_v9 }
 0xd26   :  { %15407 = vmatprep.mubr.msk.f32.mxu0 %vm63_vm1, %v19252_v34 }
 0xd29   :  { %15408 = vmatmul.mubr.msk.f32.gmra.mrb[92].mxu0 %vm63_vm1, %v19253_v27 }
 0xd2a   :  { %15410 = vmatprep.mubr.msk.f32.mxu0 %vm63_vm1, %v19254_v15 }
 0xd2d   :  { %15411 = vmatmul.mubr.msk.f32.gmra.mrb[94].mxu0 %vm63_vm1, %v19255_v22 }
 0xde4   :  { %v15391_v2 = vpop.f32.mrb[80].mxu0 }
 0xde5   :  { %v15499_v63 = vadd.f32 %v15391_v2, %v13065_v33  ;;  %v12092_v43 = vpop.f32.mrb[81].mxu0 }
 0xde6   :  { %v15501_v50 = vadd.f32 %v13065_v33, %v12092_v43 }
 0xde7   :  { %v15500_v57 = vadd.f32 %v15499_v63, %v13066_v21 }
 0xde8   :  { %v15502_v39 = vadd.f32 %v15501_v50, %v13066_v21  ;;  %v15394_v36 = vpop.f32.mrb[82].mxu0 }
 0xde9   :  { %v12188_v37 = vmax.f32 %v15500_v57, 0.0  ;;  %v15504_v6 = vadd.f32 %v15505_v0, %v15394_v36  ;;  %v12102_v17 = vpop.f32.mrb[83].mxu0 }
 0xdea   :  { %v12187_v10 = vmax.f32 %v15502_v39, 0.0  ;;  %v15506_v30 = vadd.f32 %v15505_v0, %v12102_v17 }
 0xdeb   :  { %12204 = vst.msk [vmem:[%s19138_s3 + $0x8] sm:$0xff] %vm63_vm1, %v12188_v37  ;;  %v12190_v23 = vmax.f32 %v15504_v6, 0.0 }
 0xdec   :  { %12203 = vst.msk [vmem:[%s19138_s3] sm:$0xff] %vm63_vm1, %v12187_v10  ;;  %v12189_v51 = vmax.f32 %v15506_v30, 0.0  ;;  %v15397_v14 = vpop.f32.mrb[84].mxu0 }
 0xded   :  { %12206 = vst.msk [vmem:[%s19138_s3 + $0x18] sm:$0xff] %vm63_vm1, %v12190_v23  ;;  %v15508_v60 = vadd.f32 %v15505_v0, %v15397_v14  ;;  %v12112_v24 = vpop.f32.mrb[85].mxu0 }
 0xdee   :  { %12205 = vst.msk [vmem:[%s19138_s3 + $0x10] sm:$0xff] %vm63_vm1, %v12189_v51  ;;  %v15510_v49 = vadd.f32 %v15505_v0, %v12112_v24 }
 0xdef   :  { %v12192_v62 = vmax.f32 %v15508_v60, 0.0 }
 0xdf0   :  { %v12191_v20 = vmax.f32 %v15510_v49, 0.0  ;;  %v15400_v25 = vpop.f32.mrb[86].mxu0 }
 0xdf1   :  { %12208 = vst.msk [vmem:[%s19138_s3 + $0x28] sm:$0xff] %vm63_vm1, %v12192_v62  ;;  %v15512_v52 = vadd.f32 %v15505_v0, %v15400_v25  ;;  %v12122_v46 = vpop.f32.mrb[87].mxu0 }
 0xdf2   :  { %12207 = vst.msk [vmem:[%s19138_s3 + $0x20] sm:$0xff] %vm63_vm1, %v12191_v20  ;;  %v15514_v13 = vadd.f32 %v15505_v0, %v12122_v46 }
 0xdf3   :  { %v12194_v11 = vmax.f32 %v15512_v52, 0.0 }
 0xdf4   :  { %v12193_v16 = vmax.f32 %v15514_v13, 0.0  ;;  %v15403_v3 = vpop.f32.mrb[88].mxu0 }
 0xdf5   :  { %12210 = vst.msk [vmem:[%s19138_s3 + $0x38] sm:$0xff] %vm63_vm1, %v12194_v11  ;;  %v15516_v53 = vadd.f32 %v15505_v0, %v15403_v3  ;;  %v12132_v1 = vpop.f32.mrb[89].mxu0 }
 0xdf6   :  { %12209 = vst.msk [vmem:[%s19138_s3 + $0x30] sm:$0xff] %vm63_vm1, %v12193_v16  ;;  %v15518_v7 = vadd.f32 %v15505_v0, %v12132_v1 }
 0xdf7   :  { %v12196_v4 = vmax.f32 %v15516_v53, 0.0 }
 0xdf8   :  { %v12195_v40 = vmax.f32 %v15518_v7, 0.0  ;;  %v15406_v61 = vpop.f32.mrb[90].mxu0 }
 0xdf9   :  { %12212 = vst.msk [vmem:[%s19138_s3 + $0x48] sm:$0xff] %vm63_vm1, %v12196_v4  ;;  %v15520_v38 = vadd.f32 %v15505_v0, %v15406_v61  ;;  %v12142_v12 = vpop.f32.mrb[91].mxu0 }
 0xdfa   :  { %12211 = vst.msk [vmem:[%s19138_s3 + $0x40] sm:$0xff] %vm63_vm1, %v12195_v40  ;;  %v15522_v42 = vadd.f32 %v15505_v0, %v12142_v12 }
 0xdfb   :  { %v12198_v5 = vmax.f32 %v15520_v38, 0.0 }
 0xdfc   :  { %v12197_v41 = vmax.f32 %v15522_v42, 0.0  ;;  %v15409_v29 = vpop.f32.mrb[92].mxu0 }
 0xdfd   :  { %12214 = vst.msk [vmem:[%s19138_s3 + $0x58] sm:$0xff] %vm63_vm1, %v12198_v5  ;;  %v15524_v44 = vadd.f32 %v15505_v0, %v15409_v29  ;;  %v12152_v32 = vpop.f32.mrb[93].mxu0 }
 0xdfe   :  { %12213 = vst.msk [vmem:[%s19138_s3 + $0x50] sm:$0xff] %vm63_vm1, %v12197_v41  ;;  %v15526_v59 = vadd.f32 %v15505_v0, %v12152_v32 }
 0xdff   :  { %v12200_v28 = vmax.f32 %v15524_v44, 0.0 }
 0xe00   :  { %v12199_v18 = vmax.f32 %v15526_v59, 0.0  ;;  %v15412_v47 = vpop.f32.mrb[94].mxu0 }
 0xe01   :  { %12216 = vst.msk [vmem:[%s19138_s3 + $0x68] sm:$0xff] %vm63_vm1, %v12200_v28  ;;  %v15528_v55 = vadd.f32 %v15505_v0, %v15412_v47  ;;  %v12162_v58 = vpop.f32.mrb[95].mxu0 }
 0xe02   :  { %12215 = vst.msk [vmem:[%s19138_s3 + $0x60] sm:$0xff] %vm63_vm1, %v12199_v18  ;;  %v15530_v48 = vadd.f32 %v15505_v0, %v12162_v58 }
 0xe03   :  { %v12202_v8 = vmax.f32 %v15528_v55, 0.0 }
 0xe04   :  { %v12201_v54 = vmax.f32 %v15530_v48, 0.0 }
 0xe05   :  { %12218 = vst.msk [vmem:[%s19138_s3 + $0x78] sm:$0xff] %vm63_vm1, %v12202_v8 }
 0xe06   :  { %12217 = vst.msk [vmem:[%s19138_s3 + $0x70] sm:$0xff] %vm63_vm1, %v12201_v54 }

</bundles_post_ra>
